<compile_context>
chip_gen: v7x
topology: tpu7x:2x2x1
jax: 0.10.0
libtpu: 0.0.40
codegen_flags: <defaults>
</compile_context>

<pallas_src>
import jax
import jax.numpy as jnp
from jax.experimental import pallas as pl
from jax.experimental.pallas import tpu as pltpu

NEG_SLOPE = 0.01   # nn.LeakyReLU default negative_slope
LANE = 128


def _round_up(x, m):
    return ((x + m - 1) // m) * m


def _leaky_relu(v):
    # Compare/select in f32 (v5e VPU has no bf16 path); matches torch LeakyReLU.
    return jnp.where(v >= 0, v, NEG_SLOPE * v)


def mlp_kernel(x_ref, w1_ref, w2_ref, w3_ref, w4_ref, b_ref, o_ref):
    hidden = w1_ref.shape[1]
    out_f = w4_ref.shape[1]

    # Packed resident biases: row i = bias of layer i+1 (f32, zero-padded).
    b = b_ref[...]
    b1 = b[0:1, :hidden]
    b2 = b[1:2, :hidden]
    b3 = b[2:3, :hidden]
    b4 = b[3:4, :out_f]

    # Layers 1-3: bf16 activations/weights on the MXU, f32 accumulation.
    h = x_ref[...].astype(jnp.bfloat16)

    h = jnp.dot(h, w1_ref[...], preferred_element_type=jnp.float32) + b1
    h = _leaky_relu(h).astype(jnp.bfloat16)

    h = jnp.dot(h, w2_ref[...], preferred_element_type=jnp.float32) + b2
    h = _leaky_relu(h).astype(jnp.bfloat16)

    h = jnp.dot(h, w3_ref[...], preferred_element_type=jnp.float32) + b3
    h = _leaky_relu(h)  # stays f32: the final layer runs fully in f32

    o = jnp.dot(h, w4_ref[...], preferred_element_type=jnp.float32) + b4
    o_ref[...] = o.astype(o_ref.dtype)


def prepare_params(params):
    """One-time param prep (hoisted out of the per-call path).

    params: list of (w, b) with w as [in, out] f32 (torch W.T), b as [1, out].
    Returns a dict of kernel-ready arrays + static dims.
    """
    (w1, b1), (w2, b2), (w3, b3), (w4, b4) = params
    in_features, hidden = w1.shape
    out_features = w4.shape[1]

    # Pad the contraction dim of layer 1 to a lane multiple so the x tile is
    # lane-dense and the first matmul runs at K>=128 (no-op for real R3M 2048).
    in_pad = _round_up(in_features, LANE)
    w1p = w1 if in_pad == in_features else jnp.pad(
        w1, ((0, in_pad - in_features), (0, 0)))

    # bf16 weights for layers 1-3 (halves weight DMA, native MXU rate);
    # layer 4 kept f32 for accuracy (tiny: hidden x out).
    w1b = w1p.astype(jnp.bfloat16)
    w2b = w2.astype(jnp.bfloat16)
    w3b = w3.astype(jnp.bfloat16)
    w4f = w4.astype(jnp.float32)

    # Pack the four biases into a single resident f32 array (one DMA).
    bw = max(hidden, out_features)

    def _pad_bias(b):
        b = b.reshape(1, -1).astype(jnp.float32)
        return jnp.pad(b, ((0, 0), (0, bw - b.shape[1])))

    b_pack = jnp.concatenate([_pad_bias(b1), _pad_bias(b2),
                              _pad_bias(b3), _pad_bias(b4)], axis=0)

    return dict(w1=w1b, w2=w2b, w3=w3b, w4=w4f, b=b_pack,
                in_features=in_features, in_pad=in_pad,
                hidden=hidden, out_features=out_features)


def _resident(shape, single_buffer):
    # Constant index_map -> block DMA'd once and kept resident in VMEM.
    index_map = lambda i, _n=len(shape): (0,) * _n
    if single_buffer:
        # Fetched once; no need for double-buffered VMEM.
        return pl.BlockSpec(shape, index_map, pipeline_mode=pl.Buffered(1))
    return pl.BlockSpec(shape, index_map)


def mlp_forward(x, prep, *, tile_m=512):
    """x: [B, in_features] f32. prep: output of prepare_params()."""
    B, in_features = x.shape
    assert in_features == prep["in_features"]
    in_pad = prep["in_pad"]
    hidden = prep["hidden"]
    out_features = prep["out_features"]
    w1, w2, w3, w4, b = prep["w1"], prep["w2"], prep["w3"], prep["w4"], prep["b"]

    # Batch tiling: big tiles (HBM roofline + 256-wide MXU on v6e/v7x), but
    # guarantee >= 2 grid steps when possible so both v7x TensorCores get work.
    tm = min(tile_m, _round_up(B, 8))
    if B >= 16 and _round_up(B, tm) // tm < 2:
        tm = _round_up((B + 1) // 2, 8)
    B_pad = _round_up(B, tm)
    grid = (B_pad // tm,)

    xp = x
    if in_pad != in_features:
        xp = jnp.pad(xp, ((0, 0), (0, in_pad - in_features)))
    if B_pad != B:
        xp = jnp.pad(xp, ((0, B_pad - B), (0, 0)))

    flops = 2 * B_pad * (in_pad * hidden + 2 * hidden * hidden
                         + hidden * out_features)
    bytes_accessed = (
        xp.size * 4
        + (w1.size + w2.size + w3.size) * 2   # bf16 weights, DMA'd once
        + w4.size * 4 + b.size * 4            # f32 layer-4 weight + packed bias
        + B_pad * out_features * 4            # f32 output
    )

    def run(single_buffer):
        in_specs = [pl.BlockSpec((tm, in_pad), lambda i: (i, 0))] + [
            _resident(arr.shape, single_buffer)
            for arr in (w1, w2, w3, w4, b)
        ]
        return pl.pallas_call(
            mlp_kernel,
            out_shape=jax.ShapeDtypeStruct((B_pad, out_features), jnp.float32),
            grid=grid,
            in_specs=in_specs,
            out_specs=pl.BlockSpec((tm, out_features), lambda i: (i, 0)),
            compiler_params=pltpu.CompilerParams(
                dimension_semantics=("parallel",)),
            cost_estimate=pl.CostEstimate(
                flops=flops, transcendentals=0,
                bytes_accessed=bytes_accessed),
        )(xp, w1, w2, w3, w4, b)

    try:
        out = run(True)
    except Exception:
        # Compatibility fallback if this jax build rejects Buffered(1) on a
        # resident block; functionally identical (just double-buffers weights).
        out = run(False)

    return out if B_pad == B else out[:B]


def init_params(key, in_channels, out_channels, hidden=512):
    """Deterministic init mimicking torch.nn.Linear (uniform +/- 1/sqrt(fan_in)).
    Weights are stored transposed, as [in, out]."""
    dims = [(in_channels, hidden), (hidden, hidden), (hidden, hidden),
            (hidden, out_channels)]
    params = []
    for (fan_in, fan_out) in dims:
        key, kw, kb = jax.random.split(key, 3)
        bound = 1.0 / jnp.sqrt(jnp.float32(fan_in))
        w = jax.random.uniform(kw, (fan_in, fan_out), jnp.float32,
                               minval=-bound, maxval=bound)
        bb = jax.random.uniform(kb, (1, fan_out), jnp.float32,
                                minval=-bound, maxval=bound)
        params.append((w, bb))
    return params


def reference_forward(x, params):
    h = x
    for i, (w, bb) in enumerate(params):
        h = h @ w + bb
        if i < len(params) - 1:
            h = jnp.where(h >= 0, h, NEG_SLOPE * h)
    return h


if __name__ == "__main__":
    key = jax.random.PRNGKey(0)
    k_x, k_x2, k_p = jax.random.split(key, 3)

    B, in_channels, out_channels = 8, 32, 16
    params = init_params(k_p, in_channels, out_channels)
    prep = prepare_params(params)   # one-time cast/pad/pack, not per call

    # Small single-tile case.
    x = jax.random.normal(k_x, (B, in_channels), jnp.float32)
    out = jax.block_until_ready(mlp_forward(x, prep))
    ref = reference_forward(x, params)
    assert out.shape == (B, out_channels)
    # bf16 weights/activations on layers 1-3 vs f32 reference -> loose tolerance.
    assert jnp.allclose(out, ref, atol=5e-2, rtol=5e-2)

    # Multi-tile case (exercises batch padding + the >=2-step parallel grid).
    B2 = 200
    x2 = jax.random.normal(k_x2, (B2, in_channels), jnp.float32)
    out2 = jax.block_until_ready(mlp_forward(x2, prep))
    ref2 = reference_forward(x2, params)
    assert out2.shape == (B2, out_channels)
    assert jnp.allclose(out2, ref2, atol=5e-2, rtol=5e-2)

    print("KERNEL_OK")
</pallas_src>

<mosaic_0001>
module attributes {stable_mosaic.version = 11 : i64} {
  func.func @mlp_kernel(%arg0: i32, %arg1: memref<8x128xf32, #tpu.memory_space<vmem>>, %arg2: memref<128x512xbf16, #tpu.memory_space<vmem>>, %arg3: memref<512x512xbf16, #tpu.memory_space<vmem>>, %arg4: memref<512x512xbf16, #tpu.memory_space<vmem>>, %arg5: memref<512x16xf32, #tpu.memory_space<vmem>>, %arg6: memref<4x512xf32, #tpu.memory_space<vmem>>, %arg7: memref<8x16xf32, #tpu.memory_space<vmem>>) attributes {dimension_semantics = [#tpu.dimension_semantics<parallel>], iteration_bounds = array<i64: 1>, scalar_prefetch = 0 : i64, scratch_operands = 0 : i64, tpu.core_type = #tpu.core_type<tc>, window_params = [{transform_indices = @transform_0, window_bounds = array<i64: 8, 128>}, {pipeline_mode = #tpu.pipeline_mode<synchronous>, transform_indices = @transform_1, window_bounds = array<i64: 128, 512>}, {pipeline_mode = #tpu.pipeline_mode<synchronous>, transform_indices = @transform_2, window_bounds = array<i64: 512, 512>}, {pipeline_mode = #tpu.pipeline_mode<synchronous>, transform_indices = @transform_3, window_bounds = array<i64: 512, 512>}, {pipeline_mode = #tpu.pipeline_mode<synchronous>, transform_indices = @transform_4, window_bounds = array<i64: 512, 16>}, {pipeline_mode = #tpu.pipeline_mode<synchronous>, transform_indices = @transform_5, window_bounds = array<i64: 4, 512>}, {transform_indices = @transform_6, window_bounds = array<i64: 8, 16>}]} {
    %c0 = arith.constant 0 : index
    %c0_0 = arith.constant 0 : index
    %0 = vector.load %arg6[%c0, %c0_0] : memref<4x512xf32, #tpu.memory_space<vmem>>, vector<4x512xf32>
    %1 = vector.extract_strided_slice %0 {offsets = [0, 0], sizes = [1, 512], strides = [1, 1]} : vector<4x512xf32> to vector<1x512xf32>
    %2 = vector.extract_strided_slice %0 {offsets = [1, 0], sizes = [1, 512], strides = [1, 1]} : vector<4x512xf32> to vector<1x512xf32>
    %3 = vector.extract_strided_slice %0 {offsets = [2, 0], sizes = [1, 512], strides = [1, 1]} : vector<4x512xf32> to vector<1x512xf32>
    %4 = vector.extract_strided_slice %0 {offsets = [3, 0], sizes = [1, 16], strides = [1, 1]} : vector<4x512xf32> to vector<1x16xf32>
    %c0_1 = arith.constant 0 : index
    %c0_2 = arith.constant 0 : index
    %5 = vector.load %arg1[%c0_1, %c0_2] : memref<8x128xf32, #tpu.memory_space<vmem>>, vector<8x128xf32>
    %6 = arith.truncf %5 : vector<8x128xf32> to vector<8x128xbf16>
    %c0_3 = arith.constant 0 : index
    %c0_4 = arith.constant 0 : index
    %7 = vector.load %arg2[%c0_3, %c0_4] : memref<128x512xbf16, #tpu.memory_space<vmem>>, vector<128x512xbf16>
    %cst = arith.constant dense<0.000000e+00> : vector<8x512xf32>
    %8 = tpu.matmul %6, %7, %cst {dimension_numbers = #tpu.dot_dimension_numbers<[1], [0], [0], [1], [0, 0, 1, 1], [], []>} : vector<8x128xbf16>, vector<128x512xbf16>, vector<8x512xf32> -> vector<8x512xf32>
    %9 = vector.broadcast %1 : vector<1x512xf32> to vector<8x512xf32>
    %10 = arith.addf %8, %9 : vector<8x512xf32>
    %cst_5 = arith.constant 0.000000e+00 : f32
    %11 = vector.broadcast %cst_5 : f32 to vector<8x512xf32>
    %12 = arith.cmpf oge, %10, %11 : vector<8x512xf32>
    %cst_6 = arith.constant 0.00999999977 : f32
    %13 = vector.broadcast %cst_6 : f32 to vector<8x512xf32>
    %14 = arith.mulf %13, %10 : vector<8x512xf32>
    %15 = arith.select %12, %10, %14 : vector<8x512xi1>, vector<8x512xf32>
    %16 = arith.truncf %15 : vector<8x512xf32> to vector<8x512xbf16>
    %c0_7 = arith.constant 0 : index
    %c0_8 = arith.constant 0 : index
    %17 = vector.load %arg3[%c0_7, %c0_8] : memref<512x512xbf16, #tpu.memory_space<vmem>>, vector<512x512xbf16>
    %cst_9 = arith.constant dense<0.000000e+00> : vector<8x512xf32>
    %18 = tpu.matmul %16, %17, %cst_9 {dimension_numbers = #tpu.dot_dimension_numbers<[1], [0], [0], [1], [0, 0, 1, 1], [], []>} : vector<8x512xbf16>, vector<512x512xbf16>, vector<8x512xf32> -> vector<8x512xf32>
    %19 = vector.broadcast %2 : vector<1x512xf32> to vector<8x512xf32>
    %20 = arith.addf %18, %19 : vector<8x512xf32>
    %cst_10 = arith.constant 0.000000e+00 : f32
    %21 = vector.broadcast %cst_10 : f32 to vector<8x512xf32>
    %22 = arith.cmpf oge, %20, %21 : vector<8x512xf32>
    %cst_11 = arith.constant 0.00999999977 : f32
    %23 = vector.broadcast %cst_11 : f32 to vector<8x512xf32>
    %24 = arith.mulf %23, %20 : vector<8x512xf32>
    %25 = arith.select %22, %20, %24 : vector<8x512xi1>, vector<8x512xf32>
    %26 = arith.truncf %25 : vector<8x512xf32> to vector<8x512xbf16>
    %c0_12 = arith.constant 0 : index
    %c0_13 = arith.constant 0 : index
    %27 = vector.load %arg4[%c0_12, %c0_13] : memref<512x512xbf16, #tpu.memory_space<vmem>>, vector<512x512xbf16>
    %cst_14 = arith.constant dense<0.000000e+00> : vector<8x512xf32>
    %28 = tpu.matmul %26, %27, %cst_14 {dimension_numbers = #tpu.dot_dimension_numbers<[1], [0], [0], [1], [0, 0, 1, 1], [], []>} : vector<8x512xbf16>, vector<512x512xbf16>, vector<8x512xf32> -> vector<8x512xf32>
    %29 = vector.broadcast %3 : vector<1x512xf32> to vector<8x512xf32>
    %30 = arith.addf %28, %29 : vector<8x512xf32>
    %cst_15 = arith.constant 0.000000e+00 : f32
    %31 = vector.broadcast %cst_15 : f32 to vector<8x512xf32>
    %32 = arith.cmpf oge, %30, %31 : vector<8x512xf32>
    %cst_16 = arith.constant 0.00999999977 : f32
    %33 = vector.broadcast %cst_16 : f32 to vector<8x512xf32>
    %34 = arith.mulf %33, %30 : vector<8x512xf32>
    %35 = arith.select %32, %30, %34 : vector<8x512xi1>, vector<8x512xf32>
    %c0_17 = arith.constant 0 : index
    %c0_18 = arith.constant 0 : index
    %36 = vector.load %arg5[%c0_17, %c0_18] : memref<512x16xf32, #tpu.memory_space<vmem>>, vector<512x16xf32>
    %cst_19 = arith.constant dense<0.000000e+00> : vector<8x16xf32>
    %37 = tpu.matmul %35, %36, %cst_19 {dimension_numbers = #tpu.dot_dimension_numbers<[1], [0], [0], [1], [0, 0, 1, 1], [], []>} : vector<8x512xf32>, vector<512x16xf32>, vector<8x16xf32> -> vector<8x16xf32>
    %38 = vector.broadcast %4 : vector<1x16xf32> to vector<8x16xf32>
    %39 = arith.addf %37, %38 : vector<8x16xf32>
    %c0_20 = arith.constant 0 : index
    %c0_21 = arith.constant 0 : index
    %40 = vector.load %arg7[%c0_20, %c0_21] : memref<8x16xf32, #tpu.memory_space<vmem>>, vector<8x16xf32>
    tpu.vector_store %arg7[%c0_20, %c0_21], %39 {strides = array<i32>} : memref<8x16xf32, #tpu.memory_space<vmem>>, vector<8x16xf32>,
    return
  }
  func.func @transform_0(%arg0: i32) -> (i32, i32) {
    %c0_i32 = arith.constant 0 : i32
    %c0_i32_0 = arith.constant 0 : i32
    return %arg0, %c0_i32 : i32, i32
  }
  func.func @transform_1(%arg0: i32) -> (i32, i32) {
    %c0_i32 = arith.constant 0 : i32
    %c0_i32_0 = arith.constant 0 : i32
    %c0_i32_1 = arith.constant 0 : i32
    return %c0_i32, %c0_i32_0 : i32, i32
  }
  func.func @transform_2(%arg0: i32) -> (i32, i32) {
    %c0_i32 = arith.constant 0 : i32
    %c0_i32_0 = arith.constant 0 : i32
    %c0_i32_1 = arith.constant 0 : i32
    return %c0_i32, %c0_i32_0 : i32, i32
  }
  func.func @transform_3(%arg0: i32) -> (i32, i32) {
    %c0_i32 = arith.constant 0 : i32
    %c0_i32_0 = arith.constant 0 : i32
    %c0_i32_1 = arith.constant 0 : i32
    return %c0_i32, %c0_i32_0 : i32, i32
  }
  func.func @transform_4(%arg0: i32) -> (i32, i32) {
    %c0_i32 = arith.constant 0 : i32
    %c0_i32_0 = arith.constant 0 : i32
    %c0_i32_1 = arith.constant 0 : i32
    return %c0_i32, %c0_i32_0 : i32, i32
  }
  func.func @transform_5(%arg0: i32) -> (i32, i32) {
    %c0_i32 = arith.constant 0 : i32
    %c0_i32_0 = arith.constant 0 : i32
    %c0_i32_1 = arith.constant 0 : i32
    return %c0_i32, %c0_i32_0 : i32, i32
  }
  func.func @transform_6(%arg0: i32) -> (i32, i32) {
    %c0_i32 = arith.constant 0 : i32
    %c0_i32_0 = arith.constant 0 : i32
    return %arg0, %c0_i32 : i32, i32
  }
}

module attributes {stable_mosaic.version = 11 : i64} {
  func.func @mlp_kernel(%arg0: i32, %arg1: memref<8x128xf32, #tpu.memory_space<vmem>>, %arg2: memref<128x512xbf16, #tpu.memory_space<vmem>>, %arg3: memref<512x512xbf16, #tpu.memory_space<vmem>>, %arg4: memref<512x512xbf16, #tpu.memory_space<vmem>>, %arg5: memref<512x16xf32, #tpu.memory_space<vmem>>, %arg6: memref<4x512xf32, #tpu.memory_space<vmem>>, %arg7: memref<8x16xf32, #tpu.memory_space<vmem>>) attributes {dimension_semantics = [#tpu.dimension_semantics<parallel>], iteration_bounds = array<i64: 1>, scalar_prefetch = 0 : i64, scratch_operands = 0 : i64, tpu.core_type = #tpu.core_type<tc>, window_params = [{transform_indices = @transform_0, window_bounds = array<i64: 8, 128>}, {pipeline_mode = #tpu.pipeline_mode<synchronous>, transform_indices = @transform_1, window_bounds = array<i64: 128, 512>}, {pipeline_mode = #tpu.pipeline_mode<synchronous>, transform_indices = @transform_2, window_bounds = array<i64: 512, 512>}, {pipeline_mode = #tpu.pipeline_mode<synchronous>, transform_indices = @transform_3, window_bounds = array<i64: 512, 512>}, {pipeline_mode = #tpu.pipeline_mode<synchronous>, transform_indices = @transform_4, window_bounds = array<i64: 512, 16>}, {pipeline_mode = #tpu.pipeline_mode<synchronous>, transform_indices = @transform_5, window_bounds = array<i64: 4, 512>}, {transform_indices = @transform_6, window_bounds = array<i64: 8, 16>}]} {
    %c0 = arith.constant 0 : index
    %c0_0 = arith.constant 0 : index
    %0 = vector.load %arg6[%c0, %c0_0] : memref<4x512xf32, #tpu.memory_space<vmem>>, vector<4x512xf32>
    %1 = vector.extract_strided_slice %0 {offsets = [0, 0], sizes = [1, 512], strides = [1, 1]} : vector<4x512xf32> to vector<1x512xf32>
    %2 = vector.extract_strided_slice %0 {offsets = [1, 0], sizes = [1, 512], strides = [1, 1]} : vector<4x512xf32> to vector<1x512xf32>
    %3 = vector.extract_strided_slice %0 {offsets = [2, 0], sizes = [1, 512], strides = [1, 1]} : vector<4x512xf32> to vector<1x512xf32>
    %4 = vector.extract_strided_slice %0 {offsets = [3, 0], sizes = [1, 16], strides = [1, 1]} : vector<4x512xf32> to vector<1x16xf32>
    %c0_1 = arith.constant 0 : index
    %c0_2 = arith.constant 0 : index
    %5 = vector.load %arg1[%c0_1, %c0_2] : memref<8x128xf32, #tpu.memory_space<vmem>>, vector<8x128xf32>
    %6 = arith.truncf %5 : vector<8x128xf32> to vector<8x128xbf16>
    %c0_3 = arith.constant 0 : index
    %c0_4 = arith.constant 0 : index
    %7 = vector.load %arg2[%c0_3, %c0_4] : memref<128x512xbf16, #tpu.memory_space<vmem>>, vector<128x512xbf16>
    %cst = arith.constant dense<0.000000e+00> : vector<8x512xf32>
    %8 = tpu.matmul %6, %7, %cst {dimension_numbers = #tpu.dot_dimension_numbers<[1], [0], [0], [1], [0, 0, 1, 1], [], []>} : vector<8x128xbf16>, vector<128x512xbf16>, vector<8x512xf32> -> vector<8x512xf32>
    %9 = vector.broadcast %1 : vector<1x512xf32> to vector<8x512xf32>
    %10 = arith.addf %8, %9 : vector<8x512xf32>
    %cst_5 = arith.constant 0.000000e+00 : f32
    %11 = vector.broadcast %cst_5 : f32 to vector<8x512xf32>
    %12 = arith.cmpf oge, %10, %11 : vector<8x512xf32>
    %cst_6 = arith.constant 0.00999999977 : f32
    %13 = vector.broadcast %cst_6 : f32 to vector<8x512xf32>
    %14 = arith.mulf %13, %10 : vector<8x512xf32>
    %15 = arith.select %12, %10, %14 : vector<8x512xi1>, vector<8x512xf32>
    %16 = arith.truncf %15 : vector<8x512xf32> to vector<8x512xbf16>
    %c0_7 = arith.constant 0 : index
    %c0_8 = arith.constant 0 : index
    %17 = vector.load %arg3[%c0_7, %c0_8] : memref<512x512xbf16, #tpu.memory_space<vmem>>, vector<512x512xbf16>
    %cst_9 = arith.constant dense<0.000000e+00> : vector<8x512xf32>
    %18 = tpu.matmul %16, %17, %cst_9 {dimension_numbers = #tpu.dot_dimension_numbers<[1], [0], [0], [1], [0, 0, 1, 1], [], []>} : vector<8x512xbf16>, vector<512x512xbf16>, vector<8x512xf32> -> vector<8x512xf32>
    %19 = vector.broadcast %2 : vector<1x512xf32> to vector<8x512xf32>
    %20 = arith.addf %18, %19 : vector<8x512xf32>
    %cst_10 = arith.constant 0.000000e+00 : f32
    %21 = vector.broadcast %cst_10 : f32 to vector<8x512xf32>
    %22 = arith.cmpf oge, %20, %21 : vector<8x512xf32>
    %cst_11 = arith.constant 0.00999999977 : f32
    %23 = vector.broadcast %cst_11 : f32 to vector<8x512xf32>
    %24 = arith.mulf %23, %20 : vector<8x512xf32>
    %25 = arith.select %22, %20, %24 : vector<8x512xi1>, vector<8x512xf32>
    %26 = arith.truncf %25 : vector<8x512xf32> to vector<8x512xbf16>
    %c0_12 = arith.constant 0 : index
    %c0_13 = arith.constant 0 : index
    %27 = vector.load %arg4[%c0_12, %c0_13] : memref<512x512xbf16, #tpu.memory_space<vmem>>, vector<512x512xbf16>
    %cst_14 = arith.constant dense<0.000000e+00> : vector<8x512xf32>
    %28 = tpu.matmul %26, %27, %cst_14 {dimension_numbers = #tpu.dot_dimension_numbers<[1], [0], [0], [1], [0, 0, 1, 1], [], []>} : vector<8x512xbf16>, vector<512x512xbf16>, vector<8x512xf32> -> vector<8x512xf32>
    %29 = vector.broadcast %3 : vector<1x512xf32> to vector<8x512xf32>
    %30 = arith.addf %28, %29 : vector<8x512xf32>
    %cst_15 = arith.constant 0.000000e+00 : f32
    %31 = vector.broadcast %cst_15 : f32 to vector<8x512xf32>
    %32 = arith.cmpf oge, %30, %31 : vector<8x512xf32>
    %cst_16 = arith.constant 0.00999999977 : f32
    %33 = vector.broadcast %cst_16 : f32 to vector<8x512xf32>
    %34 = arith.mulf %33, %30 : vector<8x512xf32>
    %35 = arith.select %32, %30, %34 : vector<8x512xi1>, vector<8x512xf32>
    %c0_17 = arith.constant 0 : index
    %c0_18 = arith.constant 0 : index
    %36 = vector.load %arg5[%c0_17, %c0_18] : memref<512x16xf32, #tpu.memory_space<vmem>>, vector<512x16xf32>
    %cst_19 = arith.constant dense<0.000000e+00> : vector<8x16xf32>
    %37 = tpu.matmul %35, %36, %cst_19 {dimension_numbers = #tpu.dot_dimension_numbers<[1], [0], [0], [1], [0, 0, 1, 1], [], []>} : vector<8x512xf32>, vector<512x16xf32>, vector<8x16xf32> -> vector<8x16xf32>
    %38 = vector.broadcast %4 : vector<1x16xf32> to vector<8x16xf32>
    %39 = arith.addf %37, %38 : vector<8x16xf32>
    %c0_20 = arith.constant 0 : index
    %c0_21 = arith.constant 0 : index
    %40 = vector.load %arg7[%c0_20, %c0_21] : memref<8x16xf32, #tpu.memory_space<vmem>>, vector<8x16xf32>
    tpu.vector_store %arg7[%c0_20, %c0_21], %39 {strides = array<i32>} : memref<8x16xf32, #tpu.memory_space<vmem>>, vector<8x16xf32>,
    return
  }
  func.func @transform_0(%arg0: i32) -> (i32, i32) {
    %c0_i32 = arith.constant 0 : i32
    %c0_i32_0 = arith.constant 0 : i32
    return %arg0, %c0_i32 : i32, i32
  }
  func.func @transform_1(%arg0: i32) -> (i32, i32) {
    %c0_i32 = arith.constant 0 : i32
    %c0_i32_0 = arith.constant 0 : i32
    %c0_i32_1 = arith.constant 0 : i32
    return %c0_i32, %c0_i32_0 : i32, i32
  }
  func.func @transform_2(%arg0: i32) -> (i32, i32) {
    %c0_i32 = arith.constant 0 : i32
    %c0_i32_0 = arith.constant 0 : i32
    %c0_i32_1 = arith.constant 0 : i32
    return %c0_i32, %c0_i32_0 : i32, i32
  }
  func.func @transform_3(%arg0: i32) -> (i32, i32) {
    %c0_i32 = arith.constant 0 : i32
    %c0_i32_0 = arith.constant 0 : i32
    %c0_i32_1 = arith.constant 0 : i32
    return %c0_i32, %c0_i32_0 : i32, i32
  }
  func.func @transform_4(%arg0: i32) -> (i32, i32) {
    %c0_i32 = arith.constant 0 : i32
    %c0_i32_0 = arith.constant 0 : i32
    %c0_i32_1 = arith.constant 0 : i32
    return %c0_i32, %c0_i32_0 : i32, i32
  }
  func.func @transform_5(%arg0: i32) -> (i32, i32) {
    %c0_i32 = arith.constant 0 : i32
    %c0_i32_0 = arith.constant 0 : i32
    %c0_i32_1 = arith.constant 0 : i32
    return %c0_i32, %c0_i32_0 : i32, i32
  }
  func.func @transform_6(%arg0: i32) -> (i32, i32) {
    %c0_i32 = arith.constant 0 : i32
    %c0_i32_0 = arith.constant 0 : i32
    return %arg0, %c0_i32 : i32, i32
  }
}

</mosaic_0001>

<bundles_post_ra>
// kernel: tpu_custom_call.1
= control target key start
LH: loop header
LB: loop body
LE: loop exit
PB: predicated region body
PF: predicated region fallthrough
CT: control target
= control target key end

     0   :  { %11 = vsyncpa [#allocation3], 0  ;;  %s3956_s0 = inlined_call_operand.vmem [shape: f32[8,128], index: 0, kind: input, shape index: {}]   ;;  %s3957_s1 = inlined_call_operand.vmem [shape: bf16[128,512], index: 1, kind: input, shape index: {}]   ;;  %s3958_s2 = inlined_call_operand.hbm [shape: bf16[512,512], index: 2, kind: input, shape index: {}]   ;;  %s3959_s3 = inlined_call_operand.hbm [shape: bf16[512,512], index: 3, kind: input, shape index: {}]   ;;  %s3960_s4 = inlined_call_operand.vmem [shape: f32[512,16], index: 4, kind: input, shape index: {}]   ;;  %s3961_s5 = inlined_call_operand.vmem [shape: f32[4,512], index: 5, kind: input, shape index: {}]   ;;  %s3962_s6 = inlined_call_operand.hbm [shape: f32[8,16], index: 6, kind: output, shape index: {}]  }
   0x1   :  { %12 = vsyncpa [#allocation6], 0 }
   0x2   :  { %13 = vsyncpa [#allocation4], 0  ;;  %s3533_s21 = smov [#allocation2]   ;;  %s3461_s25 = scalar_lea.hbm %s3958_s2, 16384 }
   0x3   :  { %s23_s22 = sshll.u32 %s3533_s21, 4  ;;  %p3462_p0 = scmp.ne.s32.totalorder %s3958_s2, %s3461_s25  ;;  %s24_s22 = int_to_ptr.vmem [resolvable:$true] %s23_s22 }
   0x4   :  { %p3465_p1 = scmp.lt.u32.totalorder %s3461_s25, %s3958_s2 }
   0x6   :  { %p3467_p2 = pnand %p3465_p1, %p3462_p0 }
   0x8   :  { %3470 = shalt.err (!%p3467_p2)
}
   0x9   :  { %s3471_s30 = scalar_lea.vmem %s24_s22, 16384  ;;  %p3476_p4 = scmp.lt.s32.totalorder %s24_s22, %s24_s22 }
   0xa   :  { %p3472_p3 = scmp.ne.s32.totalorder %s24_s22, %s3471_s30  ;;  %p3477_p5 = scmp.lt.s32.totalorder %s3471_s30, %s3471_s30 }
   0xc   :  { %p3478_p6 = por %p3477_p5, %p3476_p4 }
   0xe   :  { %p3479_p7 = pnand %p3478_p6, %p3472_p3 }
  0x10   :  { %3482 = shalt.err (!%p3479_p7)
}
  0x11   :  { %s3534_s7 = smov 256   ;;  %s3535_s8 = smov 16  }
  0x12   :  { %29 = dma.hbm_to_vmem [thread:$0]  %s3958_s2, 16384, %s24_s22, [#allocation3], %s3534_s7, %s3534_s7, %s3535_s8  }
  0x13   :  { %s3536_s11 = smov [#allocation5]   ;;  %s3483_s15 = scalar_lea.hbm %s3959_s3, 16384 }
  0x14   :  { %s35_s12 = sshll.u32 %s3536_s11, 4  ;;  %p3484_p8 = scmp.ne.s32.totalorder %s3959_s3, %s3483_s15  ;;  %s36_s12 = int_to_ptr.vmem [resolvable:$true] %s35_s12 }
  0x15   :  { %p3487_p9 = scmp.lt.u32.totalorder %s3483_s15, %s3959_s3 }
  0x17   :  { %p3489_p10 = pnand %p3487_p9, %p3484_p8 }
  0x19   :  { %3492 = shalt.err (!%p3489_p10)
}
  0x1a   :  { %s3493_s20 = scalar_lea.vmem %s36_s12, 16384  ;;  %p3498_p12 = scmp.lt.s32.totalorder %s36_s12, %s36_s12 }
  0x1b   :  { %p3494_p11 = scmp.ne.s32.totalorder %s36_s12, %s3493_s20  ;;  %p3499_p13 = scmp.lt.s32.totalorder %s3493_s20, %s3493_s20 }
  0x1d   :  { %p3500_p0 = por %p3499_p13, %p3498_p12 }
  0x1f   :  { %p3501_p1 = pnand %p3500_p0, %p3494_p11 }
  0x21   :  { %3504 = shalt.err (!%p3501_p1)
}
  0x22   :  { %41 = dma.hbm_to_vmem [thread:$0]  %s3959_s3, 16384, %s36_s12, [#allocation6], %s3534_s7, %s3534_s7, %s3535_s8  }
  0x23   :  { %3527 = dma.done.wait [#allocation3], 16384  }
  0x24   :  { %3528 = vsyncadd [#allocation3], 4294950912 }
  0x25   :  { %3529 = dma.done.wait [#allocation6], 16384  }
  0x26   :  { %3530 = vsyncadd [#allocation6], 4294950912  ;;  %v3537_v0 = vmov 0   ;;  %v3027_v1 = vld [vmem:[%s3957_s1 + $0x4] ss:$16 sps:$4 sm:$0xff]   ;;  %vm2557_vm12 = vcmask 130048  }
  0x27   :  { %319 = vmatprep.mubr.bf16.mxu0 %v3537_v0  ;;  %360 = vmatprep.mubr.bf16.mxu1 %v3537_v0  ;;  %v3029_v2 = vld [vmem:[%s3957_s1] ss:$16 sps:$4 sm:$0xff]   ;;  %v3030_v3 = vld [vmem:[%s3957_s1 + $0x24] ss:$16 sps:$4 sm:$0xff]   ;;  %v3051_v10 = vld [vmem:[%s3957_s1 + $0xc] ss:$16 sps:$4 sm:$0xff]  }
  0x28   :  { %287 = vmatprep.subr.bf16.mxu0 %v3027_v1  ;;  %v3032_v4 = vld [vmem:[%s3957_s1 + $0x20] ss:$16 sps:$4 sm:$0xff]   ;;  %v3033_v5 = vld [vmem:[%s3957_s1 + $0x44] ss:$16 sps:$4 sm:$0xff]   ;;  %v3053_v11 = vld [vmem:[%s3957_s1 + $0x8] ss:$16 sps:$4 sm:$0xff]   ;;  %328 = vmatprep.subr.bf16.mxu1 %v3051_v10 }
  0x29   :  { %288 = vmatpush1.bf16.msra.mxu0 %v3029_v2  ;;  %v3035_v6 = vld [vmem:[%s3957_s1 + $0x40] ss:$16 sps:$4 sm:$0xff]   ;;  %v3036_v7 = vld [vmem:[%s3957_s1 + $0x64] ss:$16 sps:$4 sm:$0xff]   ;;  %v3054_v12 = vld [vmem:[%s3957_s1 + $0x2c] ss:$16 sps:$4 sm:$0xff]   ;;  %329 = vmatpush1.bf16.msra.mxu1 %v3053_v11 }
  0x2a   :  { %289 = vmatprep.subr.bf16.mxu0 %v3030_v3  ;;  %v3038_v8 = vld [vmem:[%s3957_s1 + $0x60] ss:$16 sps:$4 sm:$0xff]   ;;  %v3039_v9 = vld [vmem:[%s3957_s1 + $0x84] ss:$16 sps:$4 sm:$0xff]   ;;  %v3056_v14 = vld [vmem:[%s3957_s1 + $0x28] ss:$16 sps:$4 sm:$0xff]   ;;  %330 = vmatprep.subr.bf16.mxu1 %v3054_v12 }
  0x2b   :  { %v3041_v13 = vld [vmem:[%s3957_s1 + $0x80] ss:$16 sps:$4 sm:$0xff]   ;;  %v3057_v15 = vld [vmem:[%s3957_s1 + $0x4c] ss:$16 sps:$4 sm:$0xff]   ;;  %v3042_v16 = vld [vmem:[%s3957_s1 + $0xa4] ss:$16 sps:$4 sm:$0xff]  }
  0x2c   :  { %v3044_v17 = vld [vmem:[%s3957_s1 + $0xa0] ss:$16 sps:$4 sm:$0xff]   ;;  %v3059_v18 = vld [vmem:[%s3957_s1 + $0x48] ss:$16 sps:$4 sm:$0xff]   ;;  %v3060_v19 = vld [vmem:[%s3957_s1 + $0x6c] ss:$16 sps:$4 sm:$0xff]  }
  0x2d   :  { %290 = vmatpush1.bf16.msra.mxu0 %v3032_v4  ;;  %331 = vmatpush1.bf16.msra.mxu1 %v3056_v14  ;;  %v3045_v20 = vld [vmem:[%s3957_s1 + $0xc4] ss:$16 sps:$4 sm:$0xff]   ;;  %v3047_v21 = vld [vmem:[%s3957_s1 + $0xc0] ss:$16 sps:$4 sm:$0xff]   ;;  %v3062_v22 = vld [vmem:[%s3957_s1 + $0x68] ss:$16 sps:$4 sm:$0xff]  }
  0x2e   :  { %291 = vmatprep.subr.bf16.mxu0 %v3033_v5  ;;  %332 = vmatprep.subr.bf16.mxu1 %v3057_v15  ;;  %v3063_v23 = vld [vmem:[%s3957_s1 + $0x8c] ss:$16 sps:$4 sm:$0xff]   ;;  %v3048_v24 = vld [vmem:[%s3957_s1 + $0xe4] ss:$16 sps:$4 sm:$0xff]   ;;  %v3050_v25 = vld [vmem:[%s3957_s1 + $0xe0] ss:$16 sps:$4 sm:$0xff]  }
  0x2f   :  { %v55_v26 = vld [vmem:[%s3956_s0] sm:$0xff]  ;;  %v3065_v27 = vld [vmem:[%s3957_s1 + $0x88] ss:$16 sps:$4 sm:$0xff]   ;;  %v3066_v28 = vld [vmem:[%s3957_s1 + $0xac] ss:$16 sps:$4 sm:$0xff]  }
  0x30   :  { %v3077_v29 = vld [vmem:[#allocation2 + $0x4] ss:$16 sps:$4 sm:$0xff]   ;;  %v56_v30 = vpack.c.bf16 %v55_v26, %v55_v26  ;;  %v3068_v31 = vld [vmem:[%s3957_s1 + $0xa8] ss:$16 sps:$4 sm:$0xff]   ;;  %v3069_v32 = vld [vmem:[%s3957_s1 + $0xcc] ss:$16 sps:$4 sm:$0xff]  }
  0x31   :  { %292 = vmatpush1.bf16.msra.mxu0 %v3035_v6  ;;  %333 = vmatpush1.bf16.msra.mxu1 %v3059_v18  ;;  %v3075_v33 = vld [vmem:[#allocation2] ss:$16 sps:$4 sm:$0xff]   ;;  %v3083_v34 = vld [vmem:[#allocation2 + $0x24] ss:$16 sps:$4 sm:$0xff]   ;;  %v3071_v35 = vld [vmem:[%s3957_s1 + $0xc8] ss:$16 sps:$4 sm:$0xff]  }
  0x32   :  { %293 = vmatprep.subr.bf16.mxu0 %v3036_v7  ;;  %334 = vmatprep.subr.bf16.mxu1 %v3060_v19  ;;  %v3072_v36 = vld [vmem:[%s3957_s1 + $0xec] ss:$16 sps:$4 sm:$0xff]   ;;  %v3081_v37 = vld [vmem:[#allocation2 + $0x20] ss:$16 sps:$4 sm:$0xff]   ;;  %v3089_v38 = vld [vmem:[#allocation2 + $0x44] ss:$16 sps:$4 sm:$0xff]  }
  0x33   :  { %v3074_v39 = vld [vmem:[%s3957_s1 + $0xe8] ss:$16 sps:$4 sm:$0xff]   ;;  %v3080_v40 = vld [vmem:[#allocation2 + $0xc] ss:$16 sps:$4 sm:$0xff]   ;;  %v3087_v41 = vld [vmem:[#allocation2 + $0x40] ss:$16 sps:$4 sm:$0xff]  }
  0x34   :  { %v3095_v42 = vld [vmem:[#allocation2 + $0x64] ss:$16 sps:$4 sm:$0xff]   ;;  %v3078_v43 = vld [vmem:[#allocation2 + $0x8] ss:$16 sps:$4 sm:$0xff]   ;;  %v3086_v44 = vld [vmem:[#allocation2 + $0x2c] ss:$16 sps:$4 sm:$0xff]  }
  0x35   :  { %294 = vmatpush1.bf16.msra.mxu0 %v3038_v8  ;;  %335 = vmatpush1.bf16.msra.mxu1 %v3062_v22  ;;  %v3093_v45 = vld [vmem:[#allocation2 + $0x60] ss:$16 sps:$4 sm:$0xff]   ;;  %v3101_v46 = vld [vmem:[#allocation2 + $0x84] ss:$16 sps:$4 sm:$0xff]   ;;  %v3084_v47 = vld [vmem:[#allocation2 + $0x28] ss:$16 sps:$4 sm:$0xff]  }
  0x36   :  { %295 = vmatprep.subr.bf16.mxu0 %v3039_v9  ;;  %336 = vmatprep.subr.bf16.mxu1 %v3063_v23  ;;  %v3092_v48 = vld [vmem:[#allocation2 + $0x4c] ss:$16 sps:$4 sm:$0xff]   ;;  %v3099_v49 = vld [vmem:[#allocation2 + $0x80] ss:$16 sps:$4 sm:$0xff]   ;;  %v3107_v50 = vld [vmem:[#allocation2 + $0xa4] ss:$16 sps:$4 sm:$0xff]  }
  0x37   :  { %v3090_v51 = vld [vmem:[#allocation2 + $0x48] ss:$16 sps:$4 sm:$0xff]   ;;  %v3098_v52 = vld [vmem:[#allocation2 + $0x6c] ss:$16 sps:$4 sm:$0xff]   ;;  %v3105_v53 = vld [vmem:[#allocation2 + $0xa0] ss:$16 sps:$4 sm:$0xff]  }
  0x38   :  { %v3113_v54 = vld [vmem:[#allocation2 + $0xc4] ss:$16 sps:$4 sm:$0xff]   ;;  %v3096_v55 = vld [vmem:[#allocation2 + $0x68] ss:$16 sps:$4 sm:$0xff]   ;;  %v3104_v56 = vld [vmem:[#allocation2 + $0x8c] ss:$16 sps:$4 sm:$0xff]  }
  0x39   :  { %296 = vmatpush1.bf16.msra.mxu0 %v3041_v13  ;;  %337 = vmatpush1.bf16.msra.mxu1 %v3065_v27  ;;  %v3111_v57 = vld [vmem:[#allocation2 + $0xc0] ss:$16 sps:$4 sm:$0xff]   ;;  %v3119_v58 = vld [vmem:[#allocation2 + $0xe4] ss:$16 sps:$4 sm:$0xff]   ;;  %v3102_v59 = vld [vmem:[#allocation2 + $0x88] ss:$16 sps:$4 sm:$0xff]  }
  0x3a   :  { %297 = vmatprep.subr.bf16.mxu0 %v3042_v16  ;;  %338 = vmatprep.subr.bf16.mxu1 %v3066_v28  ;;  %v3110_v60 = vld [vmem:[#allocation2 + $0xac] ss:$16 sps:$4 sm:$0xff]   ;;  %v3117_v61 = vld [vmem:[#allocation2 + $0xe0] ss:$16 sps:$4 sm:$0xff]   ;;  %v3125_v62 = vld [vmem:[#allocation2 + $0x104] ss:$16 sps:$4 sm:$0xff]  }
  0x3b   :  { %v3108_v63 = vld [vmem:[#allocation2 + $0xa8] ss:$16 sps:$4 sm:$0xff]   ;;  %v3116_v0 = vld [vmem:[#allocation2 + $0xcc] ss:$16 sps:$4 sm:$0xff]   ;;  %v3123_v1 = vld [vmem:[#allocation2 + $0x100] ss:$16 sps:$4 sm:$0xff]  }
  0x3c   :  { %v3131_v2 = vld [vmem:[#allocation2 + $0x124] ss:$16 sps:$4 sm:$0xff]   ;;  %v3114_v3 = vld [vmem:[#allocation2 + $0xc8] ss:$16 sps:$4 sm:$0xff]   ;;  %v3122_v4 = vld [vmem:[#allocation2 + $0xec] ss:$16 sps:$4 sm:$0xff]  }
  0x3d   :  { %298 = vmatpush1.bf16.msra.mxu0 %v3044_v17  ;;  %339 = vmatpush1.bf16.msra.mxu1 %v3068_v31  ;;  %v3129_v5 = vld [vmem:[#allocation2 + $0x120] ss:$16 sps:$4 sm:$0xff]   ;;  %v3137_v6 = vld [vmem:[#allocation2 + $0x144] ss:$16 sps:$4 sm:$0xff]   ;;  %v3120_v7 = vld [vmem:[#allocation2 + $0xe8] ss:$16 sps:$4 sm:$0xff]  }
  0x3e   :  { %299 = vmatprep.subr.bf16.mxu0 %v3045_v20  ;;  %340 = vmatprep.subr.bf16.mxu1 %v3069_v32  ;;  %v3128_v8 = vld [vmem:[#allocation2 + $0x10c] ss:$16 sps:$4 sm:$0xff]   ;;  %v3135_v9 = vld [vmem:[#allocation2 + $0x140] ss:$16 sps:$4 sm:$0xff]   ;;  %v3143_v10 = vld [vmem:[#allocation2 + $0x164] ss:$16 sps:$4 sm:$0xff]  }
  0x3f   :  { %v3126_v11 = vld [vmem:[#allocation2 + $0x108] ss:$16 sps:$4 sm:$0xff]   ;;  %v3134_v12 = vld [vmem:[#allocation2 + $0x12c] ss:$16 sps:$4 sm:$0xff]   ;;  %v3141_v13 = vld [vmem:[#allocation2 + $0x160] ss:$16 sps:$4 sm:$0xff]  }
  0x40   :  { %v3149_v14 = vld [vmem:[#allocation2 + $0x184] ss:$16 sps:$4 sm:$0xff]   ;;  %v3132_v15 = vld [vmem:[#allocation2 + $0x128] ss:$16 sps:$4 sm:$0xff]   ;;  %v3140_v16 = vld [vmem:[#allocation2 + $0x14c] ss:$16 sps:$4 sm:$0xff]  }
  0x41   :  { %300 = vmatpush1.bf16.msra.mxu0 %v3047_v21  ;;  %341 = vmatpush1.bf16.msra.mxu1 %v3071_v35  ;;  %v3147_v17 = vld [vmem:[#allocation2 + $0x180] ss:$16 sps:$4 sm:$0xff]   ;;  %v3155_v18 = vld [vmem:[#allocation2 + $0x1a4] ss:$16 sps:$4 sm:$0xff]   ;;  %v3138_v19 = vld [vmem:[#allocation2 + $0x148] ss:$16 sps:$4 sm:$0xff]  }
  0x42   :  { %301 = vmatprep.subr.bf16.mxu0 %v3048_v24  ;;  %342 = vmatprep.subr.bf16.mxu1 %v3072_v36  ;;  %v3146_v20 = vld [vmem:[#allocation2 + $0x16c] ss:$16 sps:$4 sm:$0xff]   ;;  %v3153_v21 = vld [vmem:[#allocation2 + $0x1a0] ss:$16 sps:$4 sm:$0xff]   ;;  %v3144_v22 = vld [vmem:[#allocation2 + $0x168] ss:$16 sps:$4 sm:$0xff]  }
  0x43   :  { %v3152_v23 = vld [vmem:[#allocation2 + $0x18c] ss:$16 sps:$4 sm:$0xff]   ;;  %v3150_v24 = vld [vmem:[#allocation2 + $0x188] ss:$16 sps:$4 sm:$0xff]   ;;  %v3161_v27 = vld [vmem:[#allocation2 + $0x1c4] ss:$16 sps:$4 sm:$0xff]  }
  0x44   :  { %v3156_v26 = vld [vmem:[#allocation2 + $0x1a8] ss:$16 sps:$4 sm:$0xff]   ;;  %v3164_v28 = vld [vmem:[#allocation2 + $0x1cc] ss:$16 sps:$4 sm:$0xff]   ;;  %v3167_v31 = vld [vmem:[#allocation2 + $0x1e4] ss:$16 sps:$4 sm:$0xff]  }
  0x45   :  { %302 = vmatpush1.bf16.msra.mxu0 %v3050_v25  ;;  %343 = vmatpush1.bf16.msra.mxu1 %v3074_v39  ;;  %v3158_v25 = vld [vmem:[#allocation2 + $0x1ac] ss:$16 sps:$4 sm:$0xff]   ;;  %v3173_v35 = vld [vmem:[#allocation2 + $0x204] ss:$16 sps:$4 sm:$0xff]  }
  0x46   :  { %1189 = vmatprep.subr.bf16.mxu0 %v3077_v29  ;;  %1271 = vmatprep.subr.bf16.mxu1 %v3080_v40  ;;  %v3159_v29 = vld [vmem:[#allocation2 + $0x1c0] ss:$16 sps:$4 sm:$0xff]   ;;  %v3170_v32 = vld [vmem:[#allocation2 + $0x1ec] ss:$16 sps:$4 sm:$0xff]  }
  0x47   :  { %v3176_v36 = vld [vmem:[#allocation2 + $0x20c] ss:$16 sps:$4 sm:$0xff]   ;;  %v3705_v40 = vld [vmem:[%s3961_s5] sm:$0xff] }
  0x48   :  { %320 = vmatmul.mubr.bf16.vlgmr.msra.gmra.mrb[0].mxu0 %v56_v30  ;;  %361 = vmatmul.mubr.bf16.vlgmr.msra.gmra.mrb[0].mxu1 %v56_v30  ;;  %v3162_v30 = vld [vmem:[#allocation2 + $0x1c8] ss:$16 sps:$4 sm:$0xff]  }
  0x49   :  { %1190 = vmatpush1.bf16.msra.mxu0 %v3075_v33  ;;  %1272 = vmatpush1.bf16.msra.mxu1 %v3078_v43  ;;  %v3165_v33 = vld [vmem:[#allocation2 + $0x1e0] ss:$16 sps:$4 sm:$0xff]  }
  0x4a   :  { %1191 = vmatprep.subr.bf16.mxu0 %v3083_v34  ;;  %1273 = vmatprep.subr.bf16.mxu1 %v3086_v44  ;;  %v3168_v34 = vld [vmem:[#allocation2 + $0x1e8] ss:$16 sps:$4 sm:$0xff]  }
  0x4d   :  { %1192 = vmatpush1.bf16.msra.mxu0 %v3081_v37  ;;  %1274 = vmatpush1.bf16.msra.mxu1 %v3084_v47  ;;  %v91_v37 = vlaneseq }
  0x4e   :  { %1193 = vmatprep.subr.bf16.mxu0 %v3089_v38  ;;  %1275 = vmatprep.subr.bf16.mxu1 %v3092_v48 }
  0x4f   :  { %v3697_v38 = vshrl.u32 %v91_v37, 7  ;;  %v3219_v37 = vld [vmem:[#allocation2 + $0x300] ss:$16 sps:$4 sm:$0xff]  }
  0x51   :  { %1194 = vmatpush1.bf16.msra.mxu0 %v3087_v41  ;;  %1276 = vmatpush1.bf16.msra.mxu1 %v3090_v51  ;;  %v3700_v39 = vsub.s32 0, %v3697_v38  ;;  %v97_v41 = vsub.s32 4, %v3697_v38  ;;  %v3716_v51 = vld [vmem:[%s3961_s5 + $0x8] sm:$0xff] }
  0x52   :  { %1195 = vmatprep.subr.bf16.mxu0 %v3095_v42  ;;  %1277 = vmatprep.subr.bf16.mxu1 %v3098_v52 }
  0x53   :  { %v94_v42 = vrot.slane %v3705_v40, %v3700_v39  ;;  %v98_v43 = vrot.slane %v3705_v40, %v97_v41 }
  0x55   :  { %1196 = vmatpush1.bf16.msra.mxu0 %v3093_v45  ;;  %1278 = vmatpush1.bf16.msra.mxu1 %v3096_v55  ;;  %v114_v44 = vrot.slane %v94_v42, %v3700_v39  ;;  %v118_v45 = vrot.slane %v98_v43, %v3700_v39  ;;  %v3227_v42 = vld [vmem:[#allocation2 + $0x324] ss:$16 sps:$4 sm:$0xff]   ;;  %v3230_v43 = vld [vmem:[#allocation2 + $0x32c] ss:$16 sps:$4 sm:$0xff]  }
  0x56   :  { %1197 = vmatprep.subr.bf16.mxu0 %v3101_v46  ;;  %1279 = vmatprep.subr.bf16.mxu1 %v3104_v56  ;;  %v106_v56 = vrot.slane %v3716_v51, %v97_v41  ;;  %v3222_v41 = vld [vmem:[#allocation2 + $0x308] ss:$16 sps:$4 sm:$0xff]  }
  0x59   :  { %1198 = vmatpush1.bf16.msra.mxu0 %v3099_v49  ;;  %1280 = vmatpush1.bf16.msra.mxu1 %v3102_v59  ;;  %v3171_v59 = vld [vmem:[#allocation2 + $0x200] ss:$16 sps:$4 sm:$0xff]  }
  0x5a   :  { %1199 = vmatprep.subr.bf16.mxu0 %v3107_v50  ;;  %1281 = vmatprep.subr.bf16.mxu1 %v3110_v60  ;;  %v3174_v60 = vld [vmem:[#allocation2 + $0x208] ss:$16 sps:$4 sm:$0xff]  }
  0x5d   :  { %1200 = vmatpush1.bf16.msra.mxu0 %v3105_v53  ;;  %1282 = vmatpush1.bf16.msra.mxu1 %v3108_v63  ;;  %v3182_v63 = vld [vmem:[#allocation2 + $0x22c] ss:$16 sps:$4 sm:$0xff]  }
  0x5e   :  { %1201 = vmatprep.subr.bf16.mxu0 %v3113_v54  ;;  %1283 = vmatprep.subr.bf16.mxu1 %v3116_v0  ;;  %v126_v0 = vrot.slane %v106_v56, %v3700_v39  ;;  %v3248_v56 = vld [vmem:[#allocation2 + $0x38c] ss:$16 sps:$4 sm:$0xff]  }
  0x61   :  { %1202 = vmatpush1.bf16.msra.mxu0 %v3111_v57  ;;  %1284 = vmatpush1.bf16.msra.mxu1 %v3114_v3 }
  0x62   :  { %1203 = vmatprep.subr.bf16.mxu0 %v3119_v58  ;;  %1285 = vmatprep.subr.bf16.mxu1 %v3122_v4  ;;  %v3185_v4 = vld [vmem:[#allocation2 + $0x244] ss:$16 sps:$4 sm:$0xff]  }
  0x65   :  { %1204 = vmatpush1.bf16.msra.mxu0 %v3117_v61  ;;  %1286 = vmatpush1.bf16.msra.mxu1 %v3120_v7 }
  0x66   :  { %1205 = vmatprep.subr.bf16.mxu0 %v3125_v62  ;;  %1287 = vmatprep.subr.bf16.mxu1 %v3128_v8  ;;  %v3179_v62 = vld [vmem:[#allocation2 + $0x224] ss:$16 sps:$4 sm:$0xff]  }
  0x69   :  { %1206 = vmatpush1.bf16.msra.mxu0 %v3123_v1  ;;  %1288 = vmatpush1.bf16.msra.mxu1 %v3126_v11  ;;  %v3177_v1 = vld [vmem:[#allocation2 + $0x220] ss:$16 sps:$4 sm:$0xff]   ;;  %v3186_v11 = vld [vmem:[#allocation2 + $0x248] ss:$16 sps:$4 sm:$0xff]  }
  0x6a   :  { %1207 = vmatprep.subr.bf16.mxu0 %v3131_v2  ;;  %1289 = vmatprep.subr.bf16.mxu1 %v3134_v12  ;;  %v3180_v2 = vld [vmem:[#allocation2 + $0x228] ss:$16 sps:$4 sm:$0xff]  }
  0x6d   :  { %1208 = vmatpush1.bf16.msra.mxu0 %v3129_v5  ;;  %1290 = vmatpush1.bf16.msra.mxu1 %v3132_v15  ;;  %v3188_v5 = vld [vmem:[#allocation2 + $0x24c] ss:$16 sps:$4 sm:$0xff]  }
  0x6e   :  { %1209 = vmatprep.subr.bf16.mxu0 %v3137_v6  ;;  %1291 = vmatprep.subr.bf16.mxu1 %v3140_v16 }
  0x71   :  { %1210 = vmatpush1.bf16.msra.mxu0 %v3135_v9  ;;  %1292 = vmatpush1.bf16.msra.mxu1 %v3138_v19  ;;  %v3183_v9 = vld [vmem:[#allocation2 + $0x240] ss:$16 sps:$4 sm:$0xff]   ;;  %v3197_v19 = vld [vmem:[#allocation2 + $0x284] ss:$16 sps:$4 sm:$0xff]  }
  0x72   :  { %1211 = vmatprep.subr.bf16.mxu0 %v3143_v10  ;;  %1293 = vmatprep.subr.bf16.mxu1 %v3146_v20  ;;  %v3200_v20 = vld [vmem:[#allocation2 + $0x28c] ss:$16 sps:$4 sm:$0xff]  }
  0x75   :  { %1212 = vmatpush1.bf16.msra.mxu0 %v3141_v13  ;;  %1294 = vmatpush1.bf16.msra.mxu1 %v3144_v22  ;;  %v3191_v13 = vld [vmem:[#allocation2 + $0x264] ss:$16 sps:$4 sm:$0xff]   ;;  %v3198_v22 = vld [vmem:[#allocation2 + $0x288] ss:$16 sps:$4 sm:$0xff]  }
  0x76   :  { %1213 = vmatprep.subr.bf16.mxu0 %v3149_v14  ;;  %1295 = vmatprep.subr.bf16.mxu1 %v3152_v23  ;;  %v3194_v14 = vld [vmem:[#allocation2 + $0x26c] ss:$16 sps:$4 sm:$0xff]   ;;  %v3203_v23 = vld [vmem:[#allocation2 + $0x2a4] ss:$16 sps:$4 sm:$0xff]  }
  0x79   :  { %1214 = vmatpush1.bf16.msra.mxu0 %v3147_v17  ;;  %1296 = vmatpush1.bf16.msra.mxu1 %v3150_v24  ;;  %v3189_v17 = vld [vmem:[#allocation2 + $0x260] ss:$16 sps:$4 sm:$0xff]   ;;  %v3206_v24 = vld [vmem:[#allocation2 + $0x2ac] ss:$16 sps:$4 sm:$0xff]  }
  0x7a   :  { %1215 = vmatprep.subr.bf16.mxu0 %v3155_v18  ;;  %1297 = vmatprep.subr.bf16.mxu1 %v3158_v25  ;;  %v3192_v18 = vld [vmem:[#allocation2 + $0x268] ss:$16 sps:$4 sm:$0xff]   ;;  %v3201_v25 = vld [vmem:[#allocation2 + $0x2a0] ss:$16 sps:$4 sm:$0xff]  }
  0x7d   :  { %1216 = vmatpush1.bf16.msra.mxu0 %v3153_v21  ;;  %1298 = vmatpush1.bf16.msra.mxu1 %v3156_v26  ;;  %v3195_v21 = vld [vmem:[#allocation2 + $0x280] ss:$16 sps:$4 sm:$0xff]   ;;  %v3204_v26 = vld [vmem:[#allocation2 + $0x2a8] ss:$16 sps:$4 sm:$0xff]  }
  0x7e   :  { %1217 = vmatprep.subr.bf16.mxu0 %v3161_v27  ;;  %1299 = vmatprep.subr.bf16.mxu1 %v3164_v28  ;;  %v3209_v27 = vld [vmem:[#allocation2 + $0x2c4] ss:$16 sps:$4 sm:$0xff]   ;;  %v3212_v28 = vld [vmem:[#allocation2 + $0x2cc] ss:$16 sps:$4 sm:$0xff]  }
  0x81   :  { %1218 = vmatpush1.bf16.msra.mxu0 %v3159_v29  ;;  %1300 = vmatpush1.bf16.msra.mxu1 %v3162_v30  ;;  %v3207_v29 = vld [vmem:[#allocation2 + $0x2c0] ss:$16 sps:$4 sm:$0xff]   ;;  %v3210_v30 = vld [vmem:[#allocation2 + $0x2c8] ss:$16 sps:$4 sm:$0xff]  }
  0x82   :  { %1219 = vmatprep.subr.bf16.mxu0 %v3167_v31  ;;  %1301 = vmatprep.subr.bf16.mxu1 %v3170_v32  ;;  %v3215_v31 = vld [vmem:[#allocation2 + $0x2e4] ss:$16 sps:$4 sm:$0xff]   ;;  %v3218_v32 = vld [vmem:[#allocation2 + $0x2ec] ss:$16 sps:$4 sm:$0xff]  }
  0x85   :  { %1220 = vmatpush1.bf16.msra.mxu0 %v3165_v33  ;;  %1302 = vmatpush1.bf16.msra.mxu1 %v3168_v34  ;;  %v3213_v33 = vld [vmem:[#allocation2 + $0x2e0] ss:$16 sps:$4 sm:$0xff]   ;;  %v3216_v34 = vld [vmem:[#allocation2 + $0x2e8] ss:$16 sps:$4 sm:$0xff]  }
  0x86   :  { %1230 = vmatprep.subr.bf16.mxu0 %v3173_v35  ;;  %1312 = vmatprep.subr.bf16.mxu1 %v3176_v36  ;;  %v3221_v35 = vld [vmem:[#allocation2 + $0x304] ss:$16 sps:$4 sm:$0xff]   ;;  %v3224_v36 = vld [vmem:[#allocation2 + $0x30c] ss:$16 sps:$4 sm:$0xff]  }
 0x11b   :  { %v321_v46 = vpop.f32.mrb[0].mxu0  ;;  %v3720_v3 = vpop.f32.mrb[0].mxu1 }
 0x11c   :  { %v322_v47 = vadd.f32 %v321_v46, %v114_v44  ;;  %v323_v48 = vpop.f32.mrb[1].mxu0  ;;  %v364_v6 = vpop.f32.mrb[1].mxu1  ;;  %v3225_v44 = vld [vmem:[#allocation2 + $0x320] ss:$16 sps:$4 sm:$0xff]   ;;  %v3233_v46 = vld [vmem:[#allocation2 + $0x344] ss:$16 sps:$4 sm:$0xff]  }
 0x11d   :  { %v324_v49 = vadd.f32 %v323_v48, %v118_v45  ;;  %v325_v50 = vpop.f32.mrb[2].mxu0  ;;  %v365_v7 = vadd.f32 %v364_v6, %v126_v0  ;;  %v366_v8 = vpop.f32.mrb[2].mxu1  ;;  %v3228_v45 = vld [vmem:[#allocation2 + $0x328] ss:$16 sps:$4 sm:$0xff]   ;;  %v3231_v48 = vld [vmem:[#allocation2 + $0x340] ss:$16 sps:$4 sm:$0xff]  }
 0x11e   :  { %vm369_vm0 = vcmp.ge.f32.partialorder %v322_v47, 0.0  ;;  %v373_v52 = vmul.f32 0.01, %v322_v47  ;;  %v326_v53 = vpop.f32.mrb[3].mxu0  ;;  %v367_v10 = vpop.f32.mrb[3].mxu1 }
 0x11f   :  { %vm370_vm1 = vcmp.ge.f32.partialorder %v324_v49, 0.0  ;;  %v374_v54 = vmul.f32 0.01, %v324_v49  ;;  %vm372_vm2 = vcmp.ge.f32.partialorder %v365_v7, 0.0  ;;  %v376_v12 = vmul.f32 0.01, %v365_v7 }
 0x120   :  { %v377_v55 = vsel %vm369_vm0, %v322_v47, %v373_v52  ;;  %v3236_v47 = vld [vmem:[#allocation2 + $0x34c] ss:$16 sps:$4 sm:$0xff]   ;;  %v3239_v50 = vld [vmem:[#allocation2 + $0x364] ss:$16 sps:$4 sm:$0xff]   ;;  %v3237_v53 = vld [vmem:[#allocation2 + $0x360] ss:$16 sps:$4 sm:$0xff]  }
 0x121   :  { %v378_v57 = vsel %vm370_vm1, %v324_v49, %v374_v54  ;;  %v381_v61 = vpack.c.bf16 %v377_v55, %v377_v55  ;;  %v380_v15 = vsel %vm372_vm2, %v365_v7, %v376_v12  ;;  %v3234_v49 = vld [vmem:[#allocation2 + $0x348] ss:$16 sps:$4 sm:$0xff]   ;;  %v3242_v52 = vld [vmem:[#allocation2 + $0x36c] ss:$16 sps:$4 sm:$0xff]   ;;  %v3245_v55 = vld [vmem:[#allocation2 + $0x384] ss:$16 sps:$4 sm:$0xff]  }
 0x122   :  { %v382_v58 = vpack.c.bf16 %v378_v57, %v378_v57  ;;  %v384_v16 = vpack.c.bf16 %v380_v15, %v380_v15  ;;  %v3240_v54 = vld [vmem:[#allocation2 + $0x368] ss:$16 sps:$4 sm:$0xff]   ;;  %v102_v57 = vrot.slane %v3716_v51, %v3700_v39  ;;  %v3263_v7 = vld [vmem:[#allocation2 + $0x3e4] ss:$16 sps:$4 sm:$0xff]   ;;  %v3266_v8 = vld [vmem:[#allocation2 + $0x3ec] ss:$16 sps:$4 sm:$0xff]  }
 0x123   :  { %v3252_v0 = vld [vmem:[#allocation2 + $0x3a8] ss:$16 sps:$4 sm:$0xff]   ;;  %v3272_v12 = vld [vmem:[#allocation5 + $0xc] ss:$16 sps:$4 sm:$0xff]  }
 0x124   :  { %1221 = vmatprep.mubr.bf16.mxu0 %v382_v58  ;;  %1303 = vmatprep.mubr.bf16.mxu1 %v382_v58  ;;  %v3243_v58 = vld [vmem:[#allocation2 + $0x380] ss:$16 sps:$4 sm:$0xff]   ;;  %v3258_v6 = vld [vmem:[#allocation2 + $0x3c8] ss:$16 sps:$4 sm:$0xff]  }
 0x125   :  { %1222 = vmatmul.mubr.bf16.vlgmr.msra.gmra.mrb[4].mxu0 %v381_v61  ;;  %1304 = vmatmul.mubr.bf16.vlgmr.msra.gmra.mrb[4].mxu1 %v381_v61  ;;  %v3254_v61 = vld [vmem:[#allocation2 + $0x3ac] ss:$16 sps:$4 sm:$0xff]   ;;  %v3264_v10 = vld [vmem:[#allocation2 + $0x3e8] ss:$16 sps:$4 sm:$0xff]  }
 0x126   :  { %1231 = vmatpush1.bf16.msra.mxu0 %v3171_v59  ;;  %1313 = vmatpush1.bf16.msra.mxu1 %v3174_v60  ;;  %v3246_v59 = vld [vmem:[#allocation2 + $0x388] ss:$16 sps:$4 sm:$0xff]   ;;  %v3251_v60 = vld [vmem:[#allocation2 + $0x3a4] ss:$16 sps:$4 sm:$0xff]  }
 0x127   :  { %1232 = vmatprep.subr.bf16.mxu0 %v3179_v62  ;;  %1314 = vmatprep.subr.bf16.mxu1 %v3182_v63  ;;  %v122_v62 = vrot.slane %v102_v57, %v3700_v39  ;;  %v3249_v63 = vld [vmem:[#allocation2 + $0x3a0] ss:$16 sps:$4 sm:$0xff]   ;;  %v3332_v57 = vld [vmem:[#allocation5 + $0x14c] ss:$16 sps:$4 sm:$0xff]  }
 0x128   :  { %1262 = vmatprep.mubr.bf16.mxu0 %v384_v16  ;;  %1344 = vmatprep.mubr.bf16.mxu1 %v384_v16  ;;  %v3261_v39 = vld [vmem:[#allocation2 + $0x3e0] ss:$16 sps:$4 sm:$0xff]   ;;  %v3275_v16 = vld [vmem:[#allocation5 + $0x24] ss:$16 sps:$4 sm:$0xff]  }
 0x12a   :  { %1233 = vmatpush1.bf16.msra.mxu0 %v3177_v1  ;;  %1315 = vmatpush1.bf16.msra.mxu1 %v3180_v2  ;;  %v3257_v1 = vld [vmem:[#allocation2 + $0x3c4] ss:$16 sps:$4 sm:$0xff]   ;;  %v3260_v2 = vld [vmem:[#allocation2 + $0x3cc] ss:$16 sps:$4 sm:$0xff]  }
 0x12b   :  { %1234 = vmatprep.subr.bf16.mxu0 %v3185_v4  ;;  %1316 = vmatprep.subr.bf16.mxu1 %v3188_v5  ;;  %v363_v4 = vadd.f32 %v3720_v3, %v122_v62  ;;  %v3255_v5 = vld [vmem:[#allocation2 + $0x3c0] ss:$16 sps:$4 sm:$0xff]  }
 0x12c   :  { %v3267_v3 = vld [vmem:[#allocation5] ss:$16 sps:$4 sm:$0xff]  }
 0x12d   :  { %vm371_vm3 = vcmp.ge.f32.partialorder %v363_v4, 0.0  ;;  %v3333_v62 = vld [vmem:[#allocation5 + $0x160] ss:$16 sps:$4 sm:$0xff]  }
 0x12e   :  { %1235 = vmatpush1.bf16.msra.mxu0 %v3183_v9  ;;  %1317 = vmatpush1.bf16.msra.mxu1 %v3186_v11  ;;  %v375_v9 = vmul.f32 0.01, %v363_v4  ;;  %v3269_v11 = vld [vmem:[#allocation5 + $0x4] ss:$16 sps:$4 sm:$0xff]  }
 0x12f   :  { %1236 = vmatprep.subr.bf16.mxu0 %v3191_v13  ;;  %1318 = vmatprep.subr.bf16.mxu1 %v3194_v14  ;;  %v3270_v14 = vld [vmem:[#allocation5 + $0x8] ss:$16 sps:$4 sm:$0xff]  }
 0x130   :  { %v379_v13 = vsel %vm371_vm3, %v363_v4, %v375_v9  ;;  %v3342_v4 = vld [vmem:[#allocation5 + $0x188] ss:$16 sps:$4 sm:$0xff]   ;;  %v3353_v9 = vld [vmem:[#allocation5 + $0x1c4] ss:$16 sps:$4 sm:$0xff]  }
 0x131   :  { %v383_v15 = vpack.c.bf16 %v379_v13, %v379_v13  ;;  %v3362_v13 = vld [vmem:[#allocation5 + $0x1ec] ss:$16 sps:$4 sm:$0xff]  }
 0x132   :  { %1237 = vmatpush1.bf16.msra.mxu0 %v3189_v17  ;;  %1319 = vmatpush1.bf16.msra.mxu1 %v3192_v18  ;;  %v3278_v17 = vld [vmem:[#allocation5 + $0x2c] ss:$16 sps:$4 sm:$0xff]   ;;  %v3273_v18 = vld [vmem:[#allocation5 + $0x20] ss:$16 sps:$4 sm:$0xff]  }
 0x133   :  { %1238 = vmatprep.subr.bf16.mxu0 %v3197_v19  ;;  %1320 = vmatprep.subr.bf16.mxu1 %v3200_v20  ;;  %v3276_v19 = vld [vmem:[#allocation5 + $0x28] ss:$16 sps:$4 sm:$0xff]   ;;  %v3281_v20 = vld [vmem:[#allocation5 + $0x44] ss:$16 sps:$4 sm:$0xff]  }
 0x136   :  { %1239 = vmatpush1.bf16.msra.mxu0 %v3195_v21  ;;  %1321 = vmatpush1.bf16.msra.mxu1 %v3198_v22  ;;  %v3284_v21 = vld [vmem:[#allocation5 + $0x4c] ss:$16 sps:$4 sm:$0xff]   ;;  %v3279_v22 = vld [vmem:[#allocation5 + $0x40] ss:$16 sps:$4 sm:$0xff]  }
 0x137   :  { %1240 = vmatprep.subr.bf16.mxu0 %v3203_v23  ;;  %1322 = vmatprep.subr.bf16.mxu1 %v3206_v24  ;;  %v3282_v23 = vld [vmem:[#allocation5 + $0x48] ss:$16 sps:$4 sm:$0xff]   ;;  %v3287_v24 = vld [vmem:[#allocation5 + $0x64] ss:$16 sps:$4 sm:$0xff]  }
 0x13a   :  { %1241 = vmatpush1.bf16.msra.mxu0 %v3201_v25  ;;  %1323 = vmatpush1.bf16.msra.mxu1 %v3204_v26  ;;  %v3290_v25 = vld [vmem:[#allocation5 + $0x6c] ss:$16 sps:$4 sm:$0xff]   ;;  %v3285_v26 = vld [vmem:[#allocation5 + $0x60] ss:$16 sps:$4 sm:$0xff]  }
 0x13b   :  { %1242 = vmatprep.subr.bf16.mxu0 %v3209_v27  ;;  %1324 = vmatprep.subr.bf16.mxu1 %v3212_v28  ;;  %v3288_v27 = vld [vmem:[#allocation5 + $0x68] ss:$16 sps:$4 sm:$0xff]   ;;  %v3293_v28 = vld [vmem:[#allocation5 + $0x84] ss:$16 sps:$4 sm:$0xff]  }
 0x13e   :  { %1243 = vmatpush1.bf16.msra.mxu0 %v3207_v29  ;;  %1325 = vmatpush1.bf16.msra.mxu1 %v3210_v30  ;;  %v3296_v29 = vld [vmem:[#allocation5 + $0x8c] ss:$16 sps:$4 sm:$0xff]   ;;  %v3291_v30 = vld [vmem:[#allocation5 + $0x80] ss:$16 sps:$4 sm:$0xff]  }
 0x13f   :  { %1244 = vmatprep.subr.bf16.mxu0 %v3215_v31  ;;  %1326 = vmatprep.subr.bf16.mxu1 %v3218_v32  ;;  %v3294_v31 = vld [vmem:[#allocation5 + $0x88] ss:$16 sps:$4 sm:$0xff]   ;;  %v3299_v32 = vld [vmem:[#allocation5 + $0xa4] ss:$16 sps:$4 sm:$0xff]  }
 0x142   :  { %1245 = vmatpush1.bf16.msra.mxu0 %v3213_v33  ;;  %1327 = vmatpush1.bf16.msra.mxu1 %v3216_v34  ;;  %v3302_v33 = vld [vmem:[#allocation5 + $0xac] ss:$16 sps:$4 sm:$0xff]   ;;  %v3297_v34 = vld [vmem:[#allocation5 + $0xa0] ss:$16 sps:$4 sm:$0xff]  }
 0x143   :  { %1246 = vmatprep.subr.bf16.mxu0 %v3221_v35  ;;  %1328 = vmatprep.subr.bf16.mxu1 %v3224_v36  ;;  %v3300_v35 = vld [vmem:[#allocation5 + $0xa8] ss:$16 sps:$4 sm:$0xff]   ;;  %v3305_v36 = vld [vmem:[#allocation5 + $0xc4] ss:$16 sps:$4 sm:$0xff]  }
 0x146   :  { %1247 = vmatpush1.bf16.msra.mxu0 %v3219_v37  ;;  %1329 = vmatpush1.bf16.msra.mxu1 %v3222_v41  ;;  %v3308_v37 = vld [vmem:[#allocation5 + $0xcc] ss:$16 sps:$4 sm:$0xff]   ;;  %v3303_v41 = vld [vmem:[#allocation5 + $0xc0] ss:$16 sps:$4 sm:$0xff]  }
 0x147   :  { %1248 = vmatprep.subr.bf16.mxu0 %v3227_v42  ;;  %1330 = vmatprep.subr.bf16.mxu1 %v3230_v43  ;;  %v3306_v42 = vld [vmem:[#allocation5 + $0xc8] ss:$16 sps:$4 sm:$0xff]   ;;  %v3311_v43 = vld [vmem:[#allocation5 + $0xe4] ss:$16 sps:$4 sm:$0xff]  }
 0x14a   :  { %1249 = vmatpush1.bf16.msra.mxu0 %v3225_v44  ;;  %1331 = vmatpush1.bf16.msra.mxu1 %v3228_v45  ;;  %v3314_v44 = vld [vmem:[#allocation5 + $0xec] ss:$16 sps:$4 sm:$0xff]   ;;  %v3309_v45 = vld [vmem:[#allocation5 + $0xe0] ss:$16 sps:$4 sm:$0xff]  }
 0x14b   :  { %1250 = vmatprep.subr.bf16.mxu0 %v3233_v46  ;;  %1332 = vmatprep.subr.bf16.mxu1 %v3236_v47  ;;  %v3312_v46 = vld [vmem:[#allocation5 + $0xe8] ss:$16 sps:$4 sm:$0xff]   ;;  %v3317_v47 = vld [vmem:[#allocation5 + $0x104] ss:$16 sps:$4 sm:$0xff]  }
 0x14e   :  { %1251 = vmatpush1.bf16.msra.mxu0 %v3231_v48  ;;  %1333 = vmatpush1.bf16.msra.mxu1 %v3234_v49  ;;  %v3320_v48 = vld [vmem:[#allocation5 + $0x10c] ss:$16 sps:$4 sm:$0xff]   ;;  %v3315_v49 = vld [vmem:[#allocation5 + $0x100] ss:$16 sps:$4 sm:$0xff]  }
 0x14f   :  { %1252 = vmatprep.subr.bf16.mxu0 %v3239_v50  ;;  %1334 = vmatprep.subr.bf16.mxu1 %v3242_v52  ;;  %v3318_v50 = vld [vmem:[#allocation5 + $0x108] ss:$16 sps:$4 sm:$0xff]   ;;  %v3323_v52 = vld [vmem:[#allocation5 + $0x124] ss:$16 sps:$4 sm:$0xff]  }
 0x152   :  { %1253 = vmatpush1.bf16.msra.mxu0 %v3237_v53  ;;  %1335 = vmatpush1.bf16.msra.mxu1 %v3240_v54  ;;  %v3326_v53 = vld [vmem:[#allocation5 + $0x12c] ss:$16 sps:$4 sm:$0xff]   ;;  %v3321_v54 = vld [vmem:[#allocation5 + $0x120] ss:$16 sps:$4 sm:$0xff]  }
 0x153   :  { %1254 = vmatprep.subr.bf16.mxu0 %v3245_v55  ;;  %1336 = vmatprep.subr.bf16.mxu1 %v3248_v56  ;;  %v3324_v55 = vld [vmem:[#allocation5 + $0x128] ss:$16 sps:$4 sm:$0xff]   ;;  %v3329_v56 = vld [vmem:[#allocation5 + $0x144] ss:$16 sps:$4 sm:$0xff]  }
 0x156   :  { %1255 = vmatpush1.bf16.msra.mxu0 %v3243_v58  ;;  %1337 = vmatpush1.bf16.msra.mxu1 %v3246_v59  ;;  %v3327_v58 = vld [vmem:[#allocation5 + $0x140] ss:$16 sps:$4 sm:$0xff]   ;;  %v3330_v59 = vld [vmem:[#allocation5 + $0x148] ss:$16 sps:$4 sm:$0xff]  }
 0x157   :  { %1256 = vmatprep.subr.bf16.mxu0 %v3251_v60  ;;  %1338 = vmatprep.subr.bf16.mxu1 %v3254_v61  ;;  %v3335_v60 = vld [vmem:[#allocation5 + $0x164] ss:$16 sps:$4 sm:$0xff]   ;;  %v3338_v61 = vld [vmem:[#allocation5 + $0x16c] ss:$16 sps:$4 sm:$0xff]  }
 0x15a   :  { %1257 = vmatpush1.bf16.msra.mxu0 %v3249_v63  ;;  %1339 = vmatpush1.bf16.msra.mxu1 %v3252_v0  ;;  %v3336_v63 = vld [vmem:[#allocation5 + $0x168] ss:$16 sps:$4 sm:$0xff]   ;;  %v3341_v0 = vld [vmem:[#allocation5 + $0x184] ss:$16 sps:$4 sm:$0xff]  }
 0x15b   :  { %1258 = vmatprep.subr.bf16.mxu0 %v3257_v1  ;;  %1340 = vmatprep.subr.bf16.mxu1 %v3260_v2  ;;  %v3344_v1 = vld [vmem:[#allocation5 + $0x18c] ss:$16 sps:$4 sm:$0xff]   ;;  %v3339_v2 = vld [vmem:[#allocation5 + $0x180] ss:$16 sps:$4 sm:$0xff]  }
 0x15e   :  { %1259 = vmatpush1.bf16.msra.mxu0 %v3255_v5  ;;  %1341 = vmatpush1.bf16.msra.mxu1 %v3258_v6  ;;  %v3347_v5 = vld [vmem:[#allocation5 + $0x1a4] ss:$16 sps:$4 sm:$0xff]   ;;  %v3350_v6 = vld [vmem:[#allocation5 + $0x1ac] ss:$16 sps:$4 sm:$0xff]  }
 0x15f   :  { %1260 = vmatprep.subr.bf16.mxu0 %v3263_v7  ;;  %1342 = vmatprep.subr.bf16.mxu1 %v3266_v8  ;;  %v3345_v7 = vld [vmem:[#allocation5 + $0x1a0] ss:$16 sps:$4 sm:$0xff]   ;;  %v3348_v8 = vld [vmem:[#allocation5 + $0x1a8] ss:$16 sps:$4 sm:$0xff]  }
 0x162   :  { %1261 = vmatpush1.bf16.msra.mxu0 %v3261_v39  ;;  %1343 = vmatpush1.bf16.msra.mxu1 %v3264_v10  ;;  %v3356_v39 = vld [vmem:[#allocation5 + $0x1cc] ss:$16 sps:$4 sm:$0xff]   ;;  %v3351_v10 = vld [vmem:[#allocation5 + $0x1c0] ss:$16 sps:$4 sm:$0xff]  }
 0x163   :  { %2173 = vmatprep.subr.bf16.mxu0 %v3269_v11  ;;  %2255 = vmatprep.subr.bf16.mxu1 %v3272_v12  ;;  %v3354_v11 = vld [vmem:[#allocation5 + $0x1c8] ss:$16 sps:$4 sm:$0xff]   ;;  %v3359_v12 = vld [vmem:[#allocation5 + $0x1e4] ss:$16 sps:$4 sm:$0xff]  }
 0x165   :  { %1263 = vmatmul.mubr.bf16.vlgmr.msra.gmra.mrb[4].mxu0 %v383_v15  ;;  %1345 = vmatmul.mubr.bf16.vlgmr.msra.gmra.mrb[4].mxu1 %v383_v15  ;;  %v3365_v15 = vld [vmem:[#allocation5 + $0x204] ss:$16 sps:$4 sm:$0xff]  }
 0x166   :  { %2174 = vmatpush1.bf16.msra.mxu0 %v3267_v3  ;;  %2256 = vmatpush1.bf16.msra.mxu1 %v3270_v14  ;;  %v3357_v3 = vld [vmem:[#allocation5 + $0x1e0] ss:$16 sps:$4 sm:$0xff]   ;;  %v3360_v14 = vld [vmem:[#allocation5 + $0x1e8] ss:$16 sps:$4 sm:$0xff]  }
 0x167   :  { %2175 = vmatprep.subr.bf16.mxu0 %v3275_v16  ;;  %2257 = vmatprep.subr.bf16.mxu1 %v3278_v17  ;;  %v3368_v16 = vld [vmem:[#allocation5 + $0x20c] ss:$16 sps:$4 sm:$0xff]   ;;  %v3727_v17 = vsub.s32 1, %v3697_v38 }
 0x16a   :  { %2176 = vmatpush1.bf16.msra.mxu0 %v3273_v18  ;;  %2258 = vmatpush1.bf16.msra.mxu1 %v3276_v19  ;;  %v519_v18 = vsub.s32 5, %v3697_v38  ;;  %v516_v19 = vrot.slane %v3705_v40, %v3727_v17 }
 0x16b   :  { %2177 = vmatprep.subr.bf16.mxu0 %v3281_v20  ;;  %2259 = vmatprep.subr.bf16.mxu1 %v3284_v21 }
 0x16c   :  { %v520_v20 = vrot.slane %v3705_v40, %v519_v18  ;;  %v528_v21 = vrot.slane %v3716_v51, %v519_v18  ;;  %v3419_v18 = vld [vmem:[#allocation5 + $0x324] ss:$16 sps:$4 sm:$0xff]  }
 0x16e   :  { %2178 = vmatpush1.bf16.msra.mxu0 %v3279_v22  ;;  %2260 = vmatpush1.bf16.msra.mxu1 %v3282_v23  ;;  %v536_v22 = vrot.slane %v516_v19, %v3727_v17  ;;  %v540_v23 = vrot.slane %v520_v20, %v3727_v17  ;;  %v3422_v19 = vld [vmem:[#allocation5 + $0x32c] ss:$16 sps:$4 sm:$0xff]   ;;  %v3417_v20 = vld [vmem:[#allocation5 + $0x320] ss:$16 sps:$4 sm:$0xff]  }
 0x16f   :  { %2179 = vmatprep.subr.bf16.mxu0 %v3287_v24  ;;  %2261 = vmatprep.subr.bf16.mxu1 %v3290_v25  ;;  %v548_v24 = vrot.slane %v528_v21, %v3727_v17  ;;  %v3420_v21 = vld [vmem:[#allocation5 + $0x328] ss:$16 sps:$4 sm:$0xff]  }
 0x172   :  { %2180 = vmatpush1.bf16.msra.mxu0 %v3285_v26  ;;  %2262 = vmatpush1.bf16.msra.mxu1 %v3288_v27 }
 0x173   :  { %2181 = vmatprep.subr.bf16.mxu0 %v3293_v28  ;;  %2263 = vmatprep.subr.bf16.mxu1 %v3296_v29 }
 0x176   :  { %2182 = vmatpush1.bf16.msra.mxu0 %v3291_v30  ;;  %2264 = vmatpush1.bf16.msra.mxu1 %v3294_v31 }
 0x177   :  { %2183 = vmatprep.subr.bf16.mxu0 %v3299_v32  ;;  %2265 = vmatprep.subr.bf16.mxu1 %v3302_v33 }
 0x17a   :  { %2184 = vmatpush1.bf16.msra.mxu0 %v3297_v34  ;;  %2266 = vmatpush1.bf16.msra.mxu1 %v3300_v35 }
 0x17b   :  { %2185 = vmatprep.subr.bf16.mxu0 %v3305_v36  ;;  %2267 = vmatprep.subr.bf16.mxu1 %v3308_v37 }
 0x17e   :  { %2186 = vmatpush1.bf16.msra.mxu0 %v3303_v41  ;;  %2268 = vmatpush1.bf16.msra.mxu1 %v3306_v42 }
 0x17f   :  { %2187 = vmatprep.subr.bf16.mxu0 %v3311_v43  ;;  %2269 = vmatprep.subr.bf16.mxu1 %v3314_v44  ;;  %v3363_v44 = vld [vmem:[#allocation5 + $0x200] ss:$16 sps:$4 sm:$0xff]  }
 0x182   :  { %2188 = vmatpush1.bf16.msra.mxu0 %v3309_v45  ;;  %2270 = vmatpush1.bf16.msra.mxu1 %v3312_v46  ;;  %v3366_v45 = vld [vmem:[#allocation5 + $0x208] ss:$16 sps:$4 sm:$0xff]  }
 0x183   :  { %2189 = vmatprep.subr.bf16.mxu0 %v3317_v47  ;;  %2271 = vmatprep.subr.bf16.mxu1 %v3320_v48  ;;  %v3371_v48 = vld [vmem:[#allocation5 + $0x224] ss:$16 sps:$4 sm:$0xff]  }
 0x186   :  { %2190 = vmatpush1.bf16.msra.mxu0 %v3315_v49  ;;  %2272 = vmatpush1.bf16.msra.mxu1 %v3318_v50  ;;  %v3374_v49 = vld [vmem:[#allocation5 + $0x22c] ss:$16 sps:$4 sm:$0xff]  }
 0x187   :  { %2191 = vmatprep.subr.bf16.mxu0 %v3323_v52  ;;  %2273 = vmatprep.subr.bf16.mxu1 %v3326_v53  ;;  %v3369_v52 = vld [vmem:[#allocation5 + $0x220] ss:$16 sps:$4 sm:$0xff]   ;;  %v3372_v53 = vld [vmem:[#allocation5 + $0x228] ss:$16 sps:$4 sm:$0xff]  }
 0x18a   :  { %2192 = vmatpush1.bf16.msra.mxu0 %v3321_v54  ;;  %2274 = vmatpush1.bf16.msra.mxu1 %v3324_v55  ;;  %v3377_v54 = vld [vmem:[#allocation5 + $0x244] ss:$16 sps:$4 sm:$0xff]   ;;  %v3380_v55 = vld [vmem:[#allocation5 + $0x24c] ss:$16 sps:$4 sm:$0xff]  }
 0x18b   :  { %2193 = vmatprep.subr.bf16.mxu0 %v3329_v56  ;;  %2275 = vmatprep.subr.bf16.mxu1 %v3332_v57  ;;  %v3375_v56 = vld [vmem:[#allocation5 + $0x240] ss:$16 sps:$4 sm:$0xff]   ;;  %v3378_v57 = vld [vmem:[#allocation5 + $0x248] ss:$16 sps:$4 sm:$0xff]  }
 0x18e   :  { %2194 = vmatpush1.bf16.msra.mxu0 %v3327_v58  ;;  %2276 = vmatpush1.bf16.msra.mxu1 %v3330_v59  ;;  %v3383_v58 = vld [vmem:[#allocation5 + $0x264] ss:$16 sps:$4 sm:$0xff]   ;;  %v3386_v59 = vld [vmem:[#allocation5 + $0x26c] ss:$16 sps:$4 sm:$0xff]  }
 0x18f   :  { %2195 = vmatprep.subr.bf16.mxu0 %v3335_v60  ;;  %2277 = vmatprep.subr.bf16.mxu1 %v3338_v61  ;;  %v3381_v60 = vld [vmem:[#allocation5 + $0x260] ss:$16 sps:$4 sm:$0xff]   ;;  %v3384_v61 = vld [vmem:[#allocation5 + $0x268] ss:$16 sps:$4 sm:$0xff]  }
 0x192   :  { %2196 = vmatpush1.bf16.msra.mxu0 %v3333_v62  ;;  %2278 = vmatpush1.bf16.msra.mxu1 %v3336_v63  ;;  %v3389_v62 = vld [vmem:[#allocation5 + $0x284] ss:$16 sps:$4 sm:$0xff]   ;;  %v3392_v63 = vld [vmem:[#allocation5 + $0x28c] ss:$16 sps:$4 sm:$0xff]  }
 0x193   :  { %2197 = vmatprep.subr.bf16.mxu0 %v3341_v0  ;;  %2279 = vmatprep.subr.bf16.mxu1 %v3344_v1  ;;  %v3387_v0 = vld [vmem:[#allocation5 + $0x280] ss:$16 sps:$4 sm:$0xff]   ;;  %v3390_v1 = vld [vmem:[#allocation5 + $0x288] ss:$16 sps:$4 sm:$0xff]  }
 0x196   :  { %2198 = vmatpush1.bf16.msra.mxu0 %v3339_v2  ;;  %2280 = vmatpush1.bf16.msra.mxu1 %v3342_v4  ;;  %v3395_v2 = vld [vmem:[#allocation5 + $0x2a4] ss:$16 sps:$4 sm:$0xff]   ;;  %v3398_v4 = vld [vmem:[#allocation5 + $0x2ac] ss:$16 sps:$4 sm:$0xff]  }
 0x197   :  { %2199 = vmatprep.subr.bf16.mxu0 %v3347_v5  ;;  %2281 = vmatprep.subr.bf16.mxu1 %v3350_v6  ;;  %v3393_v5 = vld [vmem:[#allocation5 + $0x2a0] ss:$16 sps:$4 sm:$0xff]   ;;  %v3396_v6 = vld [vmem:[#allocation5 + $0x2a8] ss:$16 sps:$4 sm:$0xff]  }
 0x19a   :  { %2200 = vmatpush1.bf16.msra.mxu0 %v3345_v7  ;;  %2282 = vmatpush1.bf16.msra.mxu1 %v3348_v8  ;;  %v3401_v7 = vld [vmem:[#allocation5 + $0x2c4] ss:$16 sps:$4 sm:$0xff]   ;;  %v3404_v8 = vld [vmem:[#allocation5 + $0x2cc] ss:$16 sps:$4 sm:$0xff]  }
 0x19b   :  { %2201 = vmatprep.subr.bf16.mxu0 %v3353_v9  ;;  %2283 = vmatprep.subr.bf16.mxu1 %v3356_v39  ;;  %v3399_v9 = vld [vmem:[#allocation5 + $0x2c0] ss:$16 sps:$4 sm:$0xff]   ;;  %v3402_v39 = vld [vmem:[#allocation5 + $0x2c8] ss:$16 sps:$4 sm:$0xff]  }
 0x19e   :  { %2202 = vmatpush1.bf16.msra.mxu0 %v3351_v10  ;;  %2284 = vmatpush1.bf16.msra.mxu1 %v3354_v11  ;;  %v3407_v10 = vld [vmem:[#allocation5 + $0x2e4] ss:$16 sps:$4 sm:$0xff]   ;;  %v3410_v11 = vld [vmem:[#allocation5 + $0x2ec] ss:$16 sps:$4 sm:$0xff]  }
 0x19f   :  { %2203 = vmatprep.subr.bf16.mxu0 %v3359_v12  ;;  %2285 = vmatprep.subr.bf16.mxu1 %v3362_v13  ;;  %v3405_v12 = vld [vmem:[#allocation5 + $0x2e0] ss:$16 sps:$4 sm:$0xff]   ;;  %v3408_v13 = vld [vmem:[#allocation5 + $0x2e8] ss:$16 sps:$4 sm:$0xff]  }
 0x1a2   :  { %2204 = vmatpush1.bf16.msra.mxu0 %v3357_v3  ;;  %2286 = vmatpush1.bf16.msra.mxu1 %v3360_v14  ;;  %v3413_v3 = vld [vmem:[#allocation5 + $0x304] ss:$16 sps:$4 sm:$0xff]   ;;  %v3416_v14 = vld [vmem:[#allocation5 + $0x30c] ss:$16 sps:$4 sm:$0xff]  }
 0x1a3   :  { %2214 = vmatprep.subr.bf16.mxu0 %v3365_v15  ;;  %2296 = vmatprep.subr.bf16.mxu1 %v3368_v16  ;;  %v3411_v15 = vld [vmem:[#allocation5 + $0x300] ss:$16 sps:$4 sm:$0xff]   ;;  %v3414_v16 = vld [vmem:[#allocation5 + $0x308] ss:$16 sps:$4 sm:$0xff]  }
 0x238   :  { %v1264_v25 = vpop.f32.mrb[4].mxu0  ;;  %v3737_v26 = vpop.f32.mrb[4].mxu1 }
 0x239   :  { %v2997_v27 = vadd.f32 %v1264_v25, %v536_v22  ;;  %v1266_v28 = vpop.f32.mrb[5].mxu0  ;;  %v1348_v29 = vpop.f32.mrb[5].mxu1  ;;  %v3425_v22 = vld [vmem:[#allocation5 + $0x344] ss:$16 sps:$4 sm:$0xff]   ;;  %v3426_v25 = vld [vmem:[#allocation5 + $0x348] ss:$16 sps:$4 sm:$0xff]  }
 0x23a   :  { %v2998_v30 = vadd.f32 %v1266_v28, %v540_v23  ;;  %v3000_v31 = vadd.f32 %v1348_v29, %v548_v24  ;;  %v1268_v32 = vpop.f32.mrb[6].mxu0  ;;  %v1350_v33 = vpop.f32.mrb[6].mxu1  ;;  %v3428_v23 = vld [vmem:[#allocation5 + $0x34c] ss:$16 sps:$4 sm:$0xff]   ;;  %v3423_v24 = vld [vmem:[#allocation5 + $0x340] ss:$16 sps:$4 sm:$0xff]  }
 0x23b   :  { %vm1353_vm4 = vcmp.ge.f32.partialorder %v2997_v27, 0.0  ;;  %v1357_v40 = vmul.f32 0.01, %v2997_v27  ;;  %v1269_v37 = vpop.f32.mrb[7].mxu0  ;;  %v1351_v41 = vpop.f32.mrb[7].mxu1  ;;  %v524_v33 = vrot.slane %v3716_v51, %v3727_v17 }
 0x23c   :  { %vm1354_vm5 = vcmp.ge.f32.partialorder %v2998_v30, 0.0  ;;  %v1358_v34 = vmul.f32 0.01, %v2998_v30  ;;  %vm1356_vm6 = vcmp.ge.f32.partialorder %v3000_v31, 0.0  ;;  %v1360_v35 = vmul.f32 0.01, %v3000_v31 }
 0x23d   :  { %v1361_v36 = vsel %vm1353_vm4, %v2997_v27, %v1357_v40  ;;  %v3431_v27 = vld [vmem:[#allocation5 + $0x364] ss:$16 sps:$4 sm:$0xff]   ;;  %v3434_v28 = vld [vmem:[#allocation5 + $0x36c] ss:$16 sps:$4 sm:$0xff]   ;;  %v3429_v29 = vld [vmem:[#allocation5 + $0x360] ss:$16 sps:$4 sm:$0xff]   ;;  %v544_v37 = vrot.slane %v524_v33, %v3727_v17 }
 0x23e   :  { %v1362_v42 = vsel %vm1354_vm5, %v2998_v30, %v1358_v34  ;;  %v1364_v46 = vsel %vm1356_vm6, %v3000_v31, %v1360_v35  ;;  %v1365_v47 = vpack.c.bf16 %v1361_v36, %v1361_v36  ;;  %v3432_v30 = vld [vmem:[#allocation5 + $0x368] ss:$16 sps:$4 sm:$0xff]   ;;  %v3437_v31 = vld [vmem:[#allocation5 + $0x384] ss:$16 sps:$4 sm:$0xff]   ;;  %v3440_v32 = vld [vmem:[#allocation5 + $0x38c] ss:$16 sps:$4 sm:$0xff]  }
 0x23f   :  { %v1366_v43 = vpack.c.bf16 %v1362_v42, %v1362_v42  ;;  %v1368_v50 = vpack.c.bf16 %v1364_v46, %v1364_v46  ;;  %v3435_v40 = vld [vmem:[#allocation5 + $0x380] ss:$16 sps:$4 sm:$0xff]   ;;  %v3438_v34 = vld [vmem:[#allocation5 + $0x388] ss:$16 sps:$4 sm:$0xff]   ;;  %v3443_v35 = vld [vmem:[#allocation5 + $0x3a4] ss:$16 sps:$4 sm:$0xff]   ;;  %v2999_v51 = vadd.f32 %v3737_v26, %v544_v37 }
 0x240   :  { %v3446_v36 = vld [vmem:[#allocation5 + $0x3ac] ss:$16 sps:$4 sm:$0xff]   ;;  %v3441_v41 = vld [vmem:[#allocation5 + $0x3a0] ss:$16 sps:$4 sm:$0xff]   ;;  %v3444_v42 = vld [vmem:[#allocation5 + $0x3a8] ss:$16 sps:$4 sm:$0xff]  }
 0x241   :  { %2205 = vmatprep.mubr.bf16.mxu0 %v1366_v43  ;;  %2287 = vmatprep.mubr.bf16.mxu1 %v1366_v43  ;;  %v3449_v43 = vld [vmem:[#allocation5 + $0x3c4] ss:$16 sps:$4 sm:$0xff]   ;;  %v3450_v46 = vld [vmem:[#allocation5 + $0x3c8] ss:$16 sps:$4 sm:$0xff]   ;;  %vm1355_vm7 = vcmp.ge.f32.partialorder %v2999_v51, 0.0 }
 0x242   :  { %2206 = vmatmul.mubr.bf16.vlgmr.msra.gmra.mrb[8].mxu0 %v1365_v47  ;;  %2288 = vmatmul.mubr.bf16.vlgmr.msra.gmra.mrb[8].mxu1 %v1365_v47  ;;  %v3455_v47 = vld [vmem:[#allocation5 + $0x3e4] ss:$16 sps:$4 sm:$0xff]  }
 0x243   :  { %2215 = vmatpush1.bf16.msra.mxu0 %v3363_v44  ;;  %2297 = vmatpush1.bf16.msra.mxu1 %v3366_v45  ;;  %v3452_v44 = vld [vmem:[#allocation5 + $0x3cc] ss:$16 sps:$4 sm:$0xff]   ;;  %v3447_v45 = vld [vmem:[#allocation5 + $0x3c0] ss:$16 sps:$4 sm:$0xff]  }
 0x244   :  { %2246 = vmatprep.mubr.bf16.mxu0 %v1368_v50  ;;  %2328 = vmatprep.mubr.bf16.mxu1 %v1368_v50  ;;  %v2365_v17 = vld [vmem:[%s3960_s4 + $0x80] sm:$0xff]  ;;  %v2366_v50 = vld [vmem:[%s3960_s4 + $0x88] sm:$0xff] }
 0x245   :  { %2216 = vmatprep.subr.bf16.mxu0 %v3371_v48  ;;  %2298 = vmatprep.subr.bf16.mxu1 %v3374_v49  ;;  %v3458_v48 = vld [vmem:[#allocation5 + $0x3ec] ss:$16 sps:$4 sm:$0xff]   ;;  %v1359_v49 = vmul.f32 0.01, %v2999_v51  ;;  %v2397_v26 = vld [vmem:[%s3960_s4 + $0x180] sm:$0xff] }
 0x246   :  { %v2405_v37 = vld [vmem:[%s3960_s4 + $0x1c0] sm:$0xff] }
 0x247   :  { %2217 = vmatpush1.bf16.msra.mxu0 %v3369_v52  ;;  %2299 = vmatpush1.bf16.msra.mxu1 %v3372_v53  ;;  %v2398_v52 = vld [vmem:[%s3960_s4 + $0x188] sm:$0xff]  ;;  %v3453_v53 = vld [vmem:[#allocation5 + $0x3e0] ss:$16 sps:$4 sm:$0xff]  }
 0x248   :  { %2218 = vmatprep.subr.bf16.mxu0 %v3377_v54  ;;  %2300 = vmatprep.subr.bf16.mxu1 %v3380_v55  ;;  %v3456_v54 = vld [vmem:[#allocation5 + $0x3e8] ss:$16 sps:$4 sm:$0xff]   ;;  %v2349_v55 = vld [vmem:[%s3960_s4] sm:$0xff] }
 0x24b   :  { %2219 = vmatpush1.bf16.msra.mxu0 %v3375_v56  ;;  %2301 = vmatpush1.bf16.msra.mxu1 %v3378_v57  ;;  %v2350_v56 = vld [vmem:[%s3960_s4 + $0x8] sm:$0xff]  ;;  %v2933_v57 = vpack.c.bf16 %v2366_v50, %v2365_v17  ;;  %v2375_v17 = vld [vmem:[%s3960_s4 + $0xd0] sm:$0xff] }
 0x24c   :  { %2220 = vmatprep.subr.bf16.mxu0 %v3383_v58  ;;  %2302 = vmatprep.subr.bf16.mxu1 %v3386_v59  ;;  %v2965_v58 = vpack.c.bf16 %v2398_v52, %v2397_v26  ;;  %v2381_v59 = vld [vmem:[%s3960_s4 + $0x100] sm:$0xff]  ;;  %v2407_v50 = vld [vmem:[%s3960_s4 + $0x1d0] sm:$0xff]  ;;  %v2408_v26 = vld [vmem:[%s3960_s4 + $0x1d8] sm:$0xff] }
 0x24f   :  { %2221 = vmatpush1.bf16.msra.mxu0 %v3381_v60  ;;  %2303 = vmatpush1.bf16.msra.mxu1 %v3384_v61  ;;  %v2382_v60 = vld [vmem:[%s3960_s4 + $0x108] sm:$0xff]  ;;  %v2367_v61 = vld [vmem:[%s3960_s4 + $0x90] sm:$0xff] }
 0x250   :  { %2222 = vmatprep.subr.bf16.mxu0 %v3389_v62  ;;  %2304 = vmatprep.subr.bf16.mxu1 %v3392_v63  ;;  %v1363_v62 = vsel %vm1355_vm7, %v2999_v51, %v1359_v49  ;;  %v2368_v63 = vld [vmem:[%s3960_s4 + $0x98] sm:$0xff]  ;;  %v2358_v51 = vld [vmem:[%s3960_s4 + $0x48] sm:$0xff] }
 0x251   :  { %v2376_v49 = vld [vmem:[%s3960_s4 + $0xd8] sm:$0xff] }
 0x253   :  { %2223 = vmatpush1.bf16.msra.mxu0 %v3387_v0  ;;  %2305 = vmatpush1.bf16.msra.mxu1 %v3390_v1  ;;  %v2399_v0 = vld [vmem:[%s3960_s4 + $0x190] sm:$0xff]  ;;  %v2400_v1 = vld [vmem:[%s3960_s4 + $0x198] sm:$0xff] }
 0x254   :  { %2224 = vmatprep.subr.bf16.mxu0 %v3395_v2  ;;  %2306 = vmatprep.subr.bf16.mxu1 %v3398_v4  ;;  %v2935_v2 = vpack.c.bf16 %v2350_v56, %v2349_v55  ;;  %v2967_v4 = vpack.c.bf16 %v2382_v60, %v2381_v59  ;;  %v2953_v55 = vpack.c.bf16 %v2376_v49, %v2375_v17  ;;  %v2392_v59 = vld [vmem:[%s3960_s4 + $0x158] sm:$0xff] }
 0x255   :  { %v2985_v56 = vpack.c.bf16 %v2408_v26, %v2407_v50 }
 0x257   :  { %2225 = vmatpush1.bf16.msra.mxu0 %v3393_v5  ;;  %2307 = vmatpush1.bf16.msra.mxu1 %v3396_v6  ;;  %v2351_v5 = vld [vmem:[%s3960_s4 + $0x10] sm:$0xff]  ;;  %v2352_v6 = vld [vmem:[%s3960_s4 + $0x18] sm:$0xff] }
 0x258   :  { %2226 = vmatprep.subr.bf16.mxu0 %v3401_v7  ;;  %2308 = vmatprep.subr.bf16.mxu1 %v3404_v8  ;;  %v1367_v7 = vpack.c.bf16 %v1363_v62, %v1363_v62  ;;  %v2937_v8 = vpack.c.bf16 %v2368_v63, %v2367_v61  ;;  %v2377_v62 = vld [vmem:[%s3960_s4 + $0xe0] sm:$0xff]  ;;  %v2378_v63 = vld [vmem:[%s3960_s4 + $0xe8] sm:$0xff] }
 0x25b   :  { %2227 = vmatpush1.bf16.msra.mxu0 %v3399_v9  ;;  %2309 = vmatpush1.bf16.msra.mxu1 %v3402_v39  ;;  %v2969_v9 = vpack.c.bf16 %v2400_v1, %v2399_v0  ;;  %v2383_v39 = vld [vmem:[%s3960_s4 + $0x110] sm:$0xff]  ;;  %v2409_v0 = vld [vmem:[%s3960_s4 + $0x1e0] sm:$0xff]  ;;  %v2957_v1 = vpack.c.bf16 %v2378_v63, %v2377_v62 }
 0x25c   :  { %2228 = vmatprep.subr.bf16.mxu0 %v3407_v10  ;;  %2310 = vmatprep.subr.bf16.mxu1 %v3410_v11  ;;  %v2384_v10 = vld [vmem:[%s3960_s4 + $0x118] sm:$0xff]  ;;  %v2369_v11 = vld [vmem:[%s3960_s4 + $0xa0] sm:$0xff] }
 0x25f   :  { %2229 = vmatpush1.bf16.msra.mxu0 %v3405_v12  ;;  %2311 = vmatpush1.bf16.msra.mxu1 %v3408_v13  ;;  %v2370_v12 = vld [vmem:[%s3960_s4 + $0xa8] sm:$0xff]  ;;  %v2401_v13 = vld [vmem:[%s3960_s4 + $0x1a0] sm:$0xff] }
 0x260   :  { %2230 = vmatprep.subr.bf16.mxu0 %v3413_v3  ;;  %2312 = vmatprep.subr.bf16.mxu1 %v3416_v14  ;;  %v2402_v3 = vld [vmem:[%s3960_s4 + $0x1a8] sm:$0xff]  ;;  %v2939_v14 = vpack.c.bf16 %v2352_v6, %v2351_v5 }
 0x261   :  { %v2362_v5 = vld [vmem:[%s3960_s4 + $0x68] sm:$0xff] }
 0x263   :  { %2231 = vmatpush1.bf16.msra.mxu0 %v3411_v15  ;;  %2313 = vmatpush1.bf16.msra.mxu1 %v3414_v16  ;;  %v2971_v15 = vpack.c.bf16 %v2384_v10, %v2383_v39  ;;  %v2353_v16 = vld [vmem:[%s3960_s4 + $0x20] sm:$0xff]  ;;  %v2379_v10 = vld [vmem:[%s3960_s4 + $0xf0] sm:$0xff] }
 0x264   :  { %2232 = vmatprep.subr.bf16.mxu0 %v3419_v18  ;;  %2314 = vmatprep.subr.bf16.mxu1 %v3422_v19  ;;  %v2354_v18 = vld [vmem:[%s3960_s4 + $0x28] sm:$0xff]  ;;  %v2941_v19 = vpack.c.bf16 %v2370_v12, %v2369_v11  ;;  %v2380_v11 = vld [vmem:[%s3960_s4 + $0xf8] sm:$0xff]  ;;  %v2411_v12 = vld [vmem:[%s3960_s4 + $0x1f0] sm:$0xff] }
 0x267   :  { %2233 = vmatpush1.bf16.msra.mxu0 %v3417_v20  ;;  %2315 = vmatpush1.bf16.msra.mxu1 %v3420_v21  ;;  %v2973_v20 = vpack.c.bf16 %v2402_v3, %v2401_v13  ;;  %v2385_v21 = vld [vmem:[%s3960_s4 + $0x120] sm:$0xff]  ;;  %v2961_v13 = vpack.c.bf16 %v2380_v11, %v2379_v10  ;;  %v2412_v3 = vld [vmem:[%s3960_s4 + $0x1f8] sm:$0xff] }
 0x268   :  { %2234 = vmatprep.subr.bf16.mxu0 %v3425_v22  ;;  %2316 = vmatprep.subr.bf16.mxu1 %v3428_v23  ;;  %v2386_v22 = vld [vmem:[%s3960_s4 + $0x128] sm:$0xff]  ;;  %v2371_v23 = vld [vmem:[%s3960_s4 + $0xb0] sm:$0xff] }
 0x26b   :  { %2235 = vmatpush1.bf16.msra.mxu0 %v3423_v24  ;;  %2317 = vmatpush1.bf16.msra.mxu1 %v3426_v25  ;;  %v2372_v24 = vld [vmem:[%s3960_s4 + $0xb8] sm:$0xff]  ;;  %v2403_v25 = vld [vmem:[%s3960_s4 + $0x1b0] sm:$0xff] }
 0x26c   :  { %2236 = vmatprep.subr.bf16.mxu0 %v3431_v27  ;;  %2318 = vmatprep.subr.bf16.mxu1 %v3434_v28  ;;  %v2404_v27 = vld [vmem:[%s3960_s4 + $0x1b8] sm:$0xff]  ;;  %v2943_v28 = vpack.c.bf16 %v2354_v18, %v2353_v16  ;;  %v2993_v16 = vpack.c.bf16 %v2412_v3, %v2411_v12 }
 0x26d   :  { %v2977_v33 = vpack.c.bf16 %v2404_v27, %v2403_v25  ;;  %v3460_v27 = vld [vmem:[%s3961_s5 + $0x8] sm:$0xff] }
 0x26f   :  { %2237 = vmatpush1.bf16.msra.mxu0 %v3429_v29  ;;  %2319 = vmatpush1.bf16.msra.mxu1 %v3432_v30  ;;  %v2975_v29 = vpack.c.bf16 %v2386_v22, %v2385_v21  ;;  %v2355_v30 = vld [vmem:[%s3960_s4 + $0x30] sm:$0xff]  ;;  %v1499_v22 = vsub.s32 2, %v3697_v38 }
 0x270   :  { %2238 = vmatprep.subr.bf16.mxu0 %v3437_v31  ;;  %2320 = vmatprep.subr.bf16.mxu1 %v3440_v32  ;;  %v2356_v31 = vld [vmem:[%s3960_s4 + $0x38] sm:$0xff]  ;;  %v2945_v32 = vpack.c.bf16 %v2372_v24, %v2371_v23  ;;  %v1503_v23 = vsub.s32 6, %v3697_v38  ;;  %v3459_v24 = vld [vmem:[%s3961_s5] sm:$0xff] }
 0x271   :  { %v1500_v25 = vrot.slane %v3459_v24, %v1499_v22 }
 0x273   :  { %2239 = vmatpush1.bf16.msra.mxu0 %v3435_v40  ;;  %2321 = vmatpush1.bf16.msra.mxu1 %v3438_v34  ;;  %v2387_v40 = vld [vmem:[%s3960_s4 + $0x130] sm:$0xff]  ;;  %v2388_v34 = vld [vmem:[%s3960_s4 + $0x138] sm:$0xff] }
 0x274   :  { %2240 = vmatprep.subr.bf16.mxu0 %v3443_v35  ;;  %2322 = vmatprep.subr.bf16.mxu1 %v3446_v36  ;;  %v2373_v35 = vld [vmem:[%s3960_s4 + $0xc0] sm:$0xff]  ;;  %v2374_v36 = vld [vmem:[%s3960_s4 + $0xc8] sm:$0xff] }
 0x277   :  { %2241 = vmatpush1.bf16.msra.mxu0 %v3441_v41  ;;  %2323 = vmatpush1.bf16.msra.mxu1 %v3444_v42  ;;  %v2406_v41 = vld [vmem:[%s3960_s4 + $0x1c8] sm:$0xff]  ;;  %v2947_v42 = vpack.c.bf16 %v2356_v31, %v2355_v30  ;;  %v1512_v30 = vrot.slane %v3460_v27, %v1503_v23  ;;  %v1520_v31 = vrot.slane %v1500_v25, %v1499_v22 }
 0x278   :  { %2242 = vmatprep.subr.bf16.mxu0 %v3449_v43  ;;  %2324 = vmatprep.subr.bf16.mxu1 %v3452_v44  ;;  %v2979_v43 = vpack.c.bf16 %v2388_v34, %v2387_v40  ;;  %v2357_v44 = vld [vmem:[%s3960_s4 + $0x40] sm:$0xff] }
 0x279   :  { %v2951_v52 = vpack.c.bf16 %v2358_v51, %v2357_v44  ;;  %v1532_v40 = vrot.slane %v1512_v30, %v1499_v22 }
 0x27b   :  { %2243 = vmatpush1.bf16.msra.mxu0 %v3447_v45  ;;  %2325 = vmatpush1.bf16.msra.mxu1 %v3450_v46  ;;  %v2949_v45 = vpack.c.bf16 %v2374_v36, %v2373_v35  ;;  %v2981_v46 = vpack.c.bf16 %v2406_v41, %v2405_v37 }
 0x27c   :  { %2244 = vmatprep.subr.bf16.mxu0 %v3455_v47  ;;  %2326 = vmatprep.subr.bf16.mxu1 %v3458_v48  ;;  %v2389_v47 = vld [vmem:[%s3960_s4 + $0x140] sm:$0xff]  ;;  %v2390_v48 = vld [vmem:[%s3960_s4 + $0x148] sm:$0xff] }
 0x27f   :  { %2245 = vmatpush1.bf16.msra.mxu0 %v3453_v53  ;;  %2327 = vmatpush1.bf16.msra.mxu1 %v3456_v54  ;;  %v2983_v53 = vpack.c.bf16 %v2390_v48, %v2389_v47  ;;  %v2359_v54 = vld [vmem:[%s3960_s4 + $0x50] sm:$0xff] }
 0x280   :  { %2934 = vmatprep.subr.bf16.mxu0 %v2933_v57  ;;  %2966 = vmatprep.subr.bf16.mxu1 %v2965_v58  ;;  %v2360_v57 = vld [vmem:[%s3960_s4 + $0x58] sm:$0xff]  ;;  %v2391_v58 = vld [vmem:[%s3960_s4 + $0x150] sm:$0xff] }
 0x281   :  { %v2955_v60 = vpack.c.bf16 %v2360_v57, %v2359_v54  ;;  %v2987_v61 = vpack.c.bf16 %v2392_v59, %v2391_v58 }
 0x282   :  { %2247 = vmatmul.mubr.bf16.vlgmr.msra.gmra.mrb[8].mxu0 %v1367_v7  ;;  %2329 = vmatmul.mubr.bf16.vlgmr.msra.gmra.mrb[8].mxu1 %v1367_v7 }
 0x283   :  { %2936 = vmatpush3.bf16.msra.mxu0 %v2935_v2  ;;  %2968 = vmatpush3.bf16.msra.mxu1 %v2967_v4  ;;  %v2410_v2 = vld [vmem:[%s3960_s4 + $0x1e8] sm:$0xff]  ;;  %v2361_v4 = vld [vmem:[%s3960_s4 + $0x60] sm:$0xff] }
 0x284   :  { %2938 = vmatprep.subr.bf16.mxu0 %v2937_v8  ;;  %2970 = vmatprep.subr.bf16.mxu1 %v2969_v9  ;;  %v2989_v6 = vpack.c.bf16 %v2410_v2, %v2409_v0  ;;  %v2959_v7 = vpack.c.bf16 %v2362_v5, %v2361_v4  ;;  %v2393_v8 = vld [vmem:[%s3960_s4 + $0x160] sm:$0xff]  ;;  %v2394_v9 = vld [vmem:[%s3960_s4 + $0x168] sm:$0xff] }
 0x285   :  { %v2991_v39 = vpack.c.bf16 %v2394_v9, %v2393_v8 }
 0x287   :  { %2940 = vmatpush3.bf16.msra.mxu0 %v2939_v14  ;;  %2972 = vmatpush3.bf16.msra.mxu1 %v2971_v15  ;;  %v2363_v14 = vld [vmem:[%s3960_s4 + $0x70] sm:$0xff]  ;;  %v2364_v15 = vld [vmem:[%s3960_s4 + $0x78] sm:$0xff] }
 0x288   :  { %2942 = vmatprep.subr.bf16.mxu0 %v2941_v19  ;;  %2974 = vmatprep.subr.bf16.mxu1 %v2973_v20  ;;  %v2963_v18 = vpack.c.bf16 %v2364_v15, %v2363_v14  ;;  %v2395_v19 = vld [vmem:[%s3960_s4 + $0x170] sm:$0xff]  ;;  %v2396_v20 = vld [vmem:[%s3960_s4 + $0x178] sm:$0xff]  ;;  %s3538_s4 = smov [#allocation7]  }
 0x289   :  { %v2995_v21 = vpack.c.bf16 %v2396_v20, %v2395_v19  ;;  %s2565_s5 = sshll.u32 %s3538_s4, 4  ;;  %s2566_s5 = int_to_ptr.vmem [resolvable:$true] %s2565_s5 }
 0x28a   :  { %s3505_s30 = scalar_lea.vmem %s2566_s5, 128  ;;  %p3510_p3 = scmp.lt.s32.totalorder %s2566_s5, %s2566_s5 }
 0x28b   :  { %2944 = vmatpush3.bf16.msra.mxu0 %v2943_v28  ;;  %2976 = vmatpush3.bf16.msra.mxu1 %v2975_v29  ;;  %v1508_v28 = vrot.slane %v3460_v27, %v1499_v22  ;;  %v1504_v29 = vrot.slane %v3459_v24, %v1503_v23  ;;  %p3506_p2 = scmp.ne.s32.totalorder %s2566_s5, %s3505_s30  ;;  %p3511_p4 = scmp.lt.s32.totalorder %s3505_s30, %s3505_s30 }
 0x28c   :  { %2946 = vmatprep.subr.bf16.mxu0 %v2945_v32  ;;  %2978 = vmatprep.subr.bf16.mxu1 %v2977_v33 }
 0x28d   :  { %v1528_v32 = vrot.slane %v1508_v28, %v1499_v22  ;;  %v1524_v33 = vrot.slane %v1504_v29, %v1499_v22  ;;  %p3512_p5 = por %p3511_p4, %p3510_p3 }
 0x28f   :  { %2948 = vmatpush3.bf16.msra.mxu0 %v2947_v42  ;;  %2980 = vmatpush3.bf16.msra.mxu1 %v2979_v43  ;;  %p3513_p6 = pnand %p3512_p5, %p3506_p2 }
 0x290   :  { %2950 = vmatprep.subr.bf16.mxu0 %v2949_v45  ;;  %2982 = vmatprep.subr.bf16.mxu1 %v2981_v46 }
 0x293   :  { %2952 = vmatpush3.bf16.msra.mxu0 %v2951_v52  ;;  %2984 = vmatpush3.bf16.msra.mxu1 %v2983_v53 }
 0x294   :  { %2954 = vmatprep.subr.bf16.mxu0 %v2953_v55  ;;  %2986 = vmatprep.subr.bf16.mxu1 %v2985_v56  ;;  %v2415_v55 = vsub.s32 3, %v3697_v38 }
 0x296   :  { %v2416_v58 = vrot.slane %v3459_v24, %v2415_v55 }
 0x297   :  { %2956 = vmatpush3.bf16.msra.mxu0 %v2955_v60  ;;  %2988 = vmatpush3.bf16.msra.mxu1 %v2987_v61 }
 0x298   :  { %2958 = vmatprep.subr.bf16.mxu0 %v2957_v1  ;;  %2990 = vmatprep.subr.bf16.mxu1 %v2989_v6 }
 0x29b   :  { %2960 = vmatpush3.bf16.msra.mxu0 %v2959_v7  ;;  %2992 = vmatpush3.bf16.msra.mxu1 %v2991_v39 }
 0x29c   :  { %2962 = vmatprep.subr.bf16.mxu0 %v2961_v13  ;;  %2994 = vmatprep.subr.bf16.mxu1 %v2993_v16 }
 0x29f   :  { %2964 = vmatpush3.bf16.msra.mxu0 %v2963_v18  ;;  %2996 = vmatpush3.bf16.msra.mxu1 %v2995_v21 }
 0x355   :  { %v2248_v34 = vpop.f32.mrb[8].mxu0  ;;  %v2330_v35 = vpop.f32.mrb[8].mxu1 }
 0x356   :  { %v3001_v36 = vadd.f32 %v2248_v34, %v1520_v31  ;;  %v3003_v37 = vadd.f32 %v2330_v35, %v1528_v32  ;;  %v2250_v41 = vpop.f32.mrb[9].mxu0  ;;  %v2332_v42 = vpop.f32.mrb[9].mxu1 }
 0x357   :  { %v3002_v43 = vadd.f32 %v2250_v41, %v1524_v33  ;;  %v3004_v44 = vadd.f32 %v2332_v42, %v1532_v40  ;;  %v2252_v51 = vpop.f32.mrb[10].mxu0  ;;  %v2334_v45 = vpop.f32.mrb[10].mxu1 }
 0x358   :  { %vm2337_vm8 = vcmp.ge.f32.partialorder %v3001_v36, 0.0  ;;  %v2341_v46 = vmul.f32 0.01, %v3001_v36  ;;  %vm2339_vm9 = vcmp.ge.f32.partialorder %v3003_v37, 0.0  ;;  %v2343_v47 = vmul.f32 0.01, %v3003_v37 }
 0x359   :  { %v2342_v48 = vmul.f32 0.01, %v3002_v43  ;;  %v2344_v17 = vmul.f32 0.01, %v3004_v44  ;;  %v2253_v49 = vpop.f32.mrb[11].mxu0  ;;  %v2335_v50 = vpop.f32.mrb[11].mxu1 }
 0x35a   :  { %vm2338_vm10 = vcmp.ge.f32.partialorder %v3002_v43, 0.0  ;;  %vm2340_vm11 = vcmp.ge.f32.partialorder %v3004_v44, 0.0  ;;  %v2345_v53 = vsel %vm2337_vm8, %v3001_v36, %v2341_v46  ;;  %v2347_v54 = vsel %vm2339_vm9, %v3003_v37, %v2343_v47 }
 0x35b   :  { %v2346_v26 = vsel %vm2338_vm10, %v3002_v43, %v2342_v48  ;;  %v2348_v52 = vsel %vm2340_vm11, %v3004_v44, %v2344_v17 }
 0x35c   :  { %2481 = vmatprep.mubr.f32.mxu0 %v2346_v26  ;;  %2551 = vmatprep.mubr.f32.mxu1 %v2348_v52 }
 0x35d   :  { %2482 = vmatmul.mubr.f32.vlgmr.msra.gmra.mrb[12].mxu0 %v2345_v53  ;;  %2552 = vmatmul.mubr.f32.vlgmr.msra.gmra.mrb[12].mxu1 %v2347_v54 }
 0x430   :  { %v2895_v56 = vpop.f32.mrb[12].mxu0  ;;  %v2930_v57 = vpop.f32.mrb[12].mxu1 }
 0x431   :  { %v2896_v59 = vpop.f32.mrb[13].mxu0  ;;  %v2931_v60 = vpop.f32.mrb[13].mxu1 }
 0x432   :  { %v2897_v61 = vadd.f32 %v2896_v59, %v2895_v56  ;;  %v2932_v62 = vadd.f32 %v2931_v60, %v2930_v57 }
 0x434   :  { %v2484_v63 = vadd.f32 %v2897_v61, %v2416_v58 }
 0x436   :  { %v2554_v0 = vadd.f32 %v2932_v62, %v2484_v63 }
 0x438   :  { %2558 = vst.msk [vmem:[#allocation7] sm:$0xff] %vm2557_vm12, %v2554_v0 }
 0x439   :  { %3516 = shalt.err (!%p3513_p6)
}
 0x43a   :  { %s3517_s9 = scalar_lea.hbm %s3962_s6, 128 }
 0x43b   :  { %p3518_p7 = scmp.ne.s32.totalorder %s3962_s6, %s3517_s9  ;;  %p3521_p8 = scmp.lt.u32.totalorder %s3517_s9, %s3962_s6 }
 0x43d   :  { %p3523_p9 = pnand %p3521_p8, %p3518_p7 }
 0x43f   :  { %3526 = shalt.err (!%p3523_p9)
}
 0x440   :  { %2568 = dma.vmem_to_hbm [thread:$0]  %s2566_s5, 128, %s3962_s6, [#allocation4]  }
 0x441   :  { %3531 = dma.done.wait [#allocation4], 128  }
 0x442   :  { %3532 = vsyncadd [#allocation4], 4294967168 }
 0x443   :  { %2572 = vsyncpa [#allocation3], 1 }
 0x444   :  { %2573 = vsyncpa [#allocation6], 1 }
 0x445   :  { %2574 = vsyncpa [#allocation4], 1 }

// kernel: tpu_custom_call.1
= control target key start
LH: loop header
LB: loop body
LE: loop exit
PB: predicated region body
PF: predicated region fallthrough
CT: control target
= control target key end

     0   :  { %11 = vsyncpa [#allocation3], 0  ;;  %s3956_s0 = inlined_call_operand.vmem [shape: f32[8,128], index: 0, kind: input, shape index: {}]   ;;  %s3957_s1 = inlined_call_operand.vmem [shape: bf16[128,512], index: 1, kind: input, shape index: {}]   ;;  %s3958_s2 = inlined_call_operand.hbm [shape: bf16[512,512], index: 2, kind: input, shape index: {}]   ;;  %s3959_s3 = inlined_call_operand.hbm [shape: bf16[512,512], index: 3, kind: input, shape index: {}]   ;;  %s3960_s4 = inlined_call_operand.vmem [shape: f32[512,16], index: 4, kind: input, shape index: {}]   ;;  %s3961_s5 = inlined_call_operand.vmem [shape: f32[4,512], index: 5, kind: input, shape index: {}]   ;;  %s3962_s6 = inlined_call_operand.hbm [shape: f32[8,16], index: 6, kind: output, shape index: {}]  }
   0x1   :  { %12 = vsyncpa [#allocation6], 0 }
   0x2   :  { %13 = vsyncpa [#allocation4], 0  ;;  %s3533_s21 = smov [#allocation2]   ;;  %s3461_s25 = scalar_lea.hbm %s3958_s2, 16384 }
   0x3   :  { %s23_s22 = sshll.u32 %s3533_s21, 4  ;;  %p3462_p0 = scmp.ne.s32.totalorder %s3958_s2, %s3461_s25  ;;  %s24_s22 = int_to_ptr.vmem [resolvable:$true] %s23_s22 }
   0x4   :  { %p3465_p1 = scmp.lt.u32.totalorder %s3461_s25, %s3958_s2 }
   0x6   :  { %p3467_p2 = pnand %p3465_p1, %p3462_p0 }
   0x8   :  { %3470 = shalt.err (!%p3467_p2)
}
   0x9   :  { %s3471_s30 = scalar_lea.vmem %s24_s22, 16384  ;;  %p3476_p4 = scmp.lt.s32.totalorder %s24_s22, %s24_s22 }
   0xa   :  { %p3472_p3 = scmp.ne.s32.totalorder %s24_s22, %s3471_s30  ;;  %p3477_p5 = scmp.lt.s32.totalorder %s3471_s30, %s3471_s30 }
   0xc   :  { %p3478_p6 = por %p3477_p5, %p3476_p4 }
   0xe   :  { %p3479_p7 = pnand %p3478_p6, %p3472_p3 }
  0x10   :  { %3482 = shalt.err (!%p3479_p7)
}
  0x11   :  { %s3534_s7 = smov 256   ;;  %s3535_s8 = smov 16  }
  0x12   :  { %29 = dma.hbm_to_vmem [thread:$0]  %s3958_s2, 16384, %s24_s22, [#allocation3], %s3534_s7, %s3534_s7, %s3535_s8  }
  0x13   :  { %s3536_s11 = smov [#allocation5]   ;;  %s3483_s15 = scalar_lea.hbm %s3959_s3, 16384 }
  0x14   :  { %s35_s12 = sshll.u32 %s3536_s11, 4  ;;  %p3484_p8 = scmp.ne.s32.totalorder %s3959_s3, %s3483_s15  ;;  %s36_s12 = int_to_ptr.vmem [resolvable:$true] %s35_s12 }
  0x15   :  { %p3487_p9 = scmp.lt.u32.totalorder %s3483_s15, %s3959_s3 }
  0x17   :  { %p3489_p10 = pnand %p3487_p9, %p3484_p8 }
  0x19   :  { %3492 = shalt.err (!%p3489_p10)
}
  0x1a   :  { %s3493_s20 = scalar_lea.vmem %s36_s12, 16384  ;;  %p3498_p12 = scmp.lt.s32.totalorder %s36_s12, %s36_s12 }
  0x1b   :  { %p3494_p11 = scmp.ne.s32.totalorder %s36_s12, %s3493_s20  ;;  %p3499_p13 = scmp.lt.s32.totalorder %s3493_s20, %s3493_s20 }
  0x1d   :  { %p3500_p0 = por %p3499_p13, %p3498_p12 }
  0x1f   :  { %p3501_p1 = pnand %p3500_p0, %p3494_p11 }
  0x21   :  { %3504 = shalt.err (!%p3501_p1)
}
  0x22   :  { %41 = dma.hbm_to_vmem [thread:$0]  %s3959_s3, 16384, %s36_s12, [#allocation6], %s3534_s7, %s3534_s7, %s3535_s8  }
  0x23   :  { %3527 = dma.done.wait [#allocation3], 16384  }
  0x24   :  { %3528 = vsyncadd [#allocation3], 4294950912 }
  0x25   :  { %3529 = dma.done.wait [#allocation6], 16384  }
  0x26   :  { %3530 = vsyncadd [#allocation6], 4294950912  ;;  %v3537_v0 = vmov 0   ;;  %v3027_v1 = vld [vmem:[%s3957_s1 + $0x4] ss:$16 sps:$4 sm:$0xff]   ;;  %vm2557_vm12 = vcmask 130048  }
  0x27   :  { %319 = vmatprep.mubr.bf16.mxu0 %v3537_v0  ;;  %360 = vmatprep.mubr.bf16.mxu1 %v3537_v0  ;;  %v3029_v2 = vld [vmem:[%s3957_s1] ss:$16 sps:$4 sm:$0xff]   ;;  %v3030_v3 = vld [vmem:[%s3957_s1 + $0x24] ss:$16 sps:$4 sm:$0xff]   ;;  %v3051_v10 = vld [vmem:[%s3957_s1 + $0xc] ss:$16 sps:$4 sm:$0xff]  }
  0x28   :  { %287 = vmatprep.subr.bf16.mxu0 %v3027_v1  ;;  %v3032_v4 = vld [vmem:[%s3957_s1 + $0x20] ss:$16 sps:$4 sm:$0xff]   ;;  %v3033_v5 = vld [vmem:[%s3957_s1 + $0x44] ss:$16 sps:$4 sm:$0xff]   ;;  %v3053_v11 = vld [vmem:[%s3957_s1 + $0x8] ss:$16 sps:$4 sm:$0xff]   ;;  %328 = vmatprep.subr.bf16.mxu1 %v3051_v10 }
  0x29   :  { %288 = vmatpush1.bf16.msra.mxu0 %v3029_v2  ;;  %v3035_v6 = vld [vmem:[%s3957_s1 + $0x40] ss:$16 sps:$4 sm:$0xff]   ;;  %v3036_v7 = vld [vmem:[%s3957_s1 + $0x64] ss:$16 sps:$4 sm:$0xff]   ;;  %v3054_v12 = vld [vmem:[%s3957_s1 + $0x2c] ss:$16 sps:$4 sm:$0xff]   ;;  %329 = vmatpush1.bf16.msra.mxu1 %v3053_v11 }
  0x2a   :  { %289 = vmatprep.subr.bf16.mxu0 %v3030_v3  ;;  %v3038_v8 = vld [vmem:[%s3957_s1 + $0x60] ss:$16 sps:$4 sm:$0xff]   ;;  %v3039_v9 = vld [vmem:[%s3957_s1 + $0x84] ss:$16 sps:$4 sm:$0xff]   ;;  %v3056_v14 = vld [vmem:[%s3957_s1 + $0x28] ss:$16 sps:$4 sm:$0xff]   ;;  %330 = vmatprep.subr.bf16.mxu1 %v3054_v12 }
  0x2b   :  { %v3041_v13 = vld [vmem:[%s3957_s1 + $0x80] ss:$16 sps:$4 sm:$0xff]   ;;  %v3057_v15 = vld [vmem:[%s3957_s1 + $0x4c] ss:$16 sps:$4 sm:$0xff]   ;;  %v3042_v16 = vld [vmem:[%s3957_s1 + $0xa4] ss:$16 sps:$4 sm:$0xff]  }
  0x2c   :  { %v3044_v17 = vld [vmem:[%s3957_s1 + $0xa0] ss:$16 sps:$4 sm:$0xff]   ;;  %v3059_v18 = vld [vmem:[%s3957_s1 + $0x48] ss:$16 sps:$4 sm:$0xff]   ;;  %v3060_v19 = vld [vmem:[%s3957_s1 + $0x6c] ss:$16 sps:$4 sm:$0xff]  }
  0x2d   :  { %290 = vmatpush1.bf16.msra.mxu0 %v3032_v4  ;;  %331 = vmatpush1.bf16.msra.mxu1 %v3056_v14  ;;  %v3045_v20 = vld [vmem:[%s3957_s1 + $0xc4] ss:$16 sps:$4 sm:$0xff]   ;;  %v3047_v21 = vld [vmem:[%s3957_s1 + $0xc0] ss:$16 sps:$4 sm:$0xff]   ;;  %v3062_v22 = vld [vmem:[%s3957_s1 + $0x68] ss:$16 sps:$4 sm:$0xff]  }
  0x2e   :  { %291 = vmatprep.subr.bf16.mxu0 %v3033_v5  ;;  %332 = vmatprep.subr.bf16.mxu1 %v3057_v15  ;;  %v3063_v23 = vld [vmem:[%s3957_s1 + $0x8c] ss:$16 sps:$4 sm:$0xff]   ;;  %v3048_v24 = vld [vmem:[%s3957_s1 + $0xe4] ss:$16 sps:$4 sm:$0xff]   ;;  %v3050_v25 = vld [vmem:[%s3957_s1 + $0xe0] ss:$16 sps:$4 sm:$0xff]  }
  0x2f   :  { %v55_v26 = vld [vmem:[%s3956_s0] sm:$0xff]  ;;  %v3065_v27 = vld [vmem:[%s3957_s1 + $0x88] ss:$16 sps:$4 sm:$0xff]   ;;  %v3066_v28 = vld [vmem:[%s3957_s1 + $0xac] ss:$16 sps:$4 sm:$0xff]  }
  0x30   :  { %v3077_v29 = vld [vmem:[#allocation2 + $0x4] ss:$16 sps:$4 sm:$0xff]   ;;  %v56_v30 = vpack.c.bf16 %v55_v26, %v55_v26  ;;  %v3068_v31 = vld [vmem:[%s3957_s1 + $0xa8] ss:$16 sps:$4 sm:$0xff]   ;;  %v3069_v32 = vld [vmem:[%s3957_s1 + $0xcc] ss:$16 sps:$4 sm:$0xff]  }
  0x31   :  { %292 = vmatpush1.bf16.msra.mxu0 %v3035_v6  ;;  %333 = vmatpush1.bf16.msra.mxu1 %v3059_v18  ;;  %v3075_v33 = vld [vmem:[#allocation2] ss:$16 sps:$4 sm:$0xff]   ;;  %v3083_v34 = vld [vmem:[#allocation2 + $0x24] ss:$16 sps:$4 sm:$0xff]   ;;  %v3071_v35 = vld [vmem:[%s3957_s1 + $0xc8] ss:$16 sps:$4 sm:$0xff]  }
  0x32   :  { %293 = vmatprep.subr.bf16.mxu0 %v3036_v7  ;;  %334 = vmatprep.subr.bf16.mxu1 %v3060_v19  ;;  %v3072_v36 = vld [vmem:[%s3957_s1 + $0xec] ss:$16 sps:$4 sm:$0xff]   ;;  %v3081_v37 = vld [vmem:[#allocation2 + $0x20] ss:$16 sps:$4 sm:$0xff]   ;;  %v3089_v38 = vld [vmem:[#allocation2 + $0x44] ss:$16 sps:$4 sm:$0xff]  }
  0x33   :  { %v3074_v39 = vld [vmem:[%s3957_s1 + $0xe8] ss:$16 sps:$4 sm:$0xff]   ;;  %v3080_v40 = vld [vmem:[#allocation2 + $0xc] ss:$16 sps:$4 sm:$0xff]   ;;  %v3087_v41 = vld [vmem:[#allocation2 + $0x40] ss:$16 sps:$4 sm:$0xff]  }
  0x34   :  { %v3095_v42 = vld [vmem:[#allocation2 + $0x64] ss:$16 sps:$4 sm:$0xff]   ;;  %v3078_v43 = vld [vmem:[#allocation2 + $0x8] ss:$16 sps:$4 sm:$0xff]   ;;  %v3086_v44 = vld [vmem:[#allocation2 + $0x2c] ss:$16 sps:$4 sm:$0xff]  }
  0x35   :  { %294 = vmatpush1.bf16.msra.mxu0 %v3038_v8  ;;  %335 = vmatpush1.bf16.msra.mxu1 %v3062_v22  ;;  %v3093_v45 = vld [vmem:[#allocation2 + $0x60] ss:$16 sps:$4 sm:$0xff]   ;;  %v3101_v46 = vld [vmem:[#allocation2 + $0x84] ss:$16 sps:$4 sm:$0xff]   ;;  %v3084_v47 = vld [vmem:[#allocation2 + $0x28] ss:$16 sps:$4 sm:$0xff]  }
  0x36   :  { %295 = vmatprep.subr.bf16.mxu0 %v3039_v9  ;;  %336 = vmatprep.subr.bf16.mxu1 %v3063_v23  ;;  %v3092_v48 = vld [vmem:[#allocation2 + $0x4c] ss:$16 sps:$4 sm:$0xff]   ;;  %v3099_v49 = vld [vmem:[#allocation2 + $0x80] ss:$16 sps:$4 sm:$0xff]   ;;  %v3107_v50 = vld [vmem:[#allocation2 + $0xa4] ss:$16 sps:$4 sm:$0xff]  }
  0x37   :  { %v3090_v51 = vld [vmem:[#allocation2 + $0x48] ss:$16 sps:$4 sm:$0xff]   ;;  %v3098_v52 = vld [vmem:[#allocation2 + $0x6c] ss:$16 sps:$4 sm:$0xff]   ;;  %v3105_v53 = vld [vmem:[#allocation2 + $0xa0] ss:$16 sps:$4 sm:$0xff]  }
  0x38   :  { %v3113_v54 = vld [vmem:[#allocation2 + $0xc4] ss:$16 sps:$4 sm:$0xff]   ;;  %v3096_v55 = vld [vmem:[#allocation2 + $0x68] ss:$16 sps:$4 sm:$0xff]   ;;  %v3104_v56 = vld [vmem:[#allocation2 + $0x8c] ss:$16 sps:$4 sm:$0xff]  }
  0x39   :  { %296 = vmatpush1.bf16.msra.mxu0 %v3041_v13  ;;  %337 = vmatpush1.bf16.msra.mxu1 %v3065_v27  ;;  %v3111_v57 = vld [vmem:[#allocation2 + $0xc0] ss:$16 sps:$4 sm:$0xff]   ;;  %v3119_v58 = vld [vmem:[#allocation2 + $0xe4] ss:$16 sps:$4 sm:$0xff]   ;;  %v3102_v59 = vld [vmem:[#allocation2 + $0x88] ss:$16 sps:$4 sm:$0xff]  }
  0x3a   :  { %297 = vmatprep.subr.bf16.mxu0 %v3042_v16  ;;  %338 = vmatprep.subr.bf16.mxu1 %v3066_v28  ;;  %v3110_v60 = vld [vmem:[#allocation2 + $0xac] ss:$16 sps:$4 sm:$0xff]   ;;  %v3117_v61 = vld [vmem:[#allocation2 + $0xe0] ss:$16 sps:$4 sm:$0xff]   ;;  %v3125_v62 = vld [vmem:[#allocation2 + $0x104] ss:$16 sps:$4 sm:$0xff]  }
  0x3b   :  { %v3108_v63 = vld [vmem:[#allocation2 + $0xa8] ss:$16 sps:$4 sm:$0xff]   ;;  %v3116_v0 = vld [vmem:[#allocation2 + $0xcc] ss:$16 sps:$4 sm:$0xff]   ;;  %v3123_v1 = vld [vmem:[#allocation2 + $0x100] ss:$16 sps:$4 sm:$0xff]  }
  0x3c   :  { %v3131_v2 = vld [vmem:[#allocation2 + $0x124] ss:$16 sps:$4 sm:$0xff]   ;;  %v3114_v3 = vld [vmem:[#allocation2 + $0xc8] ss:$16 sps:$4 sm:$0xff]   ;;  %v3122_v4 = vld [vmem:[#allocation2 + $0xec] ss:$16 sps:$4 sm:$0xff]  }
  0x3d   :  { %298 = vmatpush1.bf16.msra.mxu0 %v3044_v17  ;;  %339 = vmatpush1.bf16.msra.mxu1 %v3068_v31  ;;  %v3129_v5 = vld [vmem:[#allocation2 + $0x120] ss:$16 sps:$4 sm:$0xff]   ;;  %v3137_v6 = vld [vmem:[#allocation2 + $0x144] ss:$16 sps:$4 sm:$0xff]   ;;  %v3120_v7 = vld [vmem:[#allocation2 + $0xe8] ss:$16 sps:$4 sm:$0xff]  }
  0x3e   :  { %299 = vmatprep.subr.bf16.mxu0 %v3045_v20  ;;  %340 = vmatprep.subr.bf16.mxu1 %v3069_v32  ;;  %v3128_v8 = vld [vmem:[#allocation2 + $0x10c] ss:$16 sps:$4 sm:$0xff]   ;;  %v3135_v9 = vld [vmem:[#allocation2 + $0x140] ss:$16 sps:$4 sm:$0xff]   ;;  %v3143_v10 = vld [vmem:[#allocation2 + $0x164] ss:$16 sps:$4 sm:$0xff]  }
  0x3f   :  { %v3126_v11 = vld [vmem:[#allocation2 + $0x108] ss:$16 sps:$4 sm:$0xff]   ;;  %v3134_v12 = vld [vmem:[#allocation2 + $0x12c] ss:$16 sps:$4 sm:$0xff]   ;;  %v3141_v13 = vld [vmem:[#allocation2 + $0x160] ss:$16 sps:$4 sm:$0xff]  }
  0x40   :  { %v3149_v14 = vld [vmem:[#allocation2 + $0x184] ss:$16 sps:$4 sm:$0xff]   ;;  %v3132_v15 = vld [vmem:[#allocation2 + $0x128] ss:$16 sps:$4 sm:$0xff]   ;;  %v3140_v16 = vld [vmem:[#allocation2 + $0x14c] ss:$16 sps:$4 sm:$0xff]  }
  0x41   :  { %300 = vmatpush1.bf16.msra.mxu0 %v3047_v21  ;;  %341 = vmatpush1.bf16.msra.mxu1 %v3071_v35  ;;  %v3147_v17 = vld [vmem:[#allocation2 + $0x180] ss:$16 sps:$4 sm:$0xff]   ;;  %v3155_v18 = vld [vmem:[#allocation2 + $0x1a4] ss:$16 sps:$4 sm:$0xff]   ;;  %v3138_v19 = vld [vmem:[#allocation2 + $0x148] ss:$16 sps:$4 sm:$0xff]  }
  0x42   :  { %301 = vmatprep.subr.bf16.mxu0 %v3048_v24  ;;  %342 = vmatprep.subr.bf16.mxu1 %v3072_v36  ;;  %v3146_v20 = vld [vmem:[#allocation2 + $0x16c] ss:$16 sps:$4 sm:$0xff]   ;;  %v3153_v21 = vld [vmem:[#allocation2 + $0x1a0] ss:$16 sps:$4 sm:$0xff]   ;;  %v3144_v22 = vld [vmem:[#allocation2 + $0x168] ss:$16 sps:$4 sm:$0xff]  }
  0x43   :  { %v3152_v23 = vld [vmem:[#allocation2 + $0x18c] ss:$16 sps:$4 sm:$0xff]   ;;  %v3150_v24 = vld [vmem:[#allocation2 + $0x188] ss:$16 sps:$4 sm:$0xff]   ;;  %v3161_v27 = vld [vmem:[#allocation2 + $0x1c4] ss:$16 sps:$4 sm:$0xff]  }
  0x44   :  { %v3156_v26 = vld [vmem:[#allocation2 + $0x1a8] ss:$16 sps:$4 sm:$0xff]   ;;  %v3164_v28 = vld [vmem:[#allocation2 + $0x1cc] ss:$16 sps:$4 sm:$0xff]   ;;  %v3167_v31 = vld [vmem:[#allocation2 + $0x1e4] ss:$16 sps:$4 sm:$0xff]  }
  0x45   :  { %302 = vmatpush1.bf16.msra.mxu0 %v3050_v25  ;;  %343 = vmatpush1.bf16.msra.mxu1 %v3074_v39  ;;  %v3158_v25 = vld [vmem:[#allocation2 + $0x1ac] ss:$16 sps:$4 sm:$0xff]   ;;  %v3173_v35 = vld [vmem:[#allocation2 + $0x204] ss:$16 sps:$4 sm:$0xff]  }
  0x46   :  { %1189 = vmatprep.subr.bf16.mxu0 %v3077_v29  ;;  %1271 = vmatprep.subr.bf16.mxu1 %v3080_v40  ;;  %v3159_v29 = vld [vmem:[#allocation2 + $0x1c0] ss:$16 sps:$4 sm:$0xff]   ;;  %v3170_v32 = vld [vmem:[#allocation2 + $0x1ec] ss:$16 sps:$4 sm:$0xff]  }
  0x47   :  { %v3176_v36 = vld [vmem:[#allocation2 + $0x20c] ss:$16 sps:$4 sm:$0xff]   ;;  %v3705_v40 = vld [vmem:[%s3961_s5] sm:$0xff] }
  0x48   :  { %320 = vmatmul.mubr.bf16.vlgmr.msra.gmra.mrb[0].mxu0 %v56_v30  ;;  %361 = vmatmul.mubr.bf16.vlgmr.msra.gmra.mrb[0].mxu1 %v56_v30  ;;  %v3162_v30 = vld [vmem:[#allocation2 + $0x1c8] ss:$16 sps:$4 sm:$0xff]  }
  0x49   :  { %1190 = vmatpush1.bf16.msra.mxu0 %v3075_v33  ;;  %1272 = vmatpush1.bf16.msra.mxu1 %v3078_v43  ;;  %v3165_v33 = vld [vmem:[#allocation2 + $0x1e0] ss:$16 sps:$4 sm:$0xff]  }
  0x4a   :  { %1191 = vmatprep.subr.bf16.mxu0 %v3083_v34  ;;  %1273 = vmatprep.subr.bf16.mxu1 %v3086_v44  ;;  %v3168_v34 = vld [vmem:[#allocation2 + $0x1e8] ss:$16 sps:$4 sm:$0xff]  }
  0x4d   :  { %1192 = vmatpush1.bf16.msra.mxu0 %v3081_v37  ;;  %1274 = vmatpush1.bf16.msra.mxu1 %v3084_v47  ;;  %v91_v37 = vlaneseq }
  0x4e   :  { %1193 = vmatprep.subr.bf16.mxu0 %v3089_v38  ;;  %1275 = vmatprep.subr.bf16.mxu1 %v3092_v48 }
  0x4f   :  { %v3697_v38 = vshrl.u32 %v91_v37, 7  ;;  %v3219_v37 = vld [vmem:[#allocation2 + $0x300] ss:$16 sps:$4 sm:$0xff]  }
  0x51   :  { %1194 = vmatpush1.bf16.msra.mxu0 %v3087_v41  ;;  %1276 = vmatpush1.bf16.msra.mxu1 %v3090_v51  ;;  %v3700_v39 = vsub.s32 0, %v3697_v38  ;;  %v97_v41 = vsub.s32 4, %v3697_v38  ;;  %v3716_v51 = vld [vmem:[%s3961_s5 + $0x8] sm:$0xff] }
  0x52   :  { %1195 = vmatprep.subr.bf16.mxu0 %v3095_v42  ;;  %1277 = vmatprep.subr.bf16.mxu1 %v3098_v52 }
  0x53   :  { %v94_v42 = vrot.slane %v3705_v40, %v3700_v39  ;;  %v98_v43 = vrot.slane %v3705_v40, %v97_v41 }
  0x55   :  { %1196 = vmatpush1.bf16.msra.mxu0 %v3093_v45  ;;  %1278 = vmatpush1.bf16.msra.mxu1 %v3096_v55  ;;  %v114_v44 = vrot.slane %v94_v42, %v3700_v39  ;;  %v118_v45 = vrot.slane %v98_v43, %v3700_v39  ;;  %v3227_v42 = vld [vmem:[#allocation2 + $0x324] ss:$16 sps:$4 sm:$0xff]   ;;  %v3230_v43 = vld [vmem:[#allocation2 + $0x32c] ss:$16 sps:$4 sm:$0xff]  }
  0x56   :  { %1197 = vmatprep.subr.bf16.mxu0 %v3101_v46  ;;  %1279 = vmatprep.subr.bf16.mxu1 %v3104_v56  ;;  %v106_v56 = vrot.slane %v3716_v51, %v97_v41  ;;  %v3222_v41 = vld [vmem:[#allocation2 + $0x308] ss:$16 sps:$4 sm:$0xff]  }
  0x59   :  { %1198 = vmatpush1.bf16.msra.mxu0 %v3099_v49  ;;  %1280 = vmatpush1.bf16.msra.mxu1 %v3102_v59  ;;  %v3171_v59 = vld [vmem:[#allocation2 + $0x200] ss:$16 sps:$4 sm:$0xff]  }
  0x5a   :  { %1199 = vmatprep.subr.bf16.mxu0 %v3107_v50  ;;  %1281 = vmatprep.subr.bf16.mxu1 %v3110_v60  ;;  %v3174_v60 = vld [vmem:[#allocation2 + $0x208] ss:$16 sps:$4 sm:$0xff]  }
  0x5d   :  { %1200 = vmatpush1.bf16.msra.mxu0 %v3105_v53  ;;  %1282 = vmatpush1.bf16.msra.mxu1 %v3108_v63  ;;  %v3182_v63 = vld [vmem:[#allocation2 + $0x22c] ss:$16 sps:$4 sm:$0xff]  }
  0x5e   :  { %1201 = vmatprep.subr.bf16.mxu0 %v3113_v54  ;;  %1283 = vmatprep.subr.bf16.mxu1 %v3116_v0  ;;  %v126_v0 = vrot.slane %v106_v56, %v3700_v39  ;;  %v3248_v56 = vld [vmem:[#allocation2 + $0x38c] ss:$16 sps:$4 sm:$0xff]  }
  0x61   :  { %1202 = vmatpush1.bf16.msra.mxu0 %v3111_v57  ;;  %1284 = vmatpush1.bf16.msra.mxu1 %v3114_v3 }
  0x62   :  { %1203 = vmatprep.subr.bf16.mxu0 %v3119_v58  ;;  %1285 = vmatprep.subr.bf16.mxu1 %v3122_v4  ;;  %v3185_v4 = vld [vmem:[#allocation2 + $0x244] ss:$16 sps:$4 sm:$0xff]  }
  0x65   :  { %1204 = vmatpush1.bf16.msra.mxu0 %v3117_v61  ;;  %1286 = vmatpush1.bf16.msra.mxu1 %v3120_v7 }
  0x66   :  { %1205 = vmatprep.subr.bf16.mxu0 %v3125_v62  ;;  %1287 = vmatprep.subr.bf16.mxu1 %v3128_v8  ;;  %v3179_v62 = vld [vmem:[#allocation2 + $0x224] ss:$16 sps:$4 sm:$0xff]  }
  0x69   :  { %1206 = vmatpush1.bf16.msra.mxu0 %v3123_v1  ;;  %1288 = vmatpush1.bf16.msra.mxu1 %v3126_v11  ;;  %v3177_v1 = vld [vmem:[#allocation2 + $0x220] ss:$16 sps:$4 sm:$0xff]   ;;  %v3186_v11 = vld [vmem:[#allocation2 + $0x248] ss:$16 sps:$4 sm:$0xff]  }
  0x6a   :  { %1207 = vmatprep.subr.bf16.mxu0 %v3131_v2  ;;  %1289 = vmatprep.subr.bf16.mxu1 %v3134_v12  ;;  %v3180_v2 = vld [vmem:[#allocation2 + $0x228] ss:$16 sps:$4 sm:$0xff]  }
  0x6d   :  { %1208 = vmatpush1.bf16.msra.mxu0 %v3129_v5  ;;  %1290 = vmatpush1.bf16.msra.mxu1 %v3132_v15  ;;  %v3188_v5 = vld [vmem:[#allocation2 + $0x24c] ss:$16 sps:$4 sm:$0xff]  }
  0x6e   :  { %1209 = vmatprep.subr.bf16.mxu0 %v3137_v6  ;;  %1291 = vmatprep.subr.bf16.mxu1 %v3140_v16 }
  0x71   :  { %1210 = vmatpush1.bf16.msra.mxu0 %v3135_v9  ;;  %1292 = vmatpush1.bf16.msra.mxu1 %v3138_v19  ;;  %v3183_v9 = vld [vmem:[#allocation2 + $0x240] ss:$16 sps:$4 sm:$0xff]   ;;  %v3197_v19 = vld [vmem:[#allocation2 + $0x284] ss:$16 sps:$4 sm:$0xff]  }
  0x72   :  { %1211 = vmatprep.subr.bf16.mxu0 %v3143_v10  ;;  %1293 = vmatprep.subr.bf16.mxu1 %v3146_v20  ;;  %v3200_v20 = vld [vmem:[#allocation2 + $0x28c] ss:$16 sps:$4 sm:$0xff]  }
  0x75   :  { %1212 = vmatpush1.bf16.msra.mxu0 %v3141_v13  ;;  %1294 = vmatpush1.bf16.msra.mxu1 %v3144_v22  ;;  %v3191_v13 = vld [vmem:[#allocation2 + $0x264] ss:$16 sps:$4 sm:$0xff]   ;;  %v3198_v22 = vld [vmem:[#allocation2 + $0x288] ss:$16 sps:$4 sm:$0xff]  }
  0x76   :  { %1213 = vmatprep.subr.bf16.mxu0 %v3149_v14  ;;  %1295 = vmatprep.subr.bf16.mxu1 %v3152_v23  ;;  %v3194_v14 = vld [vmem:[#allocation2 + $0x26c] ss:$16 sps:$4 sm:$0xff]   ;;  %v3203_v23 = vld [vmem:[#allocation2 + $0x2a4] ss:$16 sps:$4 sm:$0xff]  }
  0x79   :  { %1214 = vmatpush1.bf16.msra.mxu0 %v3147_v17  ;;  %1296 = vmatpush1.bf16.msra.mxu1 %v3150_v24  ;;  %v3189_v17 = vld [vmem:[#allocation2 + $0x260] ss:$16 sps:$4 sm:$0xff]   ;;  %v3206_v24 = vld [vmem:[#allocation2 + $0x2ac] ss:$16 sps:$4 sm:$0xff]  }
  0x7a   :  { %1215 = vmatprep.subr.bf16.mxu0 %v3155_v18  ;;  %1297 = vmatprep.subr.bf16.mxu1 %v3158_v25  ;;  %v3192_v18 = vld [vmem:[#allocation2 + $0x268] ss:$16 sps:$4 sm:$0xff]   ;;  %v3201_v25 = vld [vmem:[#allocation2 + $0x2a0] ss:$16 sps:$4 sm:$0xff]  }
  0x7d   :  { %1216 = vmatpush1.bf16.msra.mxu0 %v3153_v21  ;;  %1298 = vmatpush1.bf16.msra.mxu1 %v3156_v26  ;;  %v3195_v21 = vld [vmem:[#allocation2 + $0x280] ss:$16 sps:$4 sm:$0xff]   ;;  %v3204_v26 = vld [vmem:[#allocation2 + $0x2a8] ss:$16 sps:$4 sm:$0xff]  }
  0x7e   :  { %1217 = vmatprep.subr.bf16.mxu0 %v3161_v27  ;;  %1299 = vmatprep.subr.bf16.mxu1 %v3164_v28  ;;  %v3209_v27 = vld [vmem:[#allocation2 + $0x2c4] ss:$16 sps:$4 sm:$0xff]   ;;  %v3212_v28 = vld [vmem:[#allocation2 + $0x2cc] ss:$16 sps:$4 sm:$0xff]  }
  0x81   :  { %1218 = vmatpush1.bf16.msra.mxu0 %v3159_v29  ;;  %1300 = vmatpush1.bf16.msra.mxu1 %v3162_v30  ;;  %v3207_v29 = vld [vmem:[#allocation2 + $0x2c0] ss:$16 sps:$4 sm:$0xff]   ;;  %v3210_v30 = vld [vmem:[#allocation2 + $0x2c8] ss:$16 sps:$4 sm:$0xff]  }
  0x82   :  { %1219 = vmatprep.subr.bf16.mxu0 %v3167_v31  ;;  %1301 = vmatprep.subr.bf16.mxu1 %v3170_v32  ;;  %v3215_v31 = vld [vmem:[#allocation2 + $0x2e4] ss:$16 sps:$4 sm:$0xff]   ;;  %v3218_v32 = vld [vmem:[#allocation2 + $0x2ec] ss:$16 sps:$4 sm:$0xff]  }
  0x85   :  { %1220 = vmatpush1.bf16.msra.mxu0 %v3165_v33  ;;  %1302 = vmatpush1.bf16.msra.mxu1 %v3168_v34  ;;  %v3213_v33 = vld [vmem:[#allocation2 + $0x2e0] ss:$16 sps:$4 sm:$0xff]   ;;  %v3216_v34 = vld [vmem:[#allocation2 + $0x2e8] ss:$16 sps:$4 sm:$0xff]  }
  0x86   :  { %1230 = vmatprep.subr.bf16.mxu0 %v3173_v35  ;;  %1312 = vmatprep.subr.bf16.mxu1 %v3176_v36  ;;  %v3221_v35 = vld [vmem:[#allocation2 + $0x304] ss:$16 sps:$4 sm:$0xff]   ;;  %v3224_v36 = vld [vmem:[#allocation2 + $0x30c] ss:$16 sps:$4 sm:$0xff]  }
 0x11b   :  { %v321_v46 = vpop.f32.mrb[0].mxu0  ;;  %v3720_v3 = vpop.f32.mrb[0].mxu1 }
 0x11c   :  { %v322_v47 = vadd.f32 %v321_v46, %v114_v44  ;;  %v323_v48 = vpop.f32.mrb[1].mxu0  ;;  %v364_v6 = vpop.f32.mrb[1].mxu1  ;;  %v3225_v44 = vld [vmem:[#allocation2 + $0x320] ss:$16 sps:$4 sm:$0xff]   ;;  %v3233_v46 = vld [vmem:[#allocation2 + $0x344] ss:$16 sps:$4 sm:$0xff]  }
 0x11d   :  { %v324_v49 = vadd.f32 %v323_v48, %v118_v45  ;;  %v325_v50 = vpop.f32.mrb[2].mxu0  ;;  %v365_v7 = vadd.f32 %v364_v6, %v126_v0  ;;  %v366_v8 = vpop.f32.mrb[2].mxu1  ;;  %v3228_v45 = vld [vmem:[#allocation2 + $0x328] ss:$16 sps:$4 sm:$0xff]   ;;  %v3231_v48 = vld [vmem:[#allocation2 + $0x340] ss:$16 sps:$4 sm:$0xff]  }
 0x11e   :  { %vm369_vm0 = vcmp.ge.f32.partialorder %v322_v47, 0.0  ;;  %v373_v52 = vmul.f32 0.01, %v322_v47  ;;  %v326_v53 = vpop.f32.mrb[3].mxu0  ;;  %v367_v10 = vpop.f32.mrb[3].mxu1 }
 0x11f   :  { %vm370_vm1 = vcmp.ge.f32.partialorder %v324_v49, 0.0  ;;  %v374_v54 = vmul.f32 0.01, %v324_v49  ;;  %vm372_vm2 = vcmp.ge.f32.partialorder %v365_v7, 0.0  ;;  %v376_v12 = vmul.f32 0.01, %v365_v7 }
 0x120   :  { %v377_v55 = vsel %vm369_vm0, %v322_v47, %v373_v52  ;;  %v3236_v47 = vld [vmem:[#allocation2 + $0x34c] ss:$16 sps:$4 sm:$0xff]   ;;  %v3239_v50 = vld [vmem:[#allocation2 + $0x364] ss:$16 sps:$4 sm:$0xff]   ;;  %v3237_v53 = vld [vmem:[#allocation2 + $0x360] ss:$16 sps:$4 sm:$0xff]  }
 0x121   :  { %v378_v57 = vsel %vm370_vm1, %v324_v49, %v374_v54  ;;  %v381_v61 = vpack.c.bf16 %v377_v55, %v377_v55  ;;  %v380_v15 = vsel %vm372_vm2, %v365_v7, %v376_v12  ;;  %v3234_v49 = vld [vmem:[#allocation2 + $0x348] ss:$16 sps:$4 sm:$0xff]   ;;  %v3242_v52 = vld [vmem:[#allocation2 + $0x36c] ss:$16 sps:$4 sm:$0xff]   ;;  %v3245_v55 = vld [vmem:[#allocation2 + $0x384] ss:$16 sps:$4 sm:$0xff]  }
 0x122   :  { %v382_v58 = vpack.c.bf16 %v378_v57, %v378_v57  ;;  %v384_v16 = vpack.c.bf16 %v380_v15, %v380_v15  ;;  %v3240_v54 = vld [vmem:[#allocation2 + $0x368] ss:$16 sps:$4 sm:$0xff]   ;;  %v102_v57 = vrot.slane %v3716_v51, %v3700_v39  ;;  %v3263_v7 = vld [vmem:[#allocation2 + $0x3e4] ss:$16 sps:$4 sm:$0xff]   ;;  %v3266_v8 = vld [vmem:[#allocation2 + $0x3ec] ss:$16 sps:$4 sm:$0xff]  }
 0x123   :  { %v3252_v0 = vld [vmem:[#allocation2 + $0x3a8] ss:$16 sps:$4 sm:$0xff]   ;;  %v3272_v12 = vld [vmem:[#allocation5 + $0xc] ss:$16 sps:$4 sm:$0xff]  }
 0x124   :  { %1221 = vmatprep.mubr.bf16.mxu0 %v382_v58  ;;  %1303 = vmatprep.mubr.bf16.mxu1 %v382_v58  ;;  %v3243_v58 = vld [vmem:[#allocation2 + $0x380] ss:$16 sps:$4 sm:$0xff]   ;;  %v3258_v6 = vld [vmem:[#allocation2 + $0x3c8] ss:$16 sps:$4 sm:$0xff]  }
 0x125   :  { %1222 = vmatmul.mubr.bf16.vlgmr.msra.gmra.mrb[4].mxu0 %v381_v61  ;;  %1304 = vmatmul.mubr.bf16.vlgmr.msra.gmra.mrb[4].mxu1 %v381_v61  ;;  %v3254_v61 = vld [vmem:[#allocation2 + $0x3ac] ss:$16 sps:$4 sm:$0xff]   ;;  %v3264_v10 = vld [vmem:[#allocation2 + $0x3e8] ss:$16 sps:$4 sm:$0xff]  }
 0x126   :  { %1231 = vmatpush1.bf16.msra.mxu0 %v3171_v59  ;;  %1313 = vmatpush1.bf16.msra.mxu1 %v3174_v60  ;;  %v3246_v59 = vld [vmem:[#allocation2 + $0x388] ss:$16 sps:$4 sm:$0xff]   ;;  %v3251_v60 = vld [vmem:[#allocation2 + $0x3a4] ss:$16 sps:$4 sm:$0xff]  }
 0x127   :  { %1232 = vmatprep.subr.bf16.mxu0 %v3179_v62  ;;  %1314 = vmatprep.subr.bf16.mxu1 %v3182_v63  ;;  %v122_v62 = vrot.slane %v102_v57, %v3700_v39  ;;  %v3249_v63 = vld [vmem:[#allocation2 + $0x3a0] ss:$16 sps:$4 sm:$0xff]   ;;  %v3332_v57 = vld [vmem:[#allocation5 + $0x14c] ss:$16 sps:$4 sm:$0xff]  }
 0x128   :  { %1262 = vmatprep.mubr.bf16.mxu0 %v384_v16  ;;  %1344 = vmatprep.mubr.bf16.mxu1 %v384_v16  ;;  %v3261_v39 = vld [vmem:[#allocation2 + $0x3e0] ss:$16 sps:$4 sm:$0xff]   ;;  %v3275_v16 = vld [vmem:[#allocation5 + $0x24] ss:$16 sps:$4 sm:$0xff]  }
 0x12a   :  { %1233 = vmatpush1.bf16.msra.mxu0 %v3177_v1  ;;  %1315 = vmatpush1.bf16.msra.mxu1 %v3180_v2  ;;  %v3257_v1 = vld [vmem:[#allocation2 + $0x3c4] ss:$16 sps:$4 sm:$0xff]   ;;  %v3260_v2 = vld [vmem:[#allocation2 + $0x3cc] ss:$16 sps:$4 sm:$0xff]  }
 0x12b   :  { %1234 = vmatprep.subr.bf16.mxu0 %v3185_v4  ;;  %1316 = vmatprep.subr.bf16.mxu1 %v3188_v5  ;;  %v363_v4 = vadd.f32 %v3720_v3, %v122_v62  ;;  %v3255_v5 = vld [vmem:[#allocation2 + $0x3c0] ss:$16 sps:$4 sm:$0xff]  }
 0x12c   :  { %v3267_v3 = vld [vmem:[#allocation5] ss:$16 sps:$4 sm:$0xff]  }
 0x12d   :  { %vm371_vm3 = vcmp.ge.f32.partialorder %v363_v4, 0.0  ;;  %v3333_v62 = vld [vmem:[#allocation5 + $0x160] ss:$16 sps:$4 sm:$0xff]  }
 0x12e   :  { %1235 = vmatpush1.bf16.msra.mxu0 %v3183_v9  ;;  %1317 = vmatpush1.bf16.msra.mxu1 %v3186_v11  ;;  %v375_v9 = vmul.f32 0.01, %v363_v4  ;;  %v3269_v11 = vld [vmem:[#allocation5 + $0x4] ss:$16 sps:$4 sm:$0xff]  }
 0x12f   :  { %1236 = vmatprep.subr.bf16.mxu0 %v3191_v13  ;;  %1318 = vmatprep.subr.bf16.mxu1 %v3194_v14  ;;  %v3270_v14 = vld [vmem:[#allocation5 + $0x8] ss:$16 sps:$4 sm:$0xff]  }
 0x130   :  { %v379_v13 = vsel %vm371_vm3, %v363_v4, %v375_v9  ;;  %v3342_v4 = vld [vmem:[#allocation5 + $0x188] ss:$16 sps:$4 sm:$0xff]   ;;  %v3353_v9 = vld [vmem:[#allocation5 + $0x1c4] ss:$16 sps:$4 sm:$0xff]  }
 0x131   :  { %v383_v15 = vpack.c.bf16 %v379_v13, %v379_v13  ;;  %v3362_v13 = vld [vmem:[#allocation5 + $0x1ec] ss:$16 sps:$4 sm:$0xff]  }
 0x132   :  { %1237 = vmatpush1.bf16.msra.mxu0 %v3189_v17  ;;  %1319 = vmatpush1.bf16.msra.mxu1 %v3192_v18  ;;  %v3278_v17 = vld [vmem:[#allocation5 + $0x2c] ss:$16 sps:$4 sm:$0xff]   ;;  %v3273_v18 = vld [vmem:[#allocation5 + $0x20] ss:$16 sps:$4 sm:$0xff]  }
 0x133   :  { %1238 = vmatprep.subr.bf16.mxu0 %v3197_v19  ;;  %1320 = vmatprep.subr.bf16.mxu1 %v3200_v20  ;;  %v3276_v19 = vld [vmem:[#allocation5 + $0x28] ss:$16 sps:$4 sm:$0xff]   ;;  %v3281_v20 = vld [vmem:[#allocation5 + $0x44] ss:$16 sps:$4 sm:$0xff]  }
 0x136   :  { %1239 = vmatpush1.bf16.msra.mxu0 %v3195_v21  ;;  %1321 = vmatpush1.bf16.msra.mxu1 %v3198_v22  ;;  %v3284_v21 = vld [vmem:[#allocation5 + $0x4c] ss:$16 sps:$4 sm:$0xff]   ;;  %v3279_v22 = vld [vmem:[#allocation5 + $0x40] ss:$16 sps:$4 sm:$0xff]  }
 0x137   :  { %1240 = vmatprep.subr.bf16.mxu0 %v3203_v23  ;;  %1322 = vmatprep.subr.bf16.mxu1 %v3206_v24  ;;  %v3282_v23 = vld [vmem:[#allocation5 + $0x48] ss:$16 sps:$4 sm:$0xff]   ;;  %v3287_v24 = vld [vmem:[#allocation5 + $0x64] ss:$16 sps:$4 sm:$0xff]  }
 0x13a   :  { %1241 = vmatpush1.bf16.msra.mxu0 %v3201_v25  ;;  %1323 = vmatpush1.bf16.msra.mxu1 %v3204_v26  ;;  %v3290_v25 = vld [vmem:[#allocation5 + $0x6c] ss:$16 sps:$4 sm:$0xff]   ;;  %v3285_v26 = vld [vmem:[#allocation5 + $0x60] ss:$16 sps:$4 sm:$0xff]  }
 0x13b   :  { %1242 = vmatprep.subr.bf16.mxu0 %v3209_v27  ;;  %1324 = vmatprep.subr.bf16.mxu1 %v3212_v28  ;;  %v3288_v27 = vld [vmem:[#allocation5 + $0x68] ss:$16 sps:$4 sm:$0xff]   ;;  %v3293_v28 = vld [vmem:[#allocation5 + $0x84] ss:$16 sps:$4 sm:$0xff]  }
 0x13e   :  { %1243 = vmatpush1.bf16.msra.mxu0 %v3207_v29  ;;  %1325 = vmatpush1.bf16.msra.mxu1 %v3210_v30  ;;  %v3296_v29 = vld [vmem:[#allocation5 + $0x8c] ss:$16 sps:$4 sm:$0xff]   ;;  %v3291_v30 = vld [vmem:[#allocation5 + $0x80] ss:$16 sps:$4 sm:$0xff]  }
 0x13f   :  { %1244 = vmatprep.subr.bf16.mxu0 %v3215_v31  ;;  %1326 = vmatprep.subr.bf16.mxu1 %v3218_v32  ;;  %v3294_v31 = vld [vmem:[#allocation5 + $0x88] ss:$16 sps:$4 sm:$0xff]   ;;  %v3299_v32 = vld [vmem:[#allocation5 + $0xa4] ss:$16 sps:$4 sm:$0xff]  }
 0x142   :  { %1245 = vmatpush1.bf16.msra.mxu0 %v3213_v33  ;;  %1327 = vmatpush1.bf16.msra.mxu1 %v3216_v34  ;;  %v3302_v33 = vld [vmem:[#allocation5 + $0xac] ss:$16 sps:$4 sm:$0xff]   ;;  %v3297_v34 = vld [vmem:[#allocation5 + $0xa0] ss:$16 sps:$4 sm:$0xff]  }
 0x143   :  { %1246 = vmatprep.subr.bf16.mxu0 %v3221_v35  ;;  %1328 = vmatprep.subr.bf16.mxu1 %v3224_v36  ;;  %v3300_v35 = vld [vmem:[#allocation5 + $0xa8] ss:$16 sps:$4 sm:$0xff]   ;;  %v3305_v36 = vld [vmem:[#allocation5 + $0xc4] ss:$16 sps:$4 sm:$0xff]  }
 0x146   :  { %1247 = vmatpush1.bf16.msra.mxu0 %v3219_v37  ;;  %1329 = vmatpush1.bf16.msra.mxu1 %v3222_v41  ;;  %v3308_v37 = vld [vmem:[#allocation5 + $0xcc] ss:$16 sps:$4 sm:$0xff]   ;;  %v3303_v41 = vld [vmem:[#allocation5 + $0xc0] ss:$16 sps:$4 sm:$0xff]  }
 0x147   :  { %1248 = vmatprep.subr.bf16.mxu0 %v3227_v42  ;;  %1330 = vmatprep.subr.bf16.mxu1 %v3230_v43  ;;  %v3306_v42 = vld [vmem:[#allocation5 + $0xc8] ss:$16 sps:$4 sm:$0xff]   ;;  %v3311_v43 = vld [vmem:[#allocation5 + $0xe4] ss:$16 sps:$4 sm:$0xff]  }
 0x14a   :  { %1249 = vmatpush1.bf16.msra.mxu0 %v3225_v44  ;;  %1331 = vmatpush1.bf16.msra.mxu1 %v3228_v45  ;;  %v3314_v44 = vld [vmem:[#allocation5 + $0xec] ss:$16 sps:$4 sm:$0xff]   ;;  %v3309_v45 = vld [vmem:[#allocation5 + $0xe0] ss:$16 sps:$4 sm:$0xff]  }
 0x14b   :  { %1250 = vmatprep.subr.bf16.mxu0 %v3233_v46  ;;  %1332 = vmatprep.subr.bf16.mxu1 %v3236_v47  ;;  %v3312_v46 = vld [vmem:[#allocation5 + $0xe8] ss:$16 sps:$4 sm:$0xff]   ;;  %v3317_v47 = vld [vmem:[#allocation5 + $0x104] ss:$16 sps:$4 sm:$0xff]  }
 0x14e   :  { %1251 = vmatpush1.bf16.msra.mxu0 %v3231_v48  ;;  %1333 = vmatpush1.bf16.msra.mxu1 %v3234_v49  ;;  %v3320_v48 = vld [vmem:[#allocation5 + $0x10c] ss:$16 sps:$4 sm:$0xff]   ;;  %v3315_v49 = vld [vmem:[#allocation5 + $0x100] ss:$16 sps:$4 sm:$0xff]  }
 0x14f   :  { %1252 = vmatprep.subr.bf16.mxu0 %v3239_v50  ;;  %1334 = vmatprep.subr.bf16.mxu1 %v3242_v52  ;;  %v3318_v50 = vld [vmem:[#allocation5 + $0x108] ss:$16 sps:$4 sm:$0xff]   ;;  %v3323_v52 = vld [vmem:[#allocation5 + $0x124] ss:$16 sps:$4 sm:$0xff]  }
 0x152   :  { %1253 = vmatpush1.bf16.msra.mxu0 %v3237_v53  ;;  %1335 = vmatpush1.bf16.msra.mxu1 %v3240_v54  ;;  %v3326_v53 = vld [vmem:[#allocation5 + $0x12c] ss:$16 sps:$4 sm:$0xff]   ;;  %v3321_v54 = vld [vmem:[#allocation5 + $0x120] ss:$16 sps:$4 sm:$0xff]  }
 0x153   :  { %1254 = vmatprep.subr.bf16.mxu0 %v3245_v55  ;;  %1336 = vmatprep.subr.bf16.mxu1 %v3248_v56  ;;  %v3324_v55 = vld [vmem:[#allocation5 + $0x128] ss:$16 sps:$4 sm:$0xff]   ;;  %v3329_v56 = vld [vmem:[#allocation5 + $0x144] ss:$16 sps:$4 sm:$0xff]  }
 0x156   :  { %1255 = vmatpush1.bf16.msra.mxu0 %v3243_v58  ;;  %1337 = vmatpush1.bf16.msra.mxu1 %v3246_v59  ;;  %v3327_v58 = vld [vmem:[#allocation5 + $0x140] ss:$16 sps:$4 sm:$0xff]   ;;  %v3330_v59 = vld [vmem:[#allocation5 + $0x148] ss:$16 sps:$4 sm:$0xff]  }
 0x157   :  { %1256 = vmatprep.subr.bf16.mxu0 %v3251_v60  ;;  %1338 = vmatprep.subr.bf16.mxu1 %v3254_v61  ;;  %v3335_v60 = vld [vmem:[#allocation5 + $0x164] ss:$16 sps:$4 sm:$0xff]   ;;  %v3338_v61 = vld [vmem:[#allocation5 + $0x16c] ss:$16 sps:$4 sm:$0xff]  }
 0x15a   :  { %1257 = vmatpush1.bf16.msra.mxu0 %v3249_v63  ;;  %1339 = vmatpush1.bf16.msra.mxu1 %v3252_v0  ;;  %v3336_v63 = vld [vmem:[#allocation5 + $0x168] ss:$16 sps:$4 sm:$0xff]   ;;  %v3341_v0 = vld [vmem:[#allocation5 + $0x184] ss:$16 sps:$4 sm:$0xff]  }
 0x15b   :  { %1258 = vmatprep.subr.bf16.mxu0 %v3257_v1  ;;  %1340 = vmatprep.subr.bf16.mxu1 %v3260_v2  ;;  %v3344_v1 = vld [vmem:[#allocation5 + $0x18c] ss:$16 sps:$4 sm:$0xff]   ;;  %v3339_v2 = vld [vmem:[#allocation5 + $0x180] ss:$16 sps:$4 sm:$0xff]  }
 0x15e   :  { %1259 = vmatpush1.bf16.msra.mxu0 %v3255_v5  ;;  %1341 = vmatpush1.bf16.msra.mxu1 %v3258_v6  ;;  %v3347_v5 = vld [vmem:[#allocation5 + $0x1a4] ss:$16 sps:$4 sm:$0xff]   ;;  %v3350_v6 = vld [vmem:[#allocation5 + $0x1ac] ss:$16 sps:$4 sm:$0xff]  }
 0x15f   :  { %1260 = vmatprep.subr.bf16.mxu0 %v3263_v7  ;;  %1342 = vmatprep.subr.bf16.mxu1 %v3266_v8  ;;  %v3345_v7 = vld [vmem:[#allocation5 + $0x1a0] ss:$16 sps:$4 sm:$0xff]   ;;  %v3348_v8 = vld [vmem:[#allocation5 + $0x1a8] ss:$16 sps:$4 sm:$0xff]  }
 0x162   :  { %1261 = vmatpush1.bf16.msra.mxu0 %v3261_v39  ;;  %1343 = vmatpush1.bf16.msra.mxu1 %v3264_v10  ;;  %v3356_v39 = vld [vmem:[#allocation5 + $0x1cc] ss:$16 sps:$4 sm:$0xff]   ;;  %v3351_v10 = vld [vmem:[#allocation5 + $0x1c0] ss:$16 sps:$4 sm:$0xff]  }
 0x163   :  { %2173 = vmatprep.subr.bf16.mxu0 %v3269_v11  ;;  %2255 = vmatprep.subr.bf16.mxu1 %v3272_v12  ;;  %v3354_v11 = vld [vmem:[#allocation5 + $0x1c8] ss:$16 sps:$4 sm:$0xff]   ;;  %v3359_v12 = vld [vmem:[#allocation5 + $0x1e4] ss:$16 sps:$4 sm:$0xff]  }
 0x165   :  { %1263 = vmatmul.mubr.bf16.vlgmr.msra.gmra.mrb[4].mxu0 %v383_v15  ;;  %1345 = vmatmul.mubr.bf16.vlgmr.msra.gmra.mrb[4].mxu1 %v383_v15  ;;  %v3365_v15 = vld [vmem:[#allocation5 + $0x204] ss:$16 sps:$4 sm:$0xff]  }
 0x166   :  { %2174 = vmatpush1.bf16.msra.mxu0 %v3267_v3  ;;  %2256 = vmatpush1.bf16.msra.mxu1 %v3270_v14  ;;  %v3357_v3 = vld [vmem:[#allocation5 + $0x1e0] ss:$16 sps:$4 sm:$0xff]   ;;  %v3360_v14 = vld [vmem:[#allocation5 + $0x1e8] ss:$16 sps:$4 sm:$0xff]  }
 0x167   :  { %2175 = vmatprep.subr.bf16.mxu0 %v3275_v16  ;;  %2257 = vmatprep.subr.bf16.mxu1 %v3278_v17  ;;  %v3368_v16 = vld [vmem:[#allocation5 + $0x20c] ss:$16 sps:$4 sm:$0xff]   ;;  %v3727_v17 = vsub.s32 1, %v3697_v38 }
 0x16a   :  { %2176 = vmatpush1.bf16.msra.mxu0 %v3273_v18  ;;  %2258 = vmatpush1.bf16.msra.mxu1 %v3276_v19  ;;  %v519_v18 = vsub.s32 5, %v3697_v38  ;;  %v516_v19 = vrot.slane %v3705_v40, %v3727_v17 }
 0x16b   :  { %2177 = vmatprep.subr.bf16.mxu0 %v3281_v20  ;;  %2259 = vmatprep.subr.bf16.mxu1 %v3284_v21 }
 0x16c   :  { %v520_v20 = vrot.slane %v3705_v40, %v519_v18  ;;  %v528_v21 = vrot.slane %v3716_v51, %v519_v18  ;;  %v3419_v18 = vld [vmem:[#allocation5 + $0x324] ss:$16 sps:$4 sm:$0xff]  }
 0x16e   :  { %2178 = vmatpush1.bf16.msra.mxu0 %v3279_v22  ;;  %2260 = vmatpush1.bf16.msra.mxu1 %v3282_v23  ;;  %v536_v22 = vrot.slane %v516_v19, %v3727_v17  ;;  %v540_v23 = vrot.slane %v520_v20, %v3727_v17  ;;  %v3422_v19 = vld [vmem:[#allocation5 + $0x32c] ss:$16 sps:$4 sm:$0xff]   ;;  %v3417_v20 = vld [vmem:[#allocation5 + $0x320] ss:$16 sps:$4 sm:$0xff]  }
 0x16f   :  { %2179 = vmatprep.subr.bf16.mxu0 %v3287_v24  ;;  %2261 = vmatprep.subr.bf16.mxu1 %v3290_v25  ;;  %v548_v24 = vrot.slane %v528_v21, %v3727_v17  ;;  %v3420_v21 = vld [vmem:[#allocation5 + $0x328] ss:$16 sps:$4 sm:$0xff]  }
 0x172   :  { %2180 = vmatpush1.bf16.msra.mxu0 %v3285_v26  ;;  %2262 = vmatpush1.bf16.msra.mxu1 %v3288_v27 }
 0x173   :  { %2181 = vmatprep.subr.bf16.mxu0 %v3293_v28  ;;  %2263 = vmatprep.subr.bf16.mxu1 %v3296_v29 }
 0x176   :  { %2182 = vmatpush1.bf16.msra.mxu0 %v3291_v30  ;;  %2264 = vmatpush1.bf16.msra.mxu1 %v3294_v31 }
 0x177   :  { %2183 = vmatprep.subr.bf16.mxu0 %v3299_v32  ;;  %2265 = vmatprep.subr.bf16.mxu1 %v3302_v33 }
 0x17a   :  { %2184 = vmatpush1.bf16.msra.mxu0 %v3297_v34  ;;  %2266 = vmatpush1.bf16.msra.mxu1 %v3300_v35 }
 0x17b   :  { %2185 = vmatprep.subr.bf16.mxu0 %v3305_v36  ;;  %2267 = vmatprep.subr.bf16.mxu1 %v3308_v37 }
 0x17e   :  { %2186 = vmatpush1.bf16.msra.mxu0 %v3303_v41  ;;  %2268 = vmatpush1.bf16.msra.mxu1 %v3306_v42 }
 0x17f   :  { %2187 = vmatprep.subr.bf16.mxu0 %v3311_v43  ;;  %2269 = vmatprep.subr.bf16.mxu1 %v3314_v44  ;;  %v3363_v44 = vld [vmem:[#allocation5 + $0x200] ss:$16 sps:$4 sm:$0xff]  }
 0x182   :  { %2188 = vmatpush1.bf16.msra.mxu0 %v3309_v45  ;;  %2270 = vmatpush1.bf16.msra.mxu1 %v3312_v46  ;;  %v3366_v45 = vld [vmem:[#allocation5 + $0x208] ss:$16 sps:$4 sm:$0xff]  }
 0x183   :  { %2189 = vmatprep.subr.bf16.mxu0 %v3317_v47  ;;  %2271 = vmatprep.subr.bf16.mxu1 %v3320_v48  ;;  %v3371_v48 = vld [vmem:[#allocation5 + $0x224] ss:$16 sps:$4 sm:$0xff]  }
 0x186   :  { %2190 = vmatpush1.bf16.msra.mxu0 %v3315_v49  ;;  %2272 = vmatpush1.bf16.msra.mxu1 %v3318_v50  ;;  %v3374_v49 = vld [vmem:[#allocation5 + $0x22c] ss:$16 sps:$4 sm:$0xff]  }
 0x187   :  { %2191 = vmatprep.subr.bf16.mxu0 %v3323_v52  ;;  %2273 = vmatprep.subr.bf16.mxu1 %v3326_v53  ;;  %v3369_v52 = vld [vmem:[#allocation5 + $0x220] ss:$16 sps:$4 sm:$0xff]   ;;  %v3372_v53 = vld [vmem:[#allocation5 + $0x228] ss:$16 sps:$4 sm:$0xff]  }
 0x18a   :  { %2192 = vmatpush1.bf16.msra.mxu0 %v3321_v54  ;;  %2274 = vmatpush1.bf16.msra.mxu1 %v3324_v55  ;;  %v3377_v54 = vld [vmem:[#allocation5 + $0x244] ss:$16 sps:$4 sm:$0xff]   ;;  %v3380_v55 = vld [vmem:[#allocation5 + $0x24c] ss:$16 sps:$4 sm:$0xff]  }
 0x18b   :  { %2193 = vmatprep.subr.bf16.mxu0 %v3329_v56  ;;  %2275 = vmatprep.subr.bf16.mxu1 %v3332_v57  ;;  %v3375_v56 = vld [vmem:[#allocation5 + $0x240] ss:$16 sps:$4 sm:$0xff]   ;;  %v3378_v57 = vld [vmem:[#allocation5 + $0x248] ss:$16 sps:$4 sm:$0xff]  }
 0x18e   :  { %2194 = vmatpush1.bf16.msra.mxu0 %v3327_v58  ;;  %2276 = vmatpush1.bf16.msra.mxu1 %v3330_v59  ;;  %v3383_v58 = vld [vmem:[#allocation5 + $0x264] ss:$16 sps:$4 sm:$0xff]   ;;  %v3386_v59 = vld [vmem:[#allocation5 + $0x26c] ss:$16 sps:$4 sm:$0xff]  }
 0x18f   :  { %2195 = vmatprep.subr.bf16.mxu0 %v3335_v60  ;;  %2277 = vmatprep.subr.bf16.mxu1 %v3338_v61  ;;  %v3381_v60 = vld [vmem:[#allocation5 + $0x260] ss:$16 sps:$4 sm:$0xff]   ;;  %v3384_v61 = vld [vmem:[#allocation5 + $0x268] ss:$16 sps:$4 sm:$0xff]  }
 0x192   :  { %2196 = vmatpush1.bf16.msra.mxu0 %v3333_v62  ;;  %2278 = vmatpush1.bf16.msra.mxu1 %v3336_v63  ;;  %v3389_v62 = vld [vmem:[#allocation5 + $0x284] ss:$16 sps:$4 sm:$0xff]   ;;  %v3392_v63 = vld [vmem:[#allocation5 + $0x28c] ss:$16 sps:$4 sm:$0xff]  }
 0x193   :  { %2197 = vmatprep.subr.bf16.mxu0 %v3341_v0  ;;  %2279 = vmatprep.subr.bf16.mxu1 %v3344_v1  ;;  %v3387_v0 = vld [vmem:[#allocation5 + $0x280] ss:$16 sps:$4 sm:$0xff]   ;;  %v3390_v1 = vld [vmem:[#allocation5 + $0x288] ss:$16 sps:$4 sm:$0xff]  }
 0x196   :  { %2198 = vmatpush1.bf16.msra.mxu0 %v3339_v2  ;;  %2280 = vmatpush1.bf16.msra.mxu1 %v3342_v4  ;;  %v3395_v2 = vld [vmem:[#allocation5 + $0x2a4] ss:$16 sps:$4 sm:$0xff]   ;;  %v3398_v4 = vld [vmem:[#allocation5 + $0x2ac] ss:$16 sps:$4 sm:$0xff]  }
 0x197   :  { %2199 = vmatprep.subr.bf16.mxu0 %v3347_v5  ;;  %2281 = vmatprep.subr.bf16.mxu1 %v3350_v6  ;;  %v3393_v5 = vld [vmem:[#allocation5 + $0x2a0] ss:$16 sps:$4 sm:$0xff]   ;;  %v3396_v6 = vld [vmem:[#allocation5 + $0x2a8] ss:$16 sps:$4 sm:$0xff]  }
 0x19a   :  { %2200 = vmatpush1.bf16.msra.mxu0 %v3345_v7  ;;  %2282 = vmatpush1.bf16.msra.mxu1 %v3348_v8  ;;  %v3401_v7 = vld [vmem:[#allocation5 + $0x2c4] ss:$16 sps:$4 sm:$0xff]   ;;  %v3404_v8 = vld [vmem:[#allocation5 + $0x2cc] ss:$16 sps:$4 sm:$0xff]  }
 0x19b   :  { %2201 = vmatprep.subr.bf16.mxu0 %v3353_v9  ;;  %2283 = vmatprep.subr.bf16.mxu1 %v3356_v39  ;;  %v3399_v9 = vld [vmem:[#allocation5 + $0x2c0] ss:$16 sps:$4 sm:$0xff]   ;;  %v3402_v39 = vld [vmem:[#allocation5 + $0x2c8] ss:$16 sps:$4 sm:$0xff]  }
 0x19e   :  { %2202 = vmatpush1.bf16.msra.mxu0 %v3351_v10  ;;  %2284 = vmatpush1.bf16.msra.mxu1 %v3354_v11  ;;  %v3407_v10 = vld [vmem:[#allocation5 + $0x2e4] ss:$16 sps:$4 sm:$0xff]   ;;  %v3410_v11 = vld [vmem:[#allocation5 + $0x2ec] ss:$16 sps:$4 sm:$0xff]  }
 0x19f   :  { %2203 = vmatprep.subr.bf16.mxu0 %v3359_v12  ;;  %2285 = vmatprep.subr.bf16.mxu1 %v3362_v13  ;;  %v3405_v12 = vld [vmem:[#allocation5 + $0x2e0] ss:$16 sps:$4 sm:$0xff]   ;;  %v3408_v13 = vld [vmem:[#allocation5 + $0x2e8] ss:$16 sps:$4 sm:$0xff]  }
 0x1a2   :  { %2204 = vmatpush1.bf16.msra.mxu0 %v3357_v3  ;;  %2286 = vmatpush1.bf16.msra.mxu1 %v3360_v14  ;;  %v3413_v3 = vld [vmem:[#allocation5 + $0x304] ss:$16 sps:$4 sm:$0xff]   ;;  %v3416_v14 = vld [vmem:[#allocation5 + $0x30c] ss:$16 sps:$4 sm:$0xff]  }
 0x1a3   :  { %2214 = vmatprep.subr.bf16.mxu0 %v3365_v15  ;;  %2296 = vmatprep.subr.bf16.mxu1 %v3368_v16  ;;  %v3411_v15 = vld [vmem:[#allocation5 + $0x300] ss:$16 sps:$4 sm:$0xff]   ;;  %v3414_v16 = vld [vmem:[#allocation5 + $0x308] ss:$16 sps:$4 sm:$0xff]  }
 0x238   :  { %v1264_v25 = vpop.f32.mrb[4].mxu0  ;;  %v3737_v26 = vpop.f32.mrb[4].mxu1 }
 0x239   :  { %v2997_v27 = vadd.f32 %v1264_v25, %v536_v22  ;;  %v1266_v28 = vpop.f32.mrb[5].mxu0  ;;  %v1348_v29 = vpop.f32.mrb[5].mxu1  ;;  %v3425_v22 = vld [vmem:[#allocation5 + $0x344] ss:$16 sps:$4 sm:$0xff]   ;;  %v3426_v25 = vld [vmem:[#allocation5 + $0x348] ss:$16 sps:$4 sm:$0xff]  }
 0x23a   :  { %v2998_v30 = vadd.f32 %v1266_v28, %v540_v23  ;;  %v3000_v31 = vadd.f32 %v1348_v29, %v548_v24  ;;  %v1268_v32 = vpop.f32.mrb[6].mxu0  ;;  %v1350_v33 = vpop.f32.mrb[6].mxu1  ;;  %v3428_v23 = vld [vmem:[#allocation5 + $0x34c] ss:$16 sps:$4 sm:$0xff]   ;;  %v3423_v24 = vld [vmem:[#allocation5 + $0x340] ss:$16 sps:$4 sm:$0xff]  }
 0x23b   :  { %vm1353_vm4 = vcmp.ge.f32.partialorder %v2997_v27, 0.0  ;;  %v1357_v40 = vmul.f32 0.01, %v2997_v27  ;;  %v1269_v37 = vpop.f32.mrb[7].mxu0  ;;  %v1351_v41 = vpop.f32.mrb[7].mxu1  ;;  %v524_v33 = vrot.slane %v3716_v51, %v3727_v17 }
 0x23c   :  { %vm1354_vm5 = vcmp.ge.f32.partialorder %v2998_v30, 0.0  ;;  %v1358_v34 = vmul.f32 0.01, %v2998_v30  ;;  %vm1356_vm6 = vcmp.ge.f32.partialorder %v3000_v31, 0.0  ;;  %v1360_v35 = vmul.f32 0.01, %v3000_v31 }
 0x23d   :  { %v1361_v36 = vsel %vm1353_vm4, %v2997_v27, %v1357_v40  ;;  %v3431_v27 = vld [vmem:[#allocation5 + $0x364] ss:$16 sps:$4 sm:$0xff]   ;;  %v3434_v28 = vld [vmem:[#allocation5 + $0x36c] ss:$16 sps:$4 sm:$0xff]   ;;  %v3429_v29 = vld [vmem:[#allocation5 + $0x360] ss:$16 sps:$4 sm:$0xff]   ;;  %v544_v37 = vrot.slane %v524_v33, %v3727_v17 }
 0x23e   :  { %v1362_v42 = vsel %vm1354_vm5, %v2998_v30, %v1358_v34  ;;  %v1364_v46 = vsel %vm1356_vm6, %v3000_v31, %v1360_v35  ;;  %v1365_v47 = vpack.c.bf16 %v1361_v36, %v1361_v36  ;;  %v3432_v30 = vld [vmem:[#allocation5 + $0x368] ss:$16 sps:$4 sm:$0xff]   ;;  %v3437_v31 = vld [vmem:[#allocation5 + $0x384] ss:$16 sps:$4 sm:$0xff]   ;;  %v3440_v32 = vld [vmem:[#allocation5 + $0x38c] ss:$16 sps:$4 sm:$0xff]  }
 0x23f   :  { %v1366_v43 = vpack.c.bf16 %v1362_v42, %v1362_v42  ;;  %v1368_v50 = vpack.c.bf16 %v1364_v46, %v1364_v46  ;;  %v3435_v40 = vld [vmem:[#allocation5 + $0x380] ss:$16 sps:$4 sm:$0xff]   ;;  %v3438_v34 = vld [vmem:[#allocation5 + $0x388] ss:$16 sps:$4 sm:$0xff]   ;;  %v3443_v35 = vld [vmem:[#allocation5 + $0x3a4] ss:$16 sps:$4 sm:$0xff]   ;;  %v2999_v51 = vadd.f32 %v3737_v26, %v544_v37 }
 0x240   :  { %v3446_v36 = vld [vmem:[#allocation5 + $0x3ac] ss:$16 sps:$4 sm:$0xff]   ;;  %v3441_v41 = vld [vmem:[#allocation5 + $0x3a0] ss:$16 sps:$4 sm:$0xff]   ;;  %v3444_v42 = vld [vmem:[#allocation5 + $0x3a8] ss:$16 sps:$4 sm:$0xff]  }
 0x241   :  { %2205 = vmatprep.mubr.bf16.mxu0 %v1366_v43  ;;  %2287 = vmatprep.mubr.bf16.mxu1 %v1366_v43  ;;  %v3449_v43 = vld [vmem:[#allocation5 + $0x3c4] ss:$16 sps:$4 sm:$0xff]   ;;  %v3450_v46 = vld [vmem:[#allocation5 + $0x3c8] ss:$16 sps:$4 sm:$0xff]   ;;  %vm1355_vm7 = vcmp.ge.f32.partialorder %v2999_v51, 0.0 }
 0x242   :  { %2206 = vmatmul.mubr.bf16.vlgmr.msra.gmra.mrb[8].mxu0 %v1365_v47  ;;  %2288 = vmatmul.mubr.bf16.vlgmr.msra.gmra.mrb[8].mxu1 %v1365_v47  ;;  %v3455_v47 = vld [vmem:[#allocation5 + $0x3e4] ss:$16 sps:$4 sm:$0xff]  }
 0x243   :  { %2215 = vmatpush1.bf16.msra.mxu0 %v3363_v44  ;;  %2297 = vmatpush1.bf16.msra.mxu1 %v3366_v45  ;;  %v3452_v44 = vld [vmem:[#allocation5 + $0x3cc] ss:$16 sps:$4 sm:$0xff]   ;;  %v3447_v45 = vld [vmem:[#allocation5 + $0x3c0] ss:$16 sps:$4 sm:$0xff]  }
 0x244   :  { %2246 = vmatprep.mubr.bf16.mxu0 %v1368_v50  ;;  %2328 = vmatprep.mubr.bf16.mxu1 %v1368_v50  ;;  %v2365_v17 = vld [vmem:[%s3960_s4 + $0x80] sm:$0xff]  ;;  %v2366_v50 = vld [vmem:[%s3960_s4 + $0x88] sm:$0xff] }
 0x245   :  { %2216 = vmatprep.subr.bf16.mxu0 %v3371_v48  ;;  %2298 = vmatprep.subr.bf16.mxu1 %v3374_v49  ;;  %v3458_v48 = vld [vmem:[#allocation5 + $0x3ec] ss:$16 sps:$4 sm:$0xff]   ;;  %v1359_v49 = vmul.f32 0.01, %v2999_v51  ;;  %v2397_v26 = vld [vmem:[%s3960_s4 + $0x180] sm:$0xff] }
 0x246   :  { %v2405_v37 = vld [vmem:[%s3960_s4 + $0x1c0] sm:$0xff] }
 0x247   :  { %2217 = vmatpush1.bf16.msra.mxu0 %v3369_v52  ;;  %2299 = vmatpush1.bf16.msra.mxu1 %v3372_v53  ;;  %v2398_v52 = vld [vmem:[%s3960_s4 + $0x188] sm:$0xff]  ;;  %v3453_v53 = vld [vmem:[#allocation5 + $0x3e0] ss:$16 sps:$4 sm:$0xff]  }
 0x248   :  { %2218 = vmatprep.subr.bf16.mxu0 %v3377_v54  ;;  %2300 = vmatprep.subr.bf16.mxu1 %v3380_v55  ;;  %v3456_v54 = vld [vmem:[#allocation5 + $0x3e8] ss:$16 sps:$4 sm:$0xff]   ;;  %v2349_v55 = vld [vmem:[%s3960_s4] sm:$0xff] }
 0x24b   :  { %2219 = vmatpush1.bf16.msra.mxu0 %v3375_v56  ;;  %2301 = vmatpush1.bf16.msra.mxu1 %v3378_v57  ;;  %v2350_v56 = vld [vmem:[%s3960_s4 + $0x8] sm:$0xff]  ;;  %v2933_v57 = vpack.c.bf16 %v2366_v50, %v2365_v17  ;;  %v2375_v17 = vld [vmem:[%s3960_s4 + $0xd0] sm:$0xff] }
 0x24c   :  { %2220 = vmatprep.subr.bf16.mxu0 %v3383_v58  ;;  %2302 = vmatprep.subr.bf16.mxu1 %v3386_v59  ;;  %v2965_v58 = vpack.c.bf16 %v2398_v52, %v2397_v26  ;;  %v2381_v59 = vld [vmem:[%s3960_s4 + $0x100] sm:$0xff]  ;;  %v2407_v50 = vld [vmem:[%s3960_s4 + $0x1d0] sm:$0xff]  ;;  %v2408_v26 = vld [vmem:[%s3960_s4 + $0x1d8] sm:$0xff] }
 0x24f   :  { %2221 = vmatpush1.bf16.msra.mxu0 %v3381_v60  ;;  %2303 = vmatpush1.bf16.msra.mxu1 %v3384_v61  ;;  %v2382_v60 = vld [vmem:[%s3960_s4 + $0x108] sm:$0xff]  ;;  %v2367_v61 = vld [vmem:[%s3960_s4 + $0x90] sm:$0xff] }
 0x250   :  { %2222 = vmatprep.subr.bf16.mxu0 %v3389_v62  ;;  %2304 = vmatprep.subr.bf16.mxu1 %v3392_v63  ;;  %v1363_v62 = vsel %vm1355_vm7, %v2999_v51, %v1359_v49  ;;  %v2368_v63 = vld [vmem:[%s3960_s4 + $0x98] sm:$0xff]  ;;  %v2358_v51 = vld [vmem:[%s3960_s4 + $0x48] sm:$0xff] }
 0x251   :  { %v2376_v49 = vld [vmem:[%s3960_s4 + $0xd8] sm:$0xff] }
 0x253   :  { %2223 = vmatpush1.bf16.msra.mxu0 %v3387_v0  ;;  %2305 = vmatpush1.bf16.msra.mxu1 %v3390_v1  ;;  %v2399_v0 = vld [vmem:[%s3960_s4 + $0x190] sm:$0xff]  ;;  %v2400_v1 = vld [vmem:[%s3960_s4 + $0x198] sm:$0xff] }
 0x254   :  { %2224 = vmatprep.subr.bf16.mxu0 %v3395_v2  ;;  %2306 = vmatprep.subr.bf16.mxu1 %v3398_v4  ;;  %v2935_v2 = vpack.c.bf16 %v2350_v56, %v2349_v55  ;;  %v2967_v4 = vpack.c.bf16 %v2382_v60, %v2381_v59  ;;  %v2953_v55 = vpack.c.bf16 %v2376_v49, %v2375_v17  ;;  %v2392_v59 = vld [vmem:[%s3960_s4 + $0x158] sm:$0xff] }
 0x255   :  { %v2985_v56 = vpack.c.bf16 %v2408_v26, %v2407_v50 }
 0x257   :  { %2225 = vmatpush1.bf16.msra.mxu0 %v3393_v5  ;;  %2307 = vmatpush1.bf16.msra.mxu1 %v3396_v6  ;;  %v2351_v5 = vld [vmem:[%s3960_s4 + $0x10] sm:$0xff]  ;;  %v2352_v6 = vld [vmem:[%s3960_s4 + $0x18] sm:$0xff] }
 0x258   :  { %2226 = vmatprep.subr.bf16.mxu0 %v3401_v7  ;;  %2308 = vmatprep.subr.bf16.mxu1 %v3404_v8  ;;  %v1367_v7 = vpack.c.bf16 %v1363_v62, %v1363_v62  ;;  %v2937_v8 = vpack.c.bf16 %v2368_v63, %v2367_v61  ;;  %v2377_v62 = vld [vmem:[%s3960_s4 + $0xe0] sm:$0xff]  ;;  %v2378_v63 = vld [vmem:[%s3960_s4 + $0xe8] sm:$0xff] }
 0x25b   :  { %2227 = vmatpush1.bf16.msra.mxu0 %v3399_v9  ;;  %2309 = vmatpush1.bf16.msra.mxu1 %v3402_v39  ;;  %v2969_v9 = vpack.c.bf16 %v2400_v1, %v2399_v0  ;;  %v2383_v39 = vld [vmem:[%s3960_s4 + $0x110] sm:$0xff]  ;;  %v2409_v0 = vld [vmem:[%s3960_s4 + $0x1e0] sm:$0xff]  ;;  %v2957_v1 = vpack.c.bf16 %v2378_v63, %v2377_v62 }
 0x25c   :  { %2228 = vmatprep.subr.bf16.mxu0 %v3407_v10  ;;  %2310 = vmatprep.subr.bf16.mxu1 %v3410_v11  ;;  %v2384_v10 = vld [vmem:[%s3960_s4 + $0x118] sm:$0xff]  ;;  %v2369_v11 = vld [vmem:[%s3960_s4 + $0xa0] sm:$0xff] }
 0x25f   :  { %2229 = vmatpush1.bf16.msra.mxu0 %v3405_v12  ;;  %2311 = vmatpush1.bf16.msra.mxu1 %v3408_v13  ;;  %v2370_v12 = vld [vmem:[%s3960_s4 + $0xa8] sm:$0xff]  ;;  %v2401_v13 = vld [vmem:[%s3960_s4 + $0x1a0] sm:$0xff] }
 0x260   :  { %2230 = vmatprep.subr.bf16.mxu0 %v3413_v3  ;;  %2312 = vmatprep.subr.bf16.mxu1 %v3416_v14  ;;  %v2402_v3 = vld [vmem:[%s3960_s4 + $0x1a8] sm:$0xff]  ;;  %v2939_v14 = vpack.c.bf16 %v2352_v6, %v2351_v5 }
 0x261   :  { %v2362_v5 = vld [vmem:[%s3960_s4 + $0x68] sm:$0xff] }
 0x263   :  { %2231 = vmatpush1.bf16.msra.mxu0 %v3411_v15  ;;  %2313 = vmatpush1.bf16.msra.mxu1 %v3414_v16  ;;  %v2971_v15 = vpack.c.bf16 %v2384_v10, %v2383_v39  ;;  %v2353_v16 = vld [vmem:[%s3960_s4 + $0x20] sm:$0xff]  ;;  %v2379_v10 = vld [vmem:[%s3960_s4 + $0xf0] sm:$0xff] }
 0x264   :  { %2232 = vmatprep.subr.bf16.mxu0 %v3419_v18  ;;  %2314 = vmatprep.subr.bf16.mxu1 %v3422_v19  ;;  %v2354_v18 = vld [vmem:[%s3960_s4 + $0x28] sm:$0xff]  ;;  %v2941_v19 = vpack.c.bf16 %v2370_v12, %v2369_v11  ;;  %v2380_v11 = vld [vmem:[%s3960_s4 + $0xf8] sm:$0xff]  ;;  %v2411_v12 = vld [vmem:[%s3960_s4 + $0x1f0] sm:$0xff] }
 0x267   :  { %2233 = vmatpush1.bf16.msra.mxu0 %v3417_v20  ;;  %2315 = vmatpush1.bf16.msra.mxu1 %v3420_v21  ;;  %v2973_v20 = vpack.c.bf16 %v2402_v3, %v2401_v13  ;;  %v2385_v21 = vld [vmem:[%s3960_s4 + $0x120] sm:$0xff]  ;;  %v2961_v13 = vpack.c.bf16 %v2380_v11, %v2379_v10  ;;  %v2412_v3 = vld [vmem:[%s3960_s4 + $0x1f8] sm:$0xff] }
 0x268   :  { %2234 = vmatprep.subr.bf16.mxu0 %v3425_v22  ;;  %2316 = vmatprep.subr.bf16.mxu1 %v3428_v23  ;;  %v2386_v22 = vld [vmem:[%s3960_s4 + $0x128] sm:$0xff]  ;;  %v2371_v23 = vld [vmem:[%s3960_s4 + $0xb0] sm:$0xff] }
 0x26b   :  { %2235 = vmatpush1.bf16.msra.mxu0 %v3423_v24  ;;  %2317 = vmatpush1.bf16.msra.mxu1 %v3426_v25  ;;  %v2372_v24 = vld [vmem:[%s3960_s4 + $0xb8] sm:$0xff]  ;;  %v2403_v25 = vld [vmem:[%s3960_s4 + $0x1b0] sm:$0xff] }
 0x26c   :  { %2236 = vmatprep.subr.bf16.mxu0 %v3431_v27  ;;  %2318 = vmatprep.subr.bf16.mxu1 %v3434_v28  ;;  %v2404_v27 = vld [vmem:[%s3960_s4 + $0x1b8] sm:$0xff]  ;;  %v2943_v28 = vpack.c.bf16 %v2354_v18, %v2353_v16  ;;  %v2993_v16 = vpack.c.bf16 %v2412_v3, %v2411_v12 }
 0x26d   :  { %v2977_v33 = vpack.c.bf16 %v2404_v27, %v2403_v25  ;;  %v3460_v27 = vld [vmem:[%s3961_s5 + $0x8] sm:$0xff] }
 0x26f   :  { %2237 = vmatpush1.bf16.msra.mxu0 %v3429_v29  ;;  %2319 = vmatpush1.bf16.msra.mxu1 %v3432_v30  ;;  %v2975_v29 = vpack.c.bf16 %v2386_v22, %v2385_v21  ;;  %v2355_v30 = vld [vmem:[%s3960_s4 + $0x30] sm:$0xff]  ;;  %v1499_v22 = vsub.s32 2, %v3697_v38 }
 0x270   :  { %2238 = vmatprep.subr.bf16.mxu0 %v3437_v31  ;;  %2320 = vmatprep.subr.bf16.mxu1 %v3440_v32  ;;  %v2356_v31 = vld [vmem:[%s3960_s4 + $0x38] sm:$0xff]  ;;  %v2945_v32 = vpack.c.bf16 %v2372_v24, %v2371_v23  ;;  %v1503_v23 = vsub.s32 6, %v3697_v38  ;;  %v3459_v24 = vld [vmem:[%s3961_s5] sm:$0xff] }
 0x271   :  { %v1500_v25 = vrot.slane %v3459_v24, %v1499_v22 }
 0x273   :  { %2239 = vmatpush1.bf16.msra.mxu0 %v3435_v40  ;;  %2321 = vmatpush1.bf16.msra.mxu1 %v3438_v34  ;;  %v2387_v40 = vld [vmem:[%s3960_s4 + $0x130] sm:$0xff]  ;;  %v2388_v34 = vld [vmem:[%s3960_s4 + $0x138] sm:$0xff] }
 0x274   :  { %2240 = vmatprep.subr.bf16.mxu0 %v3443_v35  ;;  %2322 = vmatprep.subr.bf16.mxu1 %v3446_v36  ;;  %v2373_v35 = vld [vmem:[%s3960_s4 + $0xc0] sm:$0xff]  ;;  %v2374_v36 = vld [vmem:[%s3960_s4 + $0xc8] sm:$0xff] }
 0x277   :  { %2241 = vmatpush1.bf16.msra.mxu0 %v3441_v41  ;;  %2323 = vmatpush1.bf16.msra.mxu1 %v3444_v42  ;;  %v2406_v41 = vld [vmem:[%s3960_s4 + $0x1c8] sm:$0xff]  ;;  %v2947_v42 = vpack.c.bf16 %v2356_v31, %v2355_v30  ;;  %v1512_v30 = vrot.slane %v3460_v27, %v1503_v23  ;;  %v1520_v31 = vrot.slane %v1500_v25, %v1499_v22 }
 0x278   :  { %2242 = vmatprep.subr.bf16.mxu0 %v3449_v43  ;;  %2324 = vmatprep.subr.bf16.mxu1 %v3452_v44  ;;  %v2979_v43 = vpack.c.bf16 %v2388_v34, %v2387_v40  ;;  %v2357_v44 = vld [vmem:[%s3960_s4 + $0x40] sm:$0xff] }
 0x279   :  { %v2951_v52 = vpack.c.bf16 %v2358_v51, %v2357_v44  ;;  %v1532_v40 = vrot.slane %v1512_v30, %v1499_v22 }
 0x27b   :  { %2243 = vmatpush1.bf16.msra.mxu0 %v3447_v45  ;;  %2325 = vmatpush1.bf16.msra.mxu1 %v3450_v46  ;;  %v2949_v45 = vpack.c.bf16 %v2374_v36, %v2373_v35  ;;  %v2981_v46 = vpack.c.bf16 %v2406_v41, %v2405_v37 }
 0x27c   :  { %2244 = vmatprep.subr.bf16.mxu0 %v3455_v47  ;;  %2326 = vmatprep.subr.bf16.mxu1 %v3458_v48  ;;  %v2389_v47 = vld [vmem:[%s3960_s4 + $0x140] sm:$0xff]  ;;  %v2390_v48 = vld [vmem:[%s3960_s4 + $0x148] sm:$0xff] }
 0x27f   :  { %2245 = vmatpush1.bf16.msra.mxu0 %v3453_v53  ;;  %2327 = vmatpush1.bf16.msra.mxu1 %v3456_v54  ;;  %v2983_v53 = vpack.c.bf16 %v2390_v48, %v2389_v47  ;;  %v2359_v54 = vld [vmem:[%s3960_s4 + $0x50] sm:$0xff] }
 0x280   :  { %2934 = vmatprep.subr.bf16.mxu0 %v2933_v57  ;;  %2966 = vmatprep.subr.bf16.mxu1 %v2965_v58  ;;  %v2360_v57 = vld [vmem:[%s3960_s4 + $0x58] sm:$0xff]  ;;  %v2391_v58 = vld [vmem:[%s3960_s4 + $0x150] sm:$0xff] }
 0x281   :  { %v2955_v60 = vpack.c.bf16 %v2360_v57, %v2359_v54  ;;  %v2987_v61 = vpack.c.bf16 %v2392_v59, %v2391_v58 }
 0x282   :  { %2247 = vmatmul.mubr.bf16.vlgmr.msra.gmra.mrb[8].mxu0 %v1367_v7  ;;  %2329 = vmatmul.mubr.bf16.vlgmr.msra.gmra.mrb[8].mxu1 %v1367_v7 }
 0x283   :  { %2936 = vmatpush3.bf16.msra.mxu0 %v2935_v2  ;;  %2968 = vmatpush3.bf16.msra.mxu1 %v2967_v4  ;;  %v2410_v2 = vld [vmem:[%s3960_s4 + $0x1e8] sm:$0xff]  ;;  %v2361_v4 = vld [vmem:[%s3960_s4 + $0x60] sm:$0xff] }
 0x284   :  { %2938 = vmatprep.subr.bf16.mxu0 %v2937_v8  ;;  %2970 = vmatprep.subr.bf16.mxu1 %v2969_v9  ;;  %v2989_v6 = vpack.c.bf16 %v2410_v2, %v2409_v0  ;;  %v2959_v7 = vpack.c.bf16 %v2362_v5, %v2361_v4  ;;  %v2393_v8 = vld [vmem:[%s3960_s4 + $0x160] sm:$0xff]  ;;  %v2394_v9 = vld [vmem:[%s3960_s4 + $0x168] sm:$0xff] }
 0x285   :  { %v2991_v39 = vpack.c.bf16 %v2394_v9, %v2393_v8 }
 0x287   :  { %2940 = vmatpush3.bf16.msra.mxu0 %v2939_v14  ;;  %2972 = vmatpush3.bf16.msra.mxu1 %v2971_v15  ;;  %v2363_v14 = vld [vmem:[%s3960_s4 + $0x70] sm:$0xff]  ;;  %v2364_v15 = vld [vmem:[%s3960_s4 + $0x78] sm:$0xff] }
 0x288   :  { %2942 = vmatprep.subr.bf16.mxu0 %v2941_v19  ;;  %2974 = vmatprep.subr.bf16.mxu1 %v2973_v20  ;;  %v2963_v18 = vpack.c.bf16 %v2364_v15, %v2363_v14  ;;  %v2395_v19 = vld [vmem:[%s3960_s4 + $0x170] sm:$0xff]  ;;  %v2396_v20 = vld [vmem:[%s3960_s4 + $0x178] sm:$0xff]  ;;  %s3538_s4 = smov [#allocation7]  }
 0x289   :  { %v2995_v21 = vpack.c.bf16 %v2396_v20, %v2395_v19  ;;  %s2565_s5 = sshll.u32 %s3538_s4, 4  ;;  %s2566_s5 = int_to_ptr.vmem [resolvable:$true] %s2565_s5 }
 0x28a   :  { %s3505_s30 = scalar_lea.vmem %s2566_s5, 128  ;;  %p3510_p3 = scmp.lt.s32.totalorder %s2566_s5, %s2566_s5 }
 0x28b   :  { %2944 = vmatpush3.bf16.msra.mxu0 %v2943_v28  ;;  %2976 = vmatpush3.bf16.msra.mxu1 %v2975_v29  ;;  %v1508_v28 = vrot.slane %v3460_v27, %v1499_v22  ;;  %v1504_v29 = vrot.slane %v3459_v24, %v1503_v23  ;;  %p3506_p2 = scmp.ne.s32.totalorder %s2566_s5, %s3505_s30  ;;  %p3511_p4 = scmp.lt.s32.totalorder %s3505_s30, %s3505_s30 }
 0x28c   :  { %2946 = vmatprep.subr.bf16.mxu0 %v2945_v32  ;;  %2978 = vmatprep.subr.bf16.mxu1 %v2977_v33 }
 0x28d   :  { %v1528_v32 = vrot.slane %v1508_v28, %v1499_v22  ;;  %v1524_v33 = vrot.slane %v1504_v29, %v1499_v22  ;;  %p3512_p5 = por %p3511_p4, %p3510_p3 }
 0x28f   :  { %2948 = vmatpush3.bf16.msra.mxu0 %v2947_v42  ;;  %2980 = vmatpush3.bf16.msra.mxu1 %v2979_v43  ;;  %p3513_p6 = pnand %p3512_p5, %p3506_p2 }
 0x290   :  { %2950 = vmatprep.subr.bf16.mxu0 %v2949_v45  ;;  %2982 = vmatprep.subr.bf16.mxu1 %v2981_v46 }
 0x293   :  { %2952 = vmatpush3.bf16.msra.mxu0 %v2951_v52  ;;  %2984 = vmatpush3.bf16.msra.mxu1 %v2983_v53 }
 0x294   :  { %2954 = vmatprep.subr.bf16.mxu0 %v2953_v55  ;;  %2986 = vmatprep.subr.bf16.mxu1 %v2985_v56  ;;  %v2415_v55 = vsub.s32 3, %v3697_v38 }
 0x296   :  { %v2416_v58 = vrot.slane %v3459_v24, %v2415_v55 }
 0x297   :  { %2956 = vmatpush3.bf16.msra.mxu0 %v2955_v60  ;;  %2988 = vmatpush3.bf16.msra.mxu1 %v2987_v61 }
 0x298   :  { %2958 = vmatprep.subr.bf16.mxu0 %v2957_v1  ;;  %2990 = vmatprep.subr.bf16.mxu1 %v2989_v6 }
 0x29b   :  { %2960 = vmatpush3.bf16.msra.mxu0 %v2959_v7  ;;  %2992 = vmatpush3.bf16.msra.mxu1 %v2991_v39 }
 0x29c   :  { %2962 = vmatprep.subr.bf16.mxu0 %v2961_v13  ;;  %2994 = vmatprep.subr.bf16.mxu1 %v2993_v16 }
 0x29f   :  { %2964 = vmatpush3.bf16.msra.mxu0 %v2963_v18  ;;  %2996 = vmatpush3.bf16.msra.mxu1 %v2995_v21 }
 0x355   :  { %v2248_v34 = vpop.f32.mrb[8].mxu0  ;;  %v2330_v35 = vpop.f32.mrb[8].mxu1 }
 0x356   :  { %v3001_v36 = vadd.f32 %v2248_v34, %v1520_v31  ;;  %v3003_v37 = vadd.f32 %v2330_v35, %v1528_v32  ;;  %v2250_v41 = vpop.f32.mrb[9].mxu0  ;;  %v2332_v42 = vpop.f32.mrb[9].mxu1 }
 0x357   :  { %v3002_v43 = vadd.f32 %v2250_v41, %v1524_v33  ;;  %v3004_v44 = vadd.f32 %v2332_v42, %v1532_v40  ;;  %v2252_v51 = vpop.f32.mrb[10].mxu0  ;;  %v2334_v45 = vpop.f32.mrb[10].mxu1 }
 0x358   :  { %vm2337_vm8 = vcmp.ge.f32.partialorder %v3001_v36, 0.0  ;;  %v2341_v46 = vmul.f32 0.01, %v3001_v36  ;;  %vm2339_vm9 = vcmp.ge.f32.partialorder %v3003_v37, 0.0  ;;  %v2343_v47 = vmul.f32 0.01, %v3003_v37 }
 0x359   :  { %v2342_v48 = vmul.f32 0.01, %v3002_v43  ;;  %v2344_v17 = vmul.f32 0.01, %v3004_v44  ;;  %v2253_v49 = vpop.f32.mrb[11].mxu0  ;;  %v2335_v50 = vpop.f32.mrb[11].mxu1 }
 0x35a   :  { %vm2338_vm10 = vcmp.ge.f32.partialorder %v3002_v43, 0.0  ;;  %vm2340_vm11 = vcmp.ge.f32.partialorder %v3004_v44, 0.0  ;;  %v2345_v53 = vsel %vm2337_vm8, %v3001_v36, %v2341_v46  ;;  %v2347_v54 = vsel %vm2339_vm9, %v3003_v37, %v2343_v47 }
 0x35b   :  { %v2346_v26 = vsel %vm2338_vm10, %v3002_v43, %v2342_v48  ;;  %v2348_v52 = vsel %vm2340_vm11, %v3004_v44, %v2344_v17 }
 0x35c   :  { %2481 = vmatprep.mubr.f32.mxu0 %v2346_v26  ;;  %2551 = vmatprep.mubr.f32.mxu1 %v2348_v52 }
 0x35d   :  { %2482 = vmatmul.mubr.f32.vlgmr.msra.gmra.mrb[12].mxu0 %v2345_v53  ;;  %2552 = vmatmul.mubr.f32.vlgmr.msra.gmra.mrb[12].mxu1 %v2347_v54 }
 0x430   :  { %v2895_v56 = vpop.f32.mrb[12].mxu0  ;;  %v2930_v57 = vpop.f32.mrb[12].mxu1 }
 0x431   :  { %v2896_v59 = vpop.f32.mrb[13].mxu0  ;;  %v2931_v60 = vpop.f32.mrb[13].mxu1 }
 0x432   :  { %v2897_v61 = vadd.f32 %v2896_v59, %v2895_v56  ;;  %v2932_v62 = vadd.f32 %v2931_v60, %v2930_v57 }
 0x434   :  { %v2484_v63 = vadd.f32 %v2897_v61, %v2416_v58 }
 0x436   :  { %v2554_v0 = vadd.f32 %v2932_v62, %v2484_v63 }
 0x438   :  { %2558 = vst.msk [vmem:[#allocation7] sm:$0xff] %vm2557_vm12, %v2554_v0 }
 0x439   :  { %3516 = shalt.err (!%p3513_p6)
}
 0x43a   :  { %s3517_s9 = scalar_lea.hbm %s3962_s6, 128 }
 0x43b   :  { %p3518_p7 = scmp.ne.s32.totalorder %s3962_s6, %s3517_s9  ;;  %p3521_p8 = scmp.lt.u32.totalorder %s3517_s9, %s3962_s6 }
 0x43d   :  { %p3523_p9 = pnand %p3521_p8, %p3518_p7 }
 0x43f   :  { %3526 = shalt.err (!%p3523_p9)
}
 0x440   :  { %2568 = dma.vmem_to_hbm [thread:$0]  %s2566_s5, 128, %s3962_s6, [#allocation4]  }
 0x441   :  { %3531 = dma.done.wait [#allocation4], 128  }
 0x442   :  { %3532 = vsyncadd [#allocation4], 4294967168 }
 0x443   :  { %2572 = vsyncpa [#allocation3], 1 }
 0x444   :  { %2573 = vsyncpa [#allocation6], 1 }
 0x445   :  { %2574 = vsyncpa [#allocation4], 1 }

</bundles_post_ra>
